<compile_context>
chip_gen: v6e
topology: v6e:2x2x1
jax: 0.10.0
libtpu: 0.0.40
codegen_flags: <defaults>
</compile_context>

<pallas_src>
import math

import jax
import jax.numpy as jnp
from jax.experimental import pallas as pl
from jax.experimental.pallas import tpu as pltpu

N_LAYERS = 2
D_MODEL = 32
N_HEADS = 4
D_FF = 64
EPS = 1e-6
NEG_INF = -1e9
LANE = 128          # TPU lane width; output slab padded to this for unmasked stores


# ----------------------------- in-kernel math ------------------------------


def _layer_norm(x, a, b):
    # Mirrors the PyTorch LayerNorm in the module: mean over last dim,
    # *unbiased* std (divide by D-1), eps added to std (not to variance).
    d = x.shape[-1]
    mean = jnp.mean(x, axis=-1, keepdims=True)
    var = jnp.sum((x - mean) ** 2, axis=-1, keepdims=True) / (d - 1)
    std = jnp.sqrt(var)
    return a * (x - mean) / (std + EPS) + b


def _softmax(scores):
    scores = scores - jnp.max(scores, axis=-1, keepdims=True)
    e = jnp.exp(scores)
    # approx=True routes the divide to the EUP reciprocal (separate VLIW slot).
    return e * pl.reciprocal(jnp.sum(e, axis=-1, keepdims=True), approx=True)


def _attend(q, k, v, bias, Wo, Bo):
    """Multi-head attention core on already-projected q/k/v.

    q: (T, D); k, v: (S, D); bias: additive mask bias broadcastable to (T, S).
    Head outputs are concatenated once and sent through a single (T,D)@(D,D)
    output projection (instead of 4 tiny per-head output matmuls).
    """
    D = q.shape[-1]
    dk = D // N_HEADS
    scale = 1.0 / math.sqrt(dk)
    heads = []
    for h in range(N_HEADS):
        sl = slice(h * dk, (h + 1) * dk)
        # q_h @ k_h^T without materializing a transpose.
        scores = jax.lax.dot_general(
            q[:, sl], k[:, sl], (((1,), (1,)), ((), ())),
            preferred_element_type=jnp.float32) * scale + bias
        p = _softmax(scores)
        heads.append(jnp.dot(p, v[:, sl], preferred_element_type=jnp.float32))
    o = jnp.concatenate(heads, axis=-1)                       # (T, D)
    return jnp.dot(o, Wo, preferred_element_type=jnp.float32) + Bo


def decoder_kernel(x_ref, mem_ref, src_mask_ref, tgt_mask_ref,
                   wqkv_s_ref, bqkv_s_ref, wo_s_ref, bo_s_ref,
                   wq_c_ref, bq_c_ref, wkv_c_ref, bkv_c_ref, wo_c_ref, bo_c_ref,
                   ln_a_ref, ln_b_ref,
                   ffn_w1_ref, ffn_b1_ref, ffn_w2_ref, ffn_b2_ref,
                   fin_a_ref, fin_b_ref,
                   out_ref):
    BB, T, D = x_ref.shape          # BB batch elements folded into this block
    S = mem_ref.shape[1]

    for bb in range(BB):            # static unrolled loop over folded batch
        x = x_ref[bb]               # (T, D)
        mem = mem_ref[bb]           # (S, D)

        # Additive mask biases, computed once per batch element and reused by
        # every layer and head (masks stay kernel inputs to keep the module's
        # general "arbitrary mask" semantics; their DMA is a few hundred bytes).
        tgt_bias = jnp.where(tgt_mask_ref[bb] == 0.0, NEG_INF, 0.0)   # (T, T)
        src_bias = jnp.where(src_mask_ref[bb] == 0.0, NEG_INF, 0.0)   # (1, S)

        for i in range(N_LAYERS):
            lnA = ln_a_ref[i]        # (3, D)
            lnB = ln_b_ref[i]        # (3, D)

            # --- sublayer 0: x + self_attn(norm(x)) with fused QKV ---
            nx = _layer_norm(x, lnA[0:1, :], lnB[0:1, :])
            qkv = jnp.dot(nx, wqkv_s_ref[i],
                          preferred_element_type=jnp.float32) + bqkv_s_ref[i]
            x = x + _attend(qkv[:, 0:D], qkv[:, D:2 * D], qkv[:, 2 * D:3 * D],
                            tgt_bias, wo_s_ref[i], bo_s_ref[i])

            # --- sublayer 1: x + src_attn(norm(x), memory) with fused KV ---
            nx = _layer_norm(x, lnA[1:2, :], lnB[1:2, :])
            q = jnp.dot(nx, wq_c_ref[i],
                        preferred_element_type=jnp.float32) + bq_c_ref[i]
            kv = jnp.dot(mem, wkv_c_ref[i],
                         preferred_element_type=jnp.float32) + bkv_c_ref[i]
            x = x + _attend(q, kv[:, 0:D], kv[:, D:2 * D],
                            src_bias, wo_c_ref[i], bo_c_ref[i])

            # --- sublayer 2: x + FFN(norm(x)) ---
            nx = _layer_norm(x, lnA[2:3, :], lnB[2:3, :])
            h = jnp.maximum(
                jnp.dot(nx, ffn_w1_ref[i],
                        preferred_element_type=jnp.float32) + ffn_b1_ref[i],
                0.0)
            x = x + jnp.dot(h, ffn_w2_ref[i],
                            preferred_element_type=jnp.float32) + ffn_b2_ref[i]

        # Final Decoder.norm
        x = _layer_norm(x, fin_a_ref[...], fin_b_ref[...])

        # Lane-dense store: pad D=32 -> 128 lanes so the write is a full
        # unmasked vector store; the wrapper slices the padding back off.
        pad = jnp.zeros((T, LANE - D), jnp.float32)
        out_ref[bb] = jnp.concatenate([x, pad], axis=-1)


# ------------------------------ host wrapper -------------------------------


def decoder_forward(x, memory, src_mask, tgt_mask, p):
    B, T, D = x.shape
    S = memory.shape[1]

    # Fold the batch into at most 2 grid steps: BB elements per block amortizes
    # the ~0.35us per-grid-step overhead (v5e/v6e single TC), while a size-<=2
    # "parallel" axis still lets a v7x chip use both TensorCores.
    BB = B // 2 if (B % 2 == 0 and B > 1) else B
    grid = (B // BB,)

    w, b = p["attn_w"], p["attn_b"]           # (L, 2, 4, D, D), (L, 2, 4, D)
    # Fused projection weights (built once here, outside the kernel):
    #   self-attn QKV -> (L, D, 3D); src-attn KV over memory -> (L, D, 2D).
    wqkv_s = jnp.concatenate([w[:, 0, 0], w[:, 0, 1], w[:, 0, 2]], axis=-1)
    bqkv_s = jnp.concatenate([b[:, 0, 0], b[:, 0, 1], b[:, 0, 2]], axis=-1)[:, None, :]
    wo_s, bo_s = w[:, 0, 3], b[:, 0, 3][:, None, :]
    wq_c, bq_c = w[:, 1, 0], b[:, 1, 0][:, None, :]
    wkv_c = jnp.concatenate([w[:, 1, 1], w[:, 1, 2]], axis=-1)
    bkv_c = jnp.concatenate([b[:, 1, 1], b[:, 1, 2]], axis=-1)[:, None, :]
    wo_c, bo_c = w[:, 1, 3], b[:, 1, 3][:, None, :]

    weights = (wqkv_s, bqkv_s, wo_s, bo_s,
               wq_c, bq_c, wkv_c, bkv_c, wo_c, bo_c,
               p["ln_a"], p["ln_b"],
               p["ffn_w1"], p["ffn_b1"], p["ffn_w2"], p["ffn_b2"],
               p["fin_a"], p["fin_b"])

    def full_spec(arr):
        nd = arr.ndim
        # Same (zero) block index every step -> weights stay resident in VMEM.
        return pl.BlockSpec(arr.shape, lambda g, _nd=nd: (0,) * _nd)

    in_specs = [
        pl.BlockSpec((BB, T, D), lambda g: (g, 0, 0)),    # x
        pl.BlockSpec((BB, S, D), lambda g: (g, 0, 0)),    # memory
        pl.BlockSpec((BB, 1, S), lambda g: (g, 0, 0)),    # src_mask
        pl.BlockSpec((BB, T, T), lambda g: (g, 0, 0)),    # tgt_mask
    ] + [full_spec(a) for a in weights]

    out_padded = pl.pallas_call(
        decoder_kernel,
        out_shape=jax.ShapeDtypeStruct((B, T, LANE), jnp.float32),
        grid_spec=pltpu.PrefetchScalarGridSpec(
            num_scalar_prefetch=0,
            grid=grid,
            in_specs=in_specs,
            out_specs=pl.BlockSpec((BB, T, LANE), lambda g: (g, 0, 0)),
        ),
        compiler_params=pltpu.CompilerParams(
            dimension_semantics=("parallel",)),
    )(x, memory, src_mask, tgt_mask, *weights)

    return out_padded[:, :, :D]


# ----------------------------- params & reference --------------------------


def init_params(key):
    ks = jax.random.split(key, 6)
    s = 0.02
    return dict(
        attn_w=s * jax.random.normal(ks[0], (N_LAYERS, 2, 4, D_MODEL, D_MODEL), jnp.float32),
        attn_b=s * jax.random.normal(ks[1], (N_LAYERS, 2, 4, D_MODEL), jnp.float32),
        ffn_w1=s * jax.random.normal(ks[2], (N_LAYERS, D_MODEL, D_FF), jnp.float32),
        ffn_b1=s * jax.random.normal(ks[3], (N_LAYERS, 1, D_FF), jnp.float32),
        ffn_w2=s * jax.random.normal(ks[4], (N_LAYERS, D_FF, D_MODEL), jnp.float32),
        ffn_b2=s * jax.random.normal(ks[5], (N_LAYERS, 1, D_MODEL), jnp.float32),
        ln_a=jnp.ones((N_LAYERS, 3, D_MODEL), jnp.float32),
        ln_b=jnp.zeros((N_LAYERS, 3, D_MODEL), jnp.float32),
        fin_a=jnp.ones((1, D_MODEL), jnp.float32),
        fin_b=jnp.zeros((1, D_MODEL), jnp.float32),
    )


def reference_forward(x, memory, src_mask, tgt_mask, p):
    """Pure-JAX reference (batched einsum formulation, exact softmax)."""
    B, T, D = x.shape
    dk = D // N_HEADS

    def ln(t, a, b):
        mean = t.mean(-1, keepdims=True)
        var = ((t - mean) ** 2).sum(-1, keepdims=True) / (D - 1)
        return a * (t - mean) / (jnp.sqrt(var) + EPS) + b

    def mha(q_in, k_in, v_in, mask, W, Bb):
        proj = lambda t, w, bb: jnp.einsum('btd,de->bte', t, w) + bb
        q, k, v = proj(q_in, W[0], Bb[0]), proj(k_in, W[1], Bb[1]), proj(v_in, W[2], Bb[2])
        split = lambda t: t.reshape(t.shape[0], t.shape[1], N_HEADS, dk).transpose(0, 2, 1, 3)
        qh, kh, vh = split(q), split(k), split(v)
        scores = jnp.einsum('bhqd,bhkd->bhqk', qh, kh) / math.sqrt(dk)
        scores = jnp.where(mask[:, None] == 0, NEG_INF, scores)
        pa = jax.nn.softmax(scores, -1)
        o = jnp.einsum('bhqk,bhkd->bhqd', pa, vh)
        o = o.transpose(0, 2, 1, 3).reshape(q_in.shape[0], q_in.shape[1], D)
        return jnp.einsum('btd,de->bte', o, W[3]) + Bb[3]

    for i in range(N_LAYERS):
        nx = ln(x, p['ln_a'][i, 0], p['ln_b'][i, 0])
        x = x + mha(nx, nx, nx, tgt_mask, p['attn_w'][i, 0], p['attn_b'][i, 0])
        nx = ln(x, p['ln_a'][i, 1], p['ln_b'][i, 1])
        x = x + mha(nx, memory, memory, src_mask, p['attn_w'][i, 1], p['attn_b'][i, 1])
        nx = ln(x, p['ln_a'][i, 2], p['ln_b'][i, 2])
        h = jax.nn.relu(jnp.einsum('btd,df->btf', nx, p['ffn_w1'][i]) + p['ffn_b1'][i])
        x = x + jnp.einsum('btf,fd->btd', h, p['ffn_w2'][i]) + p['ffn_b2'][i]
    return ln(x, p['fin_a'][0], p['fin_b'][0])


# ---------------------------------- main ------------------------------------

if __name__ == "__main__":
    B, T, S = 2, 8, 16
    D = D_MODEL

    key = jax.random.PRNGKey(0)
    kx, km, kp = jax.random.split(key, 3)

    x = jax.random.normal(kx, (B, T, D), jnp.float32)
    memory = jax.random.normal(km, (B, S, D), jnp.float32)

    # Causal target mask (B, T, T); source mask (B, 1, S) with padding masked
    # out in the second batch element.
    tgt_mask = jnp.tril(jnp.ones((T, T), jnp.float32))[None].repeat(B, axis=0)
    src_mask = jnp.ones((B, 1, S), jnp.float32)
    src_mask = src_mask.at[1, 0, S - 4:].set(0.0)

    params = init_params(kp)

    out = decoder_forward(x, memory, src_mask, tgt_mask, params)
    out = jax.block_until_ready(out)

    ref = reference_forward(x, memory, src_mask, tgt_mask, params)
    assert out.shape == (B, T, D)
    err = jnp.max(jnp.abs(out - ref))
    # Tolerance set to 1e-3 to absorb the EUP approximate reciprocal in the
    # in-kernel softmax; a structural bug would show up as O(1e-2)+ error.
    assert jnp.allclose(out, ref, atol=1e-3, rtol=1e-3), f"max abs err {err}"

    print("KERNEL_OK")
</pallas_src>

<mosaic_0001>
module attributes {stable_mosaic.version = 11 : i64} {
  func.func @decoder_kernel(%arg0: i32, %arg1: memref<1x8x32xf32, #tpu.memory_space<vmem>>, %arg2: memref<1x16x32xf32, #tpu.memory_space<vmem>>, %arg3: memref<1x1x16xf32, #tpu.memory_space<vmem>>, %arg4: memref<1x8x8xf32, #tpu.memory_space<vmem>>, %arg5: memref<2x32x96xf32, #tpu.memory_space<vmem>>, %arg6: memref<2x1x96xf32, #tpu.memory_space<vmem>>, %arg7: memref<2x32x32xf32, #tpu.memory_space<vmem>>, %arg8: memref<2x1x32xf32, #tpu.memory_space<vmem>>, %arg9: memref<2x32x32xf32, #tpu.memory_space<vmem>>, %arg10: memref<2x1x32xf32, #tpu.memory_space<vmem>>, %arg11: memref<2x32x64xf32, #tpu.memory_space<vmem>>, %arg12: memref<2x1x64xf32, #tpu.memory_space<vmem>>, %arg13: memref<2x32x32xf32, #tpu.memory_space<vmem>>, %arg14: memref<2x1x32xf32, #tpu.memory_space<vmem>>, %arg15: memref<2x3x32xf32, #tpu.memory_space<vmem>>, %arg16: memref<2x3x32xf32, #tpu.memory_space<vmem>>, %arg17: memref<2x32x64xf32, #tpu.memory_space<vmem>>, %arg18: memref<2x1x64xf32, #tpu.memory_space<vmem>>, %arg19: memref<2x64x32xf32, #tpu.memory_space<vmem>>, %arg20: memref<2x1x32xf32, #tpu.memory_space<vmem>>, %arg21: memref<1x32xf32, #tpu.memory_space<vmem>>, %arg22: memref<1x32xf32, #tpu.memory_space<vmem>>, %arg23: memref<1x8x128xf32, #tpu.memory_space<vmem>>) attributes {dimension_semantics = [#tpu.dimension_semantics<parallel>], iteration_bounds = array<i64: 2>, scalar_prefetch = 0 : i64, scratch_operands = 0 : i64, tpu.core_type = #tpu.core_type<tc>, window_params = [{transform_indices = @transform_0, window_bounds = array<i64: 1, 8, 32>}, {transform_indices = @transform_1, window_bounds = array<i64: 1, 16, 32>}, {transform_indices = @transform_2, window_bounds = array<i64: 1, 1, 16>}, {transform_indices = @transform_3, window_bounds = array<i64: 1, 8, 8>}, {pipeline_mode = #tpu.pipeline_mode<synchronous>, transform_indices = @transform_4, window_bounds = array<i64: 2, 32, 96>}, {pipeline_mode = #tpu.pipeline_mode<synchronous>, transform_indices = @transform_5, window_bounds = array<i64: 2, 1, 96>}, {pipeline_mode = #tpu.pipeline_mode<synchronous>, transform_indices = @transform_6, window_bounds = array<i64: 2, 32, 32>}, {pipeline_mode = #tpu.pipeline_mode<synchronous>, transform_indices = @transform_7, window_bounds = array<i64: 2, 1, 32>}, {pipeline_mode = #tpu.pipeline_mode<synchronous>, transform_indices = @transform_8, window_bounds = array<i64: 2, 32, 32>}, {pipeline_mode = #tpu.pipeline_mode<synchronous>, transform_indices = @transform_9, window_bounds = array<i64: 2, 1, 32>}, {pipeline_mode = #tpu.pipeline_mode<synchronous>, transform_indices = @transform_10, window_bounds = array<i64: 2, 32, 64>}, {pipeline_mode = #tpu.pipeline_mode<synchronous>, transform_indices = @transform_11, window_bounds = array<i64: 2, 1, 64>}, {pipeline_mode = #tpu.pipeline_mode<synchronous>, transform_indices = @transform_12, window_bounds = array<i64: 2, 32, 32>}, {pipeline_mode = #tpu.pipeline_mode<synchronous>, transform_indices = @transform_13, window_bounds = array<i64: 2, 1, 32>}, {pipeline_mode = #tpu.pipeline_mode<synchronous>, transform_indices = @transform_14, window_bounds = array<i64: 2, 3, 32>}, {pipeline_mode = #tpu.pipeline_mode<synchronous>, transform_indices = @transform_15, window_bounds = array<i64: 2, 3, 32>}, {pipeline_mode = #tpu.pipeline_mode<synchronous>, transform_indices = @transform_16, window_bounds = array<i64: 2, 32, 64>}, {pipeline_mode = #tpu.pipeline_mode<synchronous>, transform_indices = @transform_17, window_bounds = array<i64: 2, 1, 64>}, {pipeline_mode = #tpu.pipeline_mode<synchronous>, transform_indices = @transform_18, window_bounds = array<i64: 2, 64, 32>}, {pipeline_mode = #tpu.pipeline_mode<synchronous>, transform_indices = @transform_19, window_bounds = array<i64: 2, 1, 32>}, {pipeline_mode = #tpu.pipeline_mode<synchronous>, transform_indices = @transform_20, window_bounds = array<i64: 1, 32>}, {pipeline_mode = #tpu.pipeline_mode<synchronous>, transform_indices = @transform_21, window_bounds = array<i64: 1, 32>}, {transform_indices = @transform_22, window_bounds = array<i64: 1, 8, 128>}]} {
    %c0 = arith.constant 0 : index
    %c0_0 = arith.constant 0 : index
    %c0_1 = arith.constant 0 : index
    %0 = vector.load %arg1[%c0, %c0_0, %c0_1] : memref<1x8x32xf32, #tpu.memory_space<vmem>>, vector<1x8x32xf32>
    %1 = vector.shape_cast %0 : vector<1x8x32xf32> to vector<8x32xf32>
    %c0_2 = arith.constant 0 : index
    %c0_3 = arith.constant 0 : index
    %c0_4 = arith.constant 0 : index
    %2 = vector.load %arg2[%c0_2, %c0_3, %c0_4] : memref<1x16x32xf32, #tpu.memory_space<vmem>>, vector<1x16x32xf32>
    %3 = vector.shape_cast %2 : vector<1x16x32xf32> to vector<16x32xf32>
    %c0_5 = arith.constant 0 : index
    %c0_6 = arith.constant 0 : index
    %c0_7 = arith.constant 0 : index
    %4 = vector.load %arg4[%c0_5, %c0_6, %c0_7] : memref<1x8x8xf32, #tpu.memory_space<vmem>>, vector<1x8x8xf32>
    %5 = vector.shape_cast %4 : vector<1x8x8xf32> to vector<8x8xf32>
    %cst = arith.constant 0.000000e+00 : f32
    %6 = vector.broadcast %cst : f32 to vector<8x8xf32>
    %7 = arith.cmpf oeq, %5, %6 : vector<8x8xf32>
    %cst_8 = arith.constant -1.000000e+09 : f32
    %cst_9 = arith.constant 0.000000e+00 : f32
    %8 = vector.broadcast %cst_8 : f32 to vector<8x8xf32>
    %9 = vector.broadcast %cst_9 : f32 to vector<8x8xf32>
    %10 = arith.select %7, %8, %9 : vector<8x8xi1>, vector<8x8xf32>
    %c0_10 = arith.constant 0 : index
    %c0_11 = arith.constant 0 : index
    %c0_12 = arith.constant 0 : index
    %11 = vector.load %arg3[%c0_10, %c0_11, %c0_12] : memref<1x1x16xf32, #tpu.memory_space<vmem>>, vector<1x1x16xf32>
    %12 = vector.shape_cast %11 : vector<1x1x16xf32> to vector<1x16xf32>
    %cst_13 = arith.constant 0.000000e+00 : f32
    %13 = vector.broadcast %cst_13 : f32 to vector<1x16xf32>
    %14 = arith.cmpf oeq, %12, %13 : vector<1x16xf32>
    %cst_14 = arith.constant -1.000000e+09 : f32
    %cst_15 = arith.constant 0.000000e+00 : f32
    %15 = vector.broadcast %cst_14 : f32 to vector<1x16xf32>
    %16 = vector.broadcast %cst_15 : f32 to vector<1x16xf32>
    %17 = arith.select %14, %15, %16 : vector<1x16xi1>, vector<1x16xf32>
    %c0_16 = arith.constant 0 : index
    %c0_17 = arith.constant 0 : index
    %c0_18 = arith.constant 0 : index
    %18 = vector.load %arg15[%c0_16, %c0_17, %c0_18] : memref<2x3x32xf32, #tpu.memory_space<vmem>>, vector<1x3x32xf32>
    %19 = vector.shape_cast %18 : vector<1x3x32xf32> to vector<3x32xf32>
    %c0_19 = arith.constant 0 : index
    %c0_20 = arith.constant 0 : index
    %c0_21 = arith.constant 0 : index
    %20 = vector.load %arg16[%c0_19, %c0_20, %c0_21] : memref<2x3x32xf32, #tpu.memory_space<vmem>>, vector<1x3x32xf32>
    %21 = vector.shape_cast %20 : vector<1x3x32xf32> to vector<3x32xf32>
    %22 = vector.extract_strided_slice %19 {offsets = [0, 0], sizes = [1, 32], strides = [1, 1]} : vector<3x32xf32> to vector<1x32xf32>
    %23 = vector.extract_strided_slice %21 {offsets = [0, 0], sizes = [1, 32], strides = [1, 1]} : vector<3x32xf32> to vector<1x32xf32>
    %cst_22 = arith.constant dense<0.000000e+00> : vector<8xf32>
    %24 = vector.multi_reduction <add>, %1, %cst_22 [1] : vector<8x32xf32> to vector<8xf32>
    %25 = vector.shape_cast %24 : vector<8xf32> to vector<8x1xf32>
    %cst_23 = arith.constant 3.200000e+01 : f32
    %26 = vector.broadcast %cst_23 : f32 to vector<8x1xf32>
    %27 = arith.divf %25, %26 : vector<8x1xf32>
    %28 = vector.broadcast %27 : vector<8x1xf32> to vector<8x32xf32>
    %29 = arith.subf %1, %28 : vector<8x32xf32>
    %30 = arith.mulf %29, %29 : vector<8x32xf32>
    %cst_24 = arith.constant dense<0.000000e+00> : vector<8xf32>
    %31 = vector.multi_reduction <add>, %30, %cst_24 [1] : vector<8x32xf32> to vector<8xf32>
    %32 = vector.shape_cast %31 : vector<8xf32> to vector<8x1xf32>
    %cst_25 = arith.constant 3.100000e+01 : f32
    %33 = vector.broadcast %cst_25 : f32 to vector<8x1xf32>
    %34 = arith.divf %32, %33 : vector<8x1xf32>
    %35 = math.sqrt %34 : vector<8x1xf32>
    %36 = vector.broadcast %27 : vector<8x1xf32> to vector<8x32xf32>
    %37 = arith.subf %1, %36 : vector<8x32xf32>
    %38 = vector.broadcast %22 : vector<1x32xf32> to vector<8x32xf32>
    %39 = arith.mulf %38, %37 : vector<8x32xf32>
    %cst_26 = arith.constant 9.99999997E-7 : f32
    %40 = vector.broadcast %cst_26 : f32 to vector<8x1xf32>
    %41 = arith.addf %35, %40 : vector<8x1xf32>
    %42 = vector.broadcast %41 : vector<8x1xf32> to vector<8x32xf32>
    %43 = arith.divf %39, %42 : vector<8x32xf32>
    %44 = vector.broadcast %23 : vector<1x32xf32> to vector<8x32xf32>
    %45 = arith.addf %43, %44 : vector<8x32xf32>
    %c0_27 = arith.constant 0 : index
    %c0_28 = arith.constant 0 : index
    %c0_29 = arith.constant 0 : index
    %46 = vector.load %arg5[%c0_27, %c0_28, %c0_29] : memref<2x32x96xf32, #tpu.memory_space<vmem>>, vector<1x32x96xf32>
    %47 = vector.shape_cast %46 : vector<1x32x96xf32> to vector<32x96xf32>
    %cst_30 = arith.constant dense<0.000000e+00> : vector<8x96xf32>
    %48 = tpu.matmul %45, %47, %cst_30 {dimension_numbers = #tpu.dot_dimension_numbers<[1], [0], [0], [1], [0, 0, 1, 1], [], []>} : vector<8x32xf32>, vector<32x96xf32>, vector<8x96xf32> -> vector<8x96xf32>
    %c0_31 = arith.constant 0 : index
    %c0_32 = arith.constant 0 : index
    %c0_33 = arith.constant 0 : index
    %49 = vector.load %arg6[%c0_31, %c0_32, %c0_33] : memref<2x1x96xf32, #tpu.memory_space<vmem>>, vector<1x1x96xf32>
    %50 = vector.shape_cast %49 : vector<1x1x96xf32> to vector<1x96xf32>
    %51 = vector.broadcast %50 : vector<1x96xf32> to vector<8x96xf32>
    %52 = arith.addf %48, %51 : vector<8x96xf32>
    %53 = vector.extract_strided_slice %52 {offsets = [0, 0], sizes = [8, 32], strides = [1, 1]} : vector<8x96xf32> to vector<8x32xf32>
    %54 = vector.extract_strided_slice %52 {offsets = [0, 32], sizes = [8, 32], strides = [1, 1]} : vector<8x96xf32> to vector<8x32xf32>
    %55 = vector.extract_strided_slice %52 {offsets = [0, 64], sizes = [8, 32], strides = [1, 1]} : vector<8x96xf32> to vector<8x32xf32>
    %c0_34 = arith.constant 0 : index
    %c0_35 = arith.constant 0 : index
    %c0_36 = arith.constant 0 : index
    %56 = vector.load %arg7[%c0_34, %c0_35, %c0_36] : memref<2x32x32xf32, #tpu.memory_space<vmem>>, vector<1x32x32xf32>
    %57 = vector.shape_cast %56 : vector<1x32x32xf32> to vector<32x32xf32>
    %c0_37 = arith.constant 0 : index
    %c0_38 = arith.constant 0 : index
    %c0_39 = arith.constant 0 : index
    %58 = vector.load %arg8[%c0_37, %c0_38, %c0_39] : memref<2x1x32xf32, #tpu.memory_space<vmem>>, vector<1x1x32xf32>
    %59 = vector.shape_cast %58 : vector<1x1x32xf32> to vector<1x32xf32>
    %60 = vector.extract_strided_slice %53 {offsets = [0, 0], sizes = [8, 8], strides = [1, 1]} : vector<8x32xf32> to vector<8x8xf32>
    %61 = vector.extract_strided_slice %54 {offsets = [0, 0], sizes = [8, 8], strides = [1, 1]} : vector<8x32xf32> to vector<8x8xf32>
    %cst_40 = arith.constant dense<0.000000e+00> : vector<8x8xf32>
    %62 = tpu.matmul %60, %61, %cst_40 {dimension_numbers = #tpu.dot_dimension_numbers<[1], [1], [0], [0], [0, 0, 1, 0], [], []>} : vector<8x8xf32>, vector<8x8xf32>, vector<8x8xf32> -> vector<8x8xf32>
    %cst_41 = arith.constant 0.353553385 : f32
    %63 = vector.broadcast %cst_41 : f32 to vector<8x8xf32>
    %64 = arith.mulf %62, %63 : vector<8x8xf32>
    %65 = arith.addf %64, %10 : vector<8x8xf32>
    %cst_42 = arith.constant dense<0xFF800000> : vector<8xf32>
    %66 = vector.multi_reduction <maximumf>, %65, %cst_42 [1] : vector<8x8xf32> to vector<8xf32>
    %67 = vector.shape_cast %66 : vector<8xf32> to vector<8x1xf32>
    %68 = vector.broadcast %67 : vector<8x1xf32> to vector<8x8xf32>
    %69 = arith.subf %65, %68 : vector<8x8xf32>
    %70 = math.exp %69 : vector<8x8xf32>
    %cst_43 = arith.constant dense<0.000000e+00> : vector<8xf32>
    %71 = vector.multi_reduction <add>, %70, %cst_43 [1] : vector<8x8xf32> to vector<8xf32>
    %72 = vector.shape_cast %71 : vector<8xf32> to vector<8x1xf32>
    %73 = tpu.reciprocal %72 {approx = true} : vector<8x1xf32> -> vector<8x1xf32>
    %74 = vector.broadcast %73 : vector<8x1xf32> to vector<8x8xf32>
    %75 = arith.mulf %70, %74 : vector<8x8xf32>
    %76 = vector.extract_strided_slice %55 {offsets = [0, 0], sizes = [8, 8], strides = [1, 1]} : vector<8x32xf32> to vector<8x8xf32>
    %cst_44 = arith.constant dense<0.000000e+00> : vector<8x8xf32>
    %77 = tpu.matmul %75, %76, %cst_44 {dimension_numbers = #tpu.dot_dimension_numbers<[1], [0], [0], [1], [0, 0, 1, 1], [], []>} : vector<8x8xf32>, vector<8x8xf32>, vector<8x8xf32> -> vector<8x8xf32>
    %78 = vector.extract_strided_slice %53 {offsets = [0, 8], sizes = [8, 8], strides = [1, 1]} : vector<8x32xf32> to vector<8x8xf32>
    %79 = vector.extract_strided_slice %54 {offsets = [0, 8], sizes = [8, 8], strides = [1, 1]} : vector<8x32xf32> to vector<8x8xf32>
    %cst_45 = arith.constant dense<0.000000e+00> : vector<8x8xf32>
    %80 = tpu.matmul %78, %79, %cst_45 {dimension_numbers = #tpu.dot_dimension_numbers<[1], [1], [0], [0], [0, 0, 1, 0], [], []>} : vector<8x8xf32>, vector<8x8xf32>, vector<8x8xf32> -> vector<8x8xf32>
    %cst_46 = arith.constant 0.353553385 : f32
    %81 = vector.broadcast %cst_46 : f32 to vector<8x8xf32>
    %82 = arith.mulf %80, %81 : vector<8x8xf32>
    %83 = arith.addf %82, %10 : vector<8x8xf32>
    %cst_47 = arith.constant dense<0xFF800000> : vector<8xf32>
    %84 = vector.multi_reduction <maximumf>, %83, %cst_47 [1] : vector<8x8xf32> to vector<8xf32>
    %85 = vector.shape_cast %84 : vector<8xf32> to vector<8x1xf32>
    %86 = vector.broadcast %85 : vector<8x1xf32> to vector<8x8xf32>
    %87 = arith.subf %83, %86 : vector<8x8xf32>
    %88 = math.exp %87 : vector<8x8xf32>
    %cst_48 = arith.constant dense<0.000000e+00> : vector<8xf32>
    %89 = vector.multi_reduction <add>, %88, %cst_48 [1] : vector<8x8xf32> to vector<8xf32>
    %90 = vector.shape_cast %89 : vector<8xf32> to vector<8x1xf32>
    %91 = tpu.reciprocal %90 {approx = true} : vector<8x1xf32> -> vector<8x1xf32>
    %92 = vector.broadcast %91 : vector<8x1xf32> to vector<8x8xf32>
    %93 = arith.mulf %88, %92 : vector<8x8xf32>
    %94 = vector.extract_strided_slice %55 {offsets = [0, 8], sizes = [8, 8], strides = [1, 1]} : vector<8x32xf32> to vector<8x8xf32>
    %cst_49 = arith.constant dense<0.000000e+00> : vector<8x8xf32>
    %95 = tpu.matmul %93, %94, %cst_49 {dimension_numbers = #tpu.dot_dimension_numbers<[1], [0], [0], [1], [0, 0, 1, 1], [], []>} : vector<8x8xf32>, vector<8x8xf32>, vector<8x8xf32> -> vector<8x8xf32>
    %96 = vector.extract_strided_slice %53 {offsets = [0, 16], sizes = [8, 8], strides = [1, 1]} : vector<8x32xf32> to vector<8x8xf32>
    %97 = vector.extract_strided_slice %54 {offsets = [0, 16], sizes = [8, 8], strides = [1, 1]} : vector<8x32xf32> to vector<8x8xf32>
    %cst_50 = arith.constant dense<0.000000e+00> : vector<8x8xf32>
    %98 = tpu.matmul %96, %97, %cst_50 {dimension_numbers = #tpu.dot_dimension_numbers<[1], [1], [0], [0], [0, 0, 1, 0], [], []>} : vector<8x8xf32>, vector<8x8xf32>, vector<8x8xf32> -> vector<8x8xf32>
    %cst_51 = arith.constant 0.353553385 : f32
    %99 = vector.broadcast %cst_51 : f32 to vector<8x8xf32>
    %100 = arith.mulf %98, %99 : vector<8x8xf32>
    %101 = arith.addf %100, %10 : vector<8x8xf32>
    %cst_52 = arith.constant dense<0xFF800000> : vector<8xf32>
    %102 = vector.multi_reduction <maximumf>, %101, %cst_52 [1] : vector<8x8xf32> to vector<8xf32>
    %103 = vector.shape_cast %102 : vector<8xf32> to vector<8x1xf32>
    %104 = vector.broadcast %103 : vector<8x1xf32> to vector<8x8xf32>
    %105 = arith.subf %101, %104 : vector<8x8xf32>
    %106 = math.exp %105 : vector<8x8xf32>
    %cst_53 = arith.constant dense<0.000000e+00> : vector<8xf32>
    %107 = vector.multi_reduction <add>, %106, %cst_53 [1] : vector<8x8xf32> to vector<8xf32>
    %108 = vector.shape_cast %107 : vector<8xf32> to vector<8x1xf32>
    %109 = tpu.reciprocal %108 {approx = true} : vector<8x1xf32> -> vector<8x1xf32>
    %110 = vector.broadcast %109 : vector<8x1xf32> to vector<8x8xf32>
    %111 = arith.mulf %106, %110 : vector<8x8xf32>
    %112 = vector.extract_strided_slice %55 {offsets = [0, 16], sizes = [8, 8], strides = [1, 1]} : vector<8x32xf32> to vector<8x8xf32>
    %cst_54 = arith.constant dense<0.000000e+00> : vector<8x8xf32>
    %113 = tpu.matmul %111, %112, %cst_54 {dimension_numbers = #tpu.dot_dimension_numbers<[1], [0], [0], [1], [0, 0, 1, 1], [], []>} : vector<8x8xf32>, vector<8x8xf32>, vector<8x8xf32> -> vector<8x8xf32>
    %114 = vector.extract_strided_slice %53 {offsets = [0, 24], sizes = [8, 8], strides = [1, 1]} : vector<8x32xf32> to vector<8x8xf32>
    %115 = vector.extract_strided_slice %54 {offsets = [0, 24], sizes = [8, 8], strides = [1, 1]} : vector<8x32xf32> to vector<8x8xf32>
    %cst_55 = arith.constant dense<0.000000e+00> : vector<8x8xf32>
    %116 = tpu.matmul %114, %115, %cst_55 {dimension_numbers = #tpu.dot_dimension_numbers<[1], [1], [0], [0], [0, 0, 1, 0], [], []>} : vector<8x8xf32>, vector<8x8xf32>, vector<8x8xf32> -> vector<8x8xf32>
    %cst_56 = arith.constant 0.353553385 : f32
    %117 = vector.broadcast %cst_56 : f32 to vector<8x8xf32>
    %118 = arith.mulf %116, %117 : vector<8x8xf32>
    %119 = arith.addf %118, %10 : vector<8x8xf32>
    %cst_57 = arith.constant dense<0xFF800000> : vector<8xf32>
    %120 = vector.multi_reduction <maximumf>, %119, %cst_57 [1] : vector<8x8xf32> to vector<8xf32>
    %121 = vector.shape_cast %120 : vector<8xf32> to vector<8x1xf32>
    %122 = vector.broadcast %121 : vector<8x1xf32> to vector<8x8xf32>
    %123 = arith.subf %119, %122 : vector<8x8xf32>
    %124 = math.exp %123 : vector<8x8xf32>
    %cst_58 = arith.constant dense<0.000000e+00> : vector<8xf32>
    %125 = vector.multi_reduction <add>, %124, %cst_58 [1] : vector<8x8xf32> to vector<8xf32>
    %126 = vector.shape_cast %125 : vector<8xf32> to vector<8x1xf32>
    %127 = tpu.reciprocal %126 {approx = true} : vector<8x1xf32> -> vector<8x1xf32>
    %128 = vector.broadcast %127 : vector<8x1xf32> to vector<8x8xf32>
    %129 = arith.mulf %124, %128 : vector<8x8xf32>
    %130 = vector.extract_strided_slice %55 {offsets = [0, 24], sizes = [8, 8], strides = [1, 1]} : vector<8x32xf32> to vector<8x8xf32>
    %cst_59 = arith.constant dense<0.000000e+00> : vector<8x8xf32>
    %131 = tpu.matmul %129, %130, %cst_59 {dimension_numbers = #tpu.dot_dimension_numbers<[1], [0], [0], [1], [0, 0, 1, 1], [], []>} : vector<8x8xf32>, vector<8x8xf32>, vector<8x8xf32> -> vector<8x8xf32>
    %132 = tpu.concatenate %77, %95, %113, %131 in 1 : vector<8x8xf32>, vector<8x8xf32>, vector<8x8xf32>, vector<8x8xf32> -> vector<8x32xf32>
    %cst_60 = arith.constant dense<0.000000e+00> : vector<8x32xf32>
    %133 = tpu.matmul %132, %57, %cst_60 {dimension_numbers = #tpu.dot_dimension_numbers<[1], [0], [0], [1], [0, 0, 1, 1], [], []>} : vector<8x32xf32>, vector<32x32xf32>, vector<8x32xf32> -> vector<8x32xf32>
    %134 = vector.broadcast %59 : vector<1x32xf32> to vector<8x32xf32>
    %135 = arith.addf %133, %134 : vector<8x32xf32>
    %136 = arith.addf %1, %135 : vector<8x32xf32>
    %137 = vector.extract_strided_slice %19 {offsets = [1, 0], sizes = [1, 32], strides = [1, 1]} : vector<3x32xf32> to vector<1x32xf32>
    %138 = vector.extract_strided_slice %21 {offsets = [1, 0], sizes = [1, 32], strides = [1, 1]} : vector<3x32xf32> to vector<1x32xf32>
    %cst_61 = arith.constant dense<0.000000e+00> : vector<8xf32>
    %139 = vector.multi_reduction <add>, %136, %cst_61 [1] : vector<8x32xf32> to vector<8xf32>
    %140 = vector.shape_cast %139 : vector<8xf32> to vector<8x1xf32>
    %cst_62 = arith.constant 3.200000e+01 : f32
    %141 = vector.broadcast %cst_62 : f32 to vector<8x1xf32>
    %142 = arith.divf %140, %141 : vector<8x1xf32>
    %143 = vector.broadcast %142 : vector<8x1xf32> to vector<8x32xf32>
    %144 = arith.subf %136, %143 : vector<8x32xf32>
    %145 = arith.mulf %144, %144 : vector<8x32xf32>
    %cst_63 = arith.constant dense<0.000000e+00> : vector<8xf32>
    %146 = vector.multi_reduction <add>, %145, %cst_63 [1] : vector<8x32xf32> to vector<8xf32>
    %147 = vector.shape_cast %146 : vector<8xf32> to vector<8x1xf32>
    %cst_64 = arith.constant 3.100000e+01 : f32
    %148 = vector.broadcast %cst_64 : f32 to vector<8x1xf32>
    %149 = arith.divf %147, %148 : vector<8x1xf32>
    %150 = math.sqrt %149 : vector<8x1xf32>
    %151 = vector.broadcast %142 : vector<8x1xf32> to vector<8x32xf32>
    %152 = arith.subf %136, %151 : vector<8x32xf32>
    %153 = vector.broadcast %137 : vector<1x32xf32> to vector<8x32xf32>
    %154 = arith.mulf %153, %152 : vector<8x32xf32>
    %cst_65 = arith.constant 9.99999997E-7 : f32
    %155 = vector.broadcast %cst_65 : f32 to vector<8x1xf32>
    %156 = arith.addf %150, %155 : vector<8x1xf32>
    %157 = vector.broadcast %156 : vector<8x1xf32> to vector<8x32xf32>
    %158 = arith.divf %154, %157 : vector<8x32xf32>
    %159 = vector.broadcast %138 : vector<1x32xf32> to vector<8x32xf32>
    %160 = arith.addf %158, %159 : vector<8x32xf32>
    %c0_66 = arith.constant 0 : index
    %c0_67 = arith.constant 0 : index
    %c0_68 = arith.constant 0 : index
    %161 = vector.load %arg9[%c0_66, %c0_67, %c0_68] : memref<2x32x32xf32, #tpu.memory_space<vmem>>, vector<1x32x32xf32>
    %162 = vector.shape_cast %161 : vector<1x32x32xf32> to vector<32x32xf32>
    %cst_69 = arith.constant dense<0.000000e+00> : vector<8x32xf32>
    %163 = tpu.matmul %160, %162, %cst_69 {dimension_numbers = #tpu.dot_dimension_numbers<[1], [0], [0], [1], [0, 0, 1, 1], [], []>} : vector<8x32xf32>, vector<32x32xf32>, vector<8x32xf32> -> vector<8x32xf32>
    %c0_70 = arith.constant 0 : index
    %c0_71 = arith.constant 0 : index
    %c0_72 = arith.constant 0 : index
    %164 = vector.load %arg10[%c0_70, %c0_71, %c0_72] : memref<2x1x32xf32, #tpu.memory_space<vmem>>, vector<1x1x32xf32>
    %165 = vector.shape_cast %164 : vector<1x1x32xf32> to vector<1x32xf32>
    %166 = vector.broadcast %165 : vector<1x32xf32> to vector<8x32xf32>
    %167 = arith.addf %163, %166 : vector<8x32xf32>
    %c0_73 = arith.constant 0 : index
    %c0_74 = arith.constant 0 : index
    %c0_75 = arith.constant 0 : index
    %168 = vector.load %arg11[%c0_73, %c0_74, %c0_75] : memref<2x32x64xf32, #tpu.memory_space<vmem>>, vector<1x32x64xf32>
    %169 = vector.shape_cast %168 : vector<1x32x64xf32> to vector<32x64xf32>
    %cst_76 = arith.constant dense<0.000000e+00> : vector<16x64xf32>
    %170 = tpu.matmul %3, %169, %cst_76 {dimension_numbers = #tpu.dot_dimension_numbers<[1], [0], [0], [1], [0, 0, 1, 1], [], []>} : vector<16x32xf32>, vector<32x64xf32>, vector<16x64xf32> -> vector<16x64xf32>
    %c0_77 = arith.constant 0 : index
    %c0_78 = arith.constant 0 : index
    %c0_79 = arith.constant 0 : index
    %171 = vector.load %arg12[%c0_77, %c0_78, %c0_79] : memref<2x1x64xf32, #tpu.memory_space<vmem>>, vector<1x1x64xf32>
    %172 = vector.shape_cast %171 : vector<1x1x64xf32> to vector<1x64xf32>
    %173 = vector.broadcast %172 : vector<1x64xf32> to vector<16x64xf32>
    %174 = arith.addf %170, %173 : vector<16x64xf32>
    %175 = vector.extract_strided_slice %174 {offsets = [0, 0], sizes = [16, 32], strides = [1, 1]} : vector<16x64xf32> to vector<16x32xf32>
    %176 = vector.extract_strided_slice %174 {offsets = [0, 32], sizes = [16, 32], strides = [1, 1]} : vector<16x64xf32> to vector<16x32xf32>
    %c0_80 = arith.constant 0 : index
    %c0_81 = arith.constant 0 : index
    %c0_82 = arith.constant 0 : index
    %177 = vector.load %arg13[%c0_80, %c0_81, %c0_82] : memref<2x32x32xf32, #tpu.memory_space<vmem>>, vector<1x32x32xf32>
    %178 = vector.shape_cast %177 : vector<1x32x32xf32> to vector<32x32xf32>
    %c0_83 = arith.constant 0 : index
    %c0_84 = arith.constant 0 : index
    %c0_85 = arith.constant 0 : index
    %179 = vector.load %arg14[%c0_83, %c0_84, %c0_85] : memref<2x1x32xf32, #tpu.memory_space<vmem>>, vector<1x1x32xf32>
    %180 = vector.shape_cast %179 : vector<1x1x32xf32> to vector<1x32xf32>
    %181 = vector.extract_strided_slice %167 {offsets = [0, 0], sizes = [8, 8], strides = [1, 1]} : vector<8x32xf32> to vector<8x8xf32>
    %182 = vector.extract_strided_slice %175 {offsets = [0, 0], sizes = [16, 8], strides = [1, 1]} : vector<16x32xf32> to vector<16x8xf32>
    %cst_86 = arith.constant dense<0.000000e+00> : vector<8x16xf32>
    %183 = tpu.matmul %181, %182, %cst_86 {dimension_numbers = #tpu.dot_dimension_numbers<[1], [1], [0], [0], [0, 0, 1, 0], [], []>} : vector<8x8xf32>, vector<16x8xf32>, vector<8x16xf32> -> vector<8x16xf32>
    %cst_87 = arith.constant 0.353553385 : f32
    %184 = vector.broadcast %cst_87 : f32 to vector<8x16xf32>
    %185 = arith.mulf %183, %184 : vector<8x16xf32>
    %186 = vector.broadcast %17 : vector<1x16xf32> to vector<8x16xf32>
    %187 = arith.addf %185, %186 : vector<8x16xf32>
    %cst_88 = arith.constant dense<0xFF800000> : vector<8xf32>
    %188 = vector.multi_reduction <maximumf>, %187, %cst_88 [1] : vector<8x16xf32> to vector<8xf32>
    %189 = vector.shape_cast %188 : vector<8xf32> to vector<8x1xf32>
    %190 = vector.broadcast %189 : vector<8x1xf32> to vector<8x16xf32>
    %191 = arith.subf %187, %190 : vector<8x16xf32>
    %192 = math.exp %191 : vector<8x16xf32>
    %cst_89 = arith.constant dense<0.000000e+00> : vector<8xf32>
    %193 = vector.multi_reduction <add>, %192, %cst_89 [1] : vector<8x16xf32> to vector<8xf32>
    %194 = vector.shape_cast %193 : vector<8xf32> to vector<8x1xf32>
    %195 = tpu.reciprocal %194 {approx = true} : vector<8x1xf32> -> vector<8x1xf32>
    %196 = vector.broadcast %195 : vector<8x1xf32> to vector<8x16xf32>
    %197 = arith.mulf %192, %196 : vector<8x16xf32>
    %198 = vector.extract_strided_slice %176 {offsets = [0, 0], sizes = [16, 8], strides = [1, 1]} : vector<16x32xf32> to vector<16x8xf32>
    %cst_90 = arith.constant dense<0.000000e+00> : vector<8x8xf32>
    %199 = tpu.matmul %197, %198, %cst_90 {dimension_numbers = #tpu.dot_dimension_numbers<[1], [0], [0], [1], [0, 0, 1, 1], [], []>} : vector<8x16xf32>, vector<16x8xf32>, vector<8x8xf32> -> vector<8x8xf32>
    %200 = vector.extract_strided_slice %167 {offsets = [0, 8], sizes = [8, 8], strides = [1, 1]} : vector<8x32xf32> to vector<8x8xf32>
    %201 = vector.extract_strided_slice %175 {offsets = [0, 8], sizes = [16, 8], strides = [1, 1]} : vector<16x32xf32> to vector<16x8xf32>
    %cst_91 = arith.constant dense<0.000000e+00> : vector<8x16xf32>
    %202 = tpu.matmul %200, %201, %cst_91 {dimension_numbers = #tpu.dot_dimension_numbers<[1], [1], [0], [0], [0, 0, 1, 0], [], []>} : vector<8x8xf32>, vector<16x8xf32>, vector<8x16xf32> -> vector<8x16xf32>
    %cst_92 = arith.constant 0.353553385 : f32
    %203 = vector.broadcast %cst_92 : f32 to vector<8x16xf32>
    %204 = arith.mulf %202, %203 : vector<8x16xf32>
    %205 = vector.broadcast %17 : vector<1x16xf32> to vector<8x16xf32>
    %206 = arith.addf %204, %205 : vector<8x16xf32>
    %cst_93 = arith.constant dense<0xFF800000> : vector<8xf32>
    %207 = vector.multi_reduction <maximumf>, %206, %cst_93 [1] : vector<8x16xf32> to vector<8xf32>
    %208 = vector.shape_cast %207 : vector<8xf32> to vector<8x1xf32>
    %209 = vector.broadcast %208 : vector<8x1xf32> to vector<8x16xf32>
    %210 = arith.subf %206, %209 : vector<8x16xf32>
    %211 = math.exp %210 : vector<8x16xf32>
    %cst_94 = arith.constant dense<0.000000e+00> : vector<8xf32>
    %212 = vector.multi_reduction <add>, %211, %cst_94 [1] : vector<8x16xf32> to vector<8xf32>
    %213 = vector.shape_cast %212 : vector<8xf32> to vector<8x1xf32>
    %214 = tpu.reciprocal %213 {approx = true} : vector<8x1xf32> -> vector<8x1xf32>
    %215 = vector.broadcast %214 : vector<8x1xf32> to vector<8x16xf32>
    %216 = arith.mulf %211, %215 : vector<8x16xf32>
    %217 = vector.extract_strided_slice %176 {offsets = [0, 8], sizes = [16, 8], strides = [1, 1]} : vector<16x32xf32> to vector<16x8xf32>
    %cst_95 = arith.constant dense<0.000000e+00> : vector<8x8xf32>
    %218 = tpu.matmul %216, %217, %cst_95 {dimension_numbers = #tpu.dot_dimension_numbers<[1], [0], [0], [1], [0, 0, 1, 1], [], []>} : vector<8x16xf32>, vector<16x8xf32>, vector<8x8xf32> -> vector<8x8xf32>
    %219 = vector.extract_strided_slice %167 {offsets = [0, 16], sizes = [8, 8], strides = [1, 1]} : vector<8x32xf32> to vector<8x8xf32>
    %220 = vector.extract_strided_slice %175 {offsets = [0, 16], sizes = [16, 8], strides = [1, 1]} : vector<16x32xf32> to vector<16x8xf32>
    %cst_96 = arith.constant dense<0.000000e+00> : vector<8x16xf32>
    %221 = tpu.matmul %219, %220, %cst_96 {dimension_numbers = #tpu.dot_dimension_numbers<[1], [1], [0], [0], [0, 0, 1, 0], [], []>} : vector<8x8xf32>, vector<16x8xf32>, vector<8x16xf32> -> vector<8x16xf32>
    %cst_97 = arith.constant 0.353553385 : f32
    %222 = vector.broadcast %cst_97 : f32 to vector<8x16xf32>
    %223 = arith.mulf %221, %222 : vector<8x16xf32>
    %224 = vector.broadcast %17 : vector<1x16xf32> to vector<8x16xf32>
    %225 = arith.addf %223, %224 : vector<8x16xf32>
    %cst_98 = arith.constant dense<0xFF800000> : vector<8xf32>
    %226 = vector.multi_reduction <maximumf>, %225, %cst_98 [1] : vector<8x16xf32> to vector<8xf32>
    %227 = vector.shape_cast %226 : vector<8xf32> to vector<8x1xf32>
    %228 = vector.broadcast %227 : vector<8x1xf32> to vector<8x16xf32>
    %229 = arith.subf %225, %228 : vector<8x16xf32>
    %230 = math.exp %229 : vector<8x16xf32>
    %cst_99 = arith.constant dense<0.000000e+00> : vector<8xf32>
    %231 = vector.multi_reduction <add>, %230, %cst_99 [1] : vector<8x16xf32> to vector<8xf32>
    %232 = vector.shape_cast %231 : vector<8xf32> to vector<8x1xf32>
    %233 = tpu.reciprocal %232 {approx = true} : vector<8x1xf32> -> vector<8x1xf32>
    %234 = vector.broadcast %233 : vector<8x1xf32> to vector<8x16xf32>
    %235 = arith.mulf %230, %234 : vector<8x16xf32>
    %236 = vector.extract_strided_slice %176 {offsets = [0, 16], sizes = [16, 8], strides = [1, 1]} : vector<16x32xf32> to vector<16x8xf32>
    %cst_100 = arith.constant dense<0.000000e+00> : vector<8x8xf32>
    %237 = tpu.matmul %235, %236, %cst_100 {dimension_numbers = #tpu.dot_dimension_numbers<[1], [0], [0], [1], [0, 0, 1, 1], [], []>} : vector<8x16xf32>, vector<16x8xf32>, vector<8x8xf32> -> vector<8x8xf32>
    %238 = vector.extract_strided_slice %167 {offsets = [0, 24], sizes = [8, 8], strides = [1, 1]} : vector<8x32xf32> to vector<8x8xf32>
    %239 = vector.extract_strided_slice %175 {offsets = [0, 24], sizes = [16, 8], strides = [1, 1]} : vector<16x32xf32> to vector<16x8xf32>
    %cst_101 = arith.constant dense<0.000000e+00> : vector<8x16xf32>
    %240 = tpu.matmul %238, %239, %cst_101 {dimension_numbers = #tpu.dot_dimension_numbers<[1], [1], [0], [0], [0, 0, 1, 0], [], []>} : vector<8x8xf32>, vector<16x8xf32>, vector<8x16xf32> -> vector<8x16xf32>
    %cst_102 = arith.constant 0.353553385 : f32
    %241 = vector.broadcast %cst_102 : f32 to vector<8x16xf32>
    %242 = arith.mulf %240, %241 : vector<8x16xf32>
    %243 = vector.broadcast %17 : vector<1x16xf32> to vector<8x16xf32>
    %244 = arith.addf %242, %243 : vector<8x16xf32>
    %cst_103 = arith.constant dense<0xFF800000> : vector<8xf32>
    %245 = vector.multi_reduction <maximumf>, %244, %cst_103 [1] : vector<8x16xf32> to vector<8xf32>
    %246 = vector.shape_cast %245 : vector<8xf32> to vector<8x1xf32>
    %247 = vector.broadcast %246 : vector<8x1xf32> to vector<8x16xf32>
    %248 = arith.subf %244, %247 : vector<8x16xf32>
    %249 = math.exp %248 : vector<8x16xf32>
    %cst_104 = arith.constant dense<0.000000e+00> : vector<8xf32>
    %250 = vector.multi_reduction <add>, %249, %cst_104 [1] : vector<8x16xf32> to vector<8xf32>
    %251 = vector.shape_cast %250 : vector<8xf32> to vector<8x1xf32>
    %252 = tpu.reciprocal %251 {approx = true} : vector<8x1xf32> -> vector<8x1xf32>
    %253 = vector.broadcast %252 : vector<8x1xf32> to vector<8x16xf32>
    %254 = arith.mulf %249, %253 : vector<8x16xf32>
    %255 = vector.extract_strided_slice %176 {offsets = [0, 24], sizes = [16, 8], strides = [1, 1]} : vector<16x32xf32> to vector<16x8xf32>
    %cst_105 = arith.constant dense<0.000000e+00> : vector<8x8xf32>
    %256 = tpu.matmul %254, %255, %cst_105 {dimension_numbers = #tpu.dot_dimension_numbers<[1], [0], [0], [1], [0, 0, 1, 1], [], []>} : vector<8x16xf32>, vector<16x8xf32>, vector<8x8xf32> -> vector<8x8xf32>
    %257 = tpu.concatenate %199, %218, %237, %256 in 1 : vector<8x8xf32>, vector<8x8xf32>, vector<8x8xf32>, vector<8x8xf32> -> vector<8x32xf32>
    %cst_106 = arith.constant dense<0.000000e+00> : vector<8x32xf32>
    %258 = tpu.matmul %257, %178, %cst_106 {dimension_numbers = #tpu.dot_dimension_numbers<[1], [0], [0], [1], [0, 0, 1, 1], [], []>} : vector<8x32xf32>, vector<32x32xf32>, vector<8x32xf32> -> vector<8x32xf32>
    %259 = vector.broadcast %180 : vector<1x32xf32> to vector<8x32xf32>
    %260 = arith.addf %258, %259 : vector<8x32xf32>
    %261 = arith.addf %136, %260 : vector<8x32xf32>
    %262 = vector.extract_strided_slice %19 {offsets = [2, 0], sizes = [1, 32], strides = [1, 1]} : vector<3x32xf32> to vector<1x32xf32>
    %263 = vector.extract_strided_slice %21 {offsets = [2, 0], sizes = [1, 32], strides = [1, 1]} : vector<3x32xf32> to vector<1x32xf32>
    %cst_107 = arith.constant dense<0.000000e+00> : vector<8xf32>
    %264 = vector.multi_reduction <add>, %261, %cst_107 [1] : vector<8x32xf32> to vector<8xf32>
    %265 = vector.shape_cast %264 : vector<8xf32> to vector<8x1xf32>
    %cst_108 = arith.constant 3.200000e+01 : f32
    %266 = vector.broadcast %cst_108 : f32 to vector<8x1xf32>
    %267 = arith.divf %265, %266 : vector<8x1xf32>
    %268 = vector.broadcast %267 : vector<8x1xf32> to vector<8x32xf32>
    %269 = arith.subf %261, %268 : vector<8x32xf32>
    %270 = arith.mulf %269, %269 : vector<8x32xf32>
    %cst_109 = arith.constant dense<0.000000e+00> : vector<8xf32>
    %271 = vector.multi_reduction <add>, %270, %cst_109 [1] : vector<8x32xf32> to vector<8xf32>
    %272 = vector.shape_cast %271 : vector<8xf32> to vector<8x1xf32>
    %cst_110 = arith.constant 3.100000e+01 : f32
    %273 = vector.broadcast %cst_110 : f32 to vector<8x1xf32>
    %274 = arith.divf %272, %273 : vector<8x1xf32>
    %275 = math.sqrt %274 : vector<8x1xf32>
    %276 = vector.broadcast %267 : vector<8x1xf32> to vector<8x32xf32>
    %277 = arith.subf %261, %276 : vector<8x32xf32>
    %278 = vector.broadcast %262 : vector<1x32xf32> to vector<8x32xf32>
    %279 = arith.mulf %278, %277 : vector<8x32xf32>
    %cst_111 = arith.constant 9.99999997E-7 : f32
    %280 = vector.broadcast %cst_111 : f32 to vector<8x1xf32>
    %281 = arith.addf %275, %280 : vector<8x1xf32>
    %282 = vector.broadcast %281 : vector<8x1xf32> to vector<8x32xf32>
    %283 = arith.divf %279, %282 : vector<8x32xf32>
    %284 = vector.broadcast %263 : vector<1x32xf32> to vector<8x32xf32>
    %285 = arith.addf %283, %284 : vector<8x32xf32>
    %c0_112 = arith.constant 0 : index
    %c0_113 = arith.constant 0 : index
    %c0_114 = arith.constant 0 : index
    %286 = vector.load %arg17[%c0_112, %c0_113, %c0_114] : memref<2x32x64xf32, #tpu.memory_space<vmem>>, vector<1x32x64xf32>
    %287 = vector.shape_cast %286 : vector<1x32x64xf32> to vector<32x64xf32>
    %cst_115 = arith.constant dense<0.000000e+00> : vector<8x64xf32>
    %288 = tpu.matmul %285, %287, %cst_115 {dimension_numbers = #tpu.dot_dimension_numbers<[1], [0], [0], [1], [0, 0, 1, 1], [], []>} : vector<8x32xf32>, vector<32x64xf32>, vector<8x64xf32> -> vector<8x64xf32>
    %c0_116 = arith.constant 0 : index
    %c0_117 = arith.constant 0 : index
    %c0_118 = arith.constant 0 : index
    %289 = vector.load %arg18[%c0_116, %c0_117, %c0_118] : memref<2x1x64xf32, #tpu.memory_space<vmem>>, vector<1x1x64xf32>
    %290 = vector.shape_cast %289 : vector<1x1x64xf32> to vector<1x64xf32>
    %291 = vector.broadcast %290 : vector<1x64xf32> to vector<8x64xf32>
    %292 = arith.addf %288, %291 : vector<8x64xf32>
    %cst_119 = arith.constant 0.000000e+00 : f32
    %293 = vector.broadcast %cst_119 : f32 to vector<8x64xf32>
    %294 = arith.maximumf %292, %293 : vector<8x64xf32>
    %c0_120 = arith.constant 0 : index
    %c0_121 = arith.constant 0 : index
    %c0_122 = arith.constant 0 : index
    %295 = vector.load %arg19[%c0_120, %c0_121, %c0_122] : memref<2x64x32xf32, #tpu.memory_space<vmem>>, vector<1x64x32xf32>
    %296 = vector.shape_cast %295 : vector<1x64x32xf32> to vector<64x32xf32>
    %cst_123 = arith.constant dense<0.000000e+00> : vector<8x32xf32>
    %297 = tpu.matmul %294, %296, %cst_123 {dimension_numbers = #tpu.dot_dimension_numbers<[1], [0], [0], [1], [0, 0, 1, 1], [], []>} : vector<8x64xf32>, vector<64x32xf32>, vector<8x32xf32> -> vector<8x32xf32>
    %298 = arith.addf %261, %297 : vector<8x32xf32>
    %c0_124 = arith.constant 0 : index
    %c0_125 = arith.constant 0 : index
    %c0_126 = arith.constant 0 : index
    %299 = vector.load %arg20[%c0_124, %c0_125, %c0_126] : memref<2x1x32xf32, #tpu.memory_space<vmem>>, vector<1x1x32xf32>
    %300 = vector.shape_cast %299 : vector<1x1x32xf32> to vector<1x32xf32>
    %301 = vector.broadcast %300 : vector<1x32xf32> to vector<8x32xf32>
    %302 = arith.addf %298, %301 : vector<8x32xf32>
    %c1 = arith.constant 1 : index
    %c0_127 = arith.constant 0 : index
    %c0_128 = arith.constant 0 : index
    %303 = vector.load %arg15[%c1, %c0_127, %c0_128] : memref<2x3x32xf32, #tpu.memory_space<vmem>>, vector<1x3x32xf32>
    %304 = vector.shape_cast %303 : vector<1x3x32xf32> to vector<3x32xf32>
    %c1_129 = arith.constant 1 : index
    %c0_130 = arith.constant 0 : index
    %c0_131 = arith.constant 0 : index
    %305 = vector.load %arg16[%c1_129, %c0_130, %c0_131] : memref<2x3x32xf32, #tpu.memory_space<vmem>>, vector<1x3x32xf32>
    %306 = vector.shape_cast %305 : vector<1x3x32xf32> to vector<3x32xf32>
    %307 = vector.extract_strided_slice %304 {offsets = [0, 0], sizes = [1, 32], strides = [1, 1]} : vector<3x32xf32> to vector<1x32xf32>
    %308 = vector.extract_strided_slice %306 {offsets = [0, 0], sizes = [1, 32], strides = [1, 1]} : vector<3x32xf32> to vector<1x32xf32>
    %cst_132 = arith.constant dense<0.000000e+00> : vector<8xf32>
    %309 = vector.multi_reduction <add>, %302, %cst_132 [1] : vector<8x32xf32> to vector<8xf32>
    %310 = vector.shape_cast %309 : vector<8xf32> to vector<8x1xf32>
    %cst_133 = arith.constant 3.200000e+01 : f32
    %311 = vector.broadcast %cst_133 : f32 to vector<8x1xf32>
    %312 = arith.divf %310, %311 : vector<8x1xf32>
    %313 = vector.broadcast %312 : vector<8x1xf32> to vector<8x32xf32>
    %314 = arith.subf %302, %313 : vector<8x32xf32>
    %315 = arith.mulf %314, %314 : vector<8x32xf32>
    %cst_134 = arith.constant dense<0.000000e+00> : vector<8xf32>
    %316 = vector.multi_reduction <add>, %315, %cst_134 [1] : vector<8x32xf32> to vector<8xf32>
    %317 = vector.shape_cast %316 : vector<8xf32> to vector<8x1xf32>
    %cst_135 = arith.constant 3.100000e+01 : f32
    %318 = vector.broadcast %cst_135 : f32 to vector<8x1xf32>
    %319 = arith.divf %317, %318 : vector<8x1xf32>
    %320 = math.sqrt %319 : vector<8x1xf32>
    %321 = vector.broadcast %312 : vector<8x1xf32> to vector<8x32xf32>
    %322 = arith.subf %302, %321 : vector<8x32xf32>
    %323 = vector.broadcast %307 : vector<1x32xf32> to vector<8x32xf32>
    %324 = arith.mulf %323, %322 : vector<8x32xf32>
    %cst_136 = arith.constant 9.99999997E-7 : f32
    %325 = vector.broadcast %cst_136 : f32 to vector<8x1xf32>
    %326 = arith.addf %320, %325 : vector<8x1xf32>
    %327 = vector.broadcast %326 : vector<8x1xf32> to vector<8x32xf32>
    %328 = arith.divf %324, %327 : vector<8x32xf32>
    %329 = vector.broadcast %308 : vector<1x32xf32> to vector<8x32xf32>
    %330 = arith.addf %328, %329 : vector<8x32xf32>
    %c1_137 = arith.constant 1 : index
    %c0_138 = arith.constant 0 : index
    %c0_139 = arith.constant 0 : index
    %331 = vector.load %arg5[%c1_137, %c0_138, %c0_139] : memref<2x32x96xf32, #tpu.memory_space<vmem>>, vector<1x32x96xf32>
    %332 = vector.shape_cast %331 : vector<1x32x96xf32> to vector<32x96xf32>
    %cst_140 = arith.constant dense<0.000000e+00> : vector<8x96xf32>
    %333 = tpu.matmul %330, %332, %cst_140 {dimension_numbers = #tpu.dot_dimension_numbers<[1], [0], [0], [1], [0, 0, 1, 1], [], []>} : vector<8x32xf32>, vector<32x96xf32>, vector<8x96xf32> -> vector<8x96xf32>
    %c1_141 = arith.constant 1 : index
    %c0_142 = arith.constant 0 : index
    %c0_143 = arith.constant 0 : index
    %334 = vector.load %arg6[%c1_141, %c0_142, %c0_143] : memref<2x1x96xf32, #tpu.memory_space<vmem>>, vector<1x1x96xf32>
    %335 = vector.shape_cast %334 : vector<1x1x96xf32> to vector<1x96xf32>
    %336 = vector.broadcast %335 : vector<1x96xf32> to vector<8x96xf32>
    %337 = arith.addf %333, %336 : vector<8x96xf32>
    %338 = vector.extract_strided_slice %337 {offsets = [0, 0], sizes = [8, 32], strides = [1, 1]} : vector<8x96xf32> to vector<8x32xf32>
    %339 = vector.extract_strided_slice %337 {offsets = [0, 32], sizes = [8, 32], strides = [1, 1]} : vector<8x96xf32> to vector<8x32xf32>
    %340 = vector.extract_strided_slice %337 {offsets = [0, 64], sizes = [8, 32], strides = [1, 1]} : vector<8x96xf32> to vector<8x32xf32>
    %c1_144 = arith.constant 1 : index
    %c0_145 = arith.constant 0 : index
    %c0_146 = arith.constant 0 : index
    %341 = vector.load %arg7[%c1_144, %c0_145, %c0_146] : memref<2x32x32xf32, #tpu.memory_space<vmem>>, vector<1x32x32xf32>
    %342 = vector.shape_cast %341 : vector<1x32x32xf32> to vector<32x32xf32>
    %c1_147 = arith.constant 1 : index
    %c0_148 = arith.constant 0 : index
    %c0_149 = arith.constant 0 : index
    %343 = vector.load %arg8[%c1_147, %c0_148, %c0_149] : memref<2x1x32xf32, #tpu.memory_space<vmem>>, vector<1x1x32xf32>
    %344 = vector.shape_cast %343 : vector<1x1x32xf32> to vector<1x32xf32>
    %345 = vector.extract_strided_slice %338 {offsets = [0, 0], sizes = [8, 8], strides = [1, 1]} : vector<8x32xf32> to vector<8x8xf32>
    %346 = vector.extract_strided_slice %339 {offsets = [0, 0], sizes = [8, 8], strides = [1, 1]} : vector<8x32xf32> to vector<8x8xf32>
    %cst_150 = arith.constant dense<0.000000e+00> : vector<8x8xf32>
    %347 = tpu.matmul %345, %346, %cst_150 {dimension_numbers = #tpu.dot_dimension_numbers<[1], [1], [0], [0], [0, 0, 1, 0], [], []>} : vector<8x8xf32>, vector<8x8xf32>, vector<8x8xf32> -> vector<8x8xf32>
    %cst_151 = arith.constant 0.353553385 : f32
    %348 = vector.broadcast %cst_151 : f32 to vector<8x8xf32>
    %349 = arith.mulf %347, %348 : vector<8x8xf32>
    %350 = arith.addf %349, %10 : vector<8x8xf32>
    %cst_152 = arith.constant dense<0xFF800000> : vector<8xf32>
    %351 = vector.multi_reduction <maximumf>, %350, %cst_152 [1] : vector<8x8xf32> to vector<8xf32>
    %352 = vector.shape_cast %351 : vector<8xf32> to vector<8x1xf32>
    %353 = vector.broadcast %352 : vector<8x1xf32> to vector<8x8xf32>
    %354 = arith.subf %350, %353 : vector<8x8xf32>
    %355 = math.exp %354 : vector<8x8xf32>
    %cst_153 = arith.constant dense<0.000000e+00> : vector<8xf32>
    %356 = vector.multi_reduction <add>, %355, %cst_153 [1] : vector<8x8xf32> to vector<8xf32>
    %357 = vector.shape_cast %356 : vector<8xf32> to vector<8x1xf32>
    %358 = tpu.reciprocal %357 {approx = true} : vector<8x1xf32> -> vector<8x1xf32>
    %359 = vector.broadcast %358 : vector<8x1xf32> to vector<8x8xf32>
    %360 = arith.mulf %355, %359 : vector<8x8xf32>
    %361 = vector.extract_strided_slice %340 {offsets = [0, 0], sizes = [8, 8], strides = [1, 1]} : vector<8x32xf32> to vector<8x8xf32>
    %cst_154 = arith.constant dense<0.000000e+00> : vector<8x8xf32>
    %362 = tpu.matmul %360, %361, %cst_154 {dimension_numbers = #tpu.dot_dimension_numbers<[1], [0], [0], [1], [0, 0, 1, 1], [], []>} : vector<8x8xf32>, vector<8x8xf32>, vector<8x8xf32> -> vector<8x8xf32>
    %363 = vector.extract_strided_slice %338 {offsets = [0, 8], sizes = [8, 8], strides = [1, 1]} : vector<8x32xf32> to vector<8x8xf32>
    %364 = vector.extract_strided_slice %339 {offsets = [0, 8], sizes = [8, 8], strides = [1, 1]} : vector<8x32xf32> to vector<8x8xf32>
    %cst_155 = arith.constant dense<0.000000e+00> : vector<8x8xf32>
    %365 = tpu.matmul %363, %364, %cst_155 {dimension_numbers = #tpu.dot_dimension_numbers<[1], [1], [0], [0], [0, 0, 1, 0], [], []>} : vector<8x8xf32>, vector<8x8xf32>, vector<8x8xf32> -> vector<8x8xf32>
    %cst_156 = arith.constant 0.353553385 : f32
    %366 = vector.broadcast %cst_156 : f32 to vector<8x8xf32>
    %367 = arith.mulf %365, %366 : vector<8x8xf32>
    %368 = arith.addf %367, %10 : vector<8x8xf32>
    %cst_157 = arith.constant dense<0xFF800000> : vector<8xf32>
    %369 = vector.multi_reduction <maximumf>, %368, %cst_157 [1] : vector<8x8xf32> to vector<8xf32>
    %370 = vector.shape_cast %369 : vector<8xf32> to vector<8x1xf32>
    %371 = vector.broadcast %370 : vector<8x1xf32> to vector<8x8xf32>
    %372 = arith.subf %368, %371 : vector<8x8xf32>
    %373 = math.exp %372 : vector<8x8xf32>
    %cst_158 = arith.constant dense<0.000000e+00> : vector<8xf32>
    %374 = vector.multi_reduction <add>, %373, %cst_158 [1] : vector<8x8xf32> to vector<8xf32>
    %375 = vector.shape_cast %374 : vector<8xf32> to vector<8x1xf32>
    %376 = tpu.reciprocal %375 {approx = true} : vector<8x1xf32> -> vector<8x1xf32>
    %377 = vector.broadcast %376 : vector<8x1xf32> to vector<8x8xf32>
    %378 = arith.mulf %373, %377 : vector<8x8xf32>
    %379 = vector.extract_strided_slice %340 {offsets = [0, 8], sizes = [8, 8], strides = [1, 1]} : vector<8x32xf32> to vector<8x8xf32>
    %cst_159 = arith.constant dense<0.000000e+00> : vector<8x8xf32>
    %380 = tpu.matmul %378, %379, %cst_159 {dimension_numbers = #tpu.dot_dimension_numbers<[1], [0], [0], [1], [0, 0, 1, 1], [], []>} : vector<8x8xf32>, vector<8x8xf32>, vector<8x8xf32> -> vector<8x8xf32>
    %381 = vector.extract_strided_slice %338 {offsets = [0, 16], sizes = [8, 8], strides = [1, 1]} : vector<8x32xf32> to vector<8x8xf32>
    %382 = vector.extract_strided_slice %339 {offsets = [0, 16], sizes = [8, 8], strides = [1, 1]} : vector<8x32xf32> to vector<8x8xf32>
    %cst_160 = arith.constant dense<0.000000e+00> : vector<8x8xf32>
    %383 = tpu.matmul %381, %382, %cst_160 {dimension_numbers = #tpu.dot_dimension_numbers<[1], [1], [0], [0], [0, 0, 1, 0], [], []>} : vector<8x8xf32>, vector<8x8xf32>, vector<8x8xf32> -> vector<8x8xf32>
    %cst_161 = arith.constant 0.353553385 : f32
    %384 = vector.broadcast %cst_161 : f32 to vector<8x8xf32>
    %385 = arith.mulf %383, %384 : vector<8x8xf32>
    %386 = arith.addf %385, %10 : vector<8x8xf32>
    %cst_162 = arith.constant dense<0xFF800000> : vector<8xf32>
    %387 = vector.multi_reduction <maximumf>, %386, %cst_162 [1] : vector<8x8xf32> to vector<8xf32>
    %388 = vector.shape_cast %387 : vector<8xf32> to vector<8x1xf32>
    %389 = vector.broadcast %388 : vector<8x1xf32> to vector<8x8xf32>
    %390 = arith.subf %386, %389 : vector<8x8xf32>
    %391 = math.exp %390 : vector<8x8xf32>
    %cst_163 = arith.constant dense<0.000000e+00> : vector<8xf32>
    %392 = vector.multi_reduction <add>, %391, %cst_163 [1] : vector<8x8xf32> to vector<8xf32>
    %393 = vector.shape_cast %392 : vector<8xf32> to vector<8x1xf32>
    %394 = tpu.reciprocal %393 {approx = true} : vector<8x1xf32> -> vector<8x1xf32>
    %395 = vector.broadcast %394 : vector<8x1xf32> to vector<8x8xf32>
    %396 = arith.mulf %391, %395 : vector<8x8xf32>
    %397 = vector.extract_strided_slice %340 {offsets = [0, 16], sizes = [8, 8], strides = [1, 1]} : vector<8x32xf32> to vector<8x8xf32>
    %cst_164 = arith.constant dense<0.000000e+00> : vector<8x8xf32>
    %398 = tpu.matmul %396, %397, %cst_164 {dimension_numbers = #tpu.dot_dimension_numbers<[1], [0], [0], [1], [0, 0, 1, 1], [], []>} : vector<8x8xf32>, vector<8x8xf32>, vector<8x8xf32> -> vector<8x8xf32>
    %399 = vector.extract_strided_slice %338 {offsets = [0, 24], sizes = [8, 8], strides = [1, 1]} : vector<8x32xf32> to vector<8x8xf32>
    %400 = vector.extract_strided_slice %339 {offsets = [0, 24], sizes = [8, 8], strides = [1, 1]} : vector<8x32xf32> to vector<8x8xf32>
    %cst_165 = arith.constant dense<0.000000e+00> : vector<8x8xf32>
    %401 = tpu.matmul %399, %400, %cst_165 {dimension_numbers = #tpu.dot_dimension_numbers<[1], [1], [0], [0], [0, 0, 1, 0], [], []>} : vector<8x8xf32>, vector<8x8xf32>, vector<8x8xf32> -> vector<8x8xf32>
    %cst_166 = arith.constant 0.353553385 : f32
    %402 = vector.broadcast %cst_166 : f32 to vector<8x8xf32>
    %403 = arith.mulf %401, %402 : vector<8x8xf32>
    %404 = arith.addf %403, %10 : vector<8x8xf32>
    %cst_167 = arith.constant dense<0xFF800000> : vector<8xf32>
    %405 = vector.multi_reduction <maximumf>, %404, %cst_167 [1] : vector<8x8xf32> to vector<8xf32>
    %406 = vector.shape_cast %405 : vector<8xf32> to vector<8x1xf32>
    %407 = vector.broadcast %406 : vector<8x1xf32> to vector<8x8xf32>
    %408 = arith.subf %404, %407 : vector<8x8xf32>
    %409 = math.exp %408 : vector<8x8xf32>
    %cst_168 = arith.constant dense<0.000000e+00> : vector<8xf32>
    %410 = vector.multi_reduction <add>, %409, %cst_168 [1] : vector<8x8xf32> to vector<8xf32>
    %411 = vector.shape_cast %410 : vector<8xf32> to vector<8x1xf32>
    %412 = tpu.reciprocal %411 {approx = true} : vector<8x1xf32> -> vector<8x1xf32>
    %413 = vector.broadcast %412 : vector<8x1xf32> to vector<8x8xf32>
    %414 = arith.mulf %409, %413 : vector<8x8xf32>
    %415 = vector.extract_strided_slice %340 {offsets = [0, 24], sizes = [8, 8], strides = [1, 1]} : vector<8x32xf32> to vector<8x8xf32>
    %cst_169 = arith.constant dense<0.000000e+00> : vector<8x8xf32>
    %416 = tpu.matmul %414, %415, %cst_169 {dimension_numbers = #tpu.dot_dimension_numbers<[1], [0], [0], [1], [0, 0, 1, 1], [], []>} : vector<8x8xf32>, vector<8x8xf32>, vector<8x8xf32> -> vector<8x8xf32>
    %417 = tpu.concatenate %362, %380, %398, %416 in 1 : vector<8x8xf32>, vector<8x8xf32>, vector<8x8xf32>, vector<8x8xf32> -> vector<8x32xf32>
    %cst_170 = arith.constant dense<0.000000e+00> : vector<8x32xf32>
    %418 = tpu.matmul %417, %342, %cst_170 {dimension_numbers = #tpu.dot_dimension_numbers<[1], [0], [0], [1], [0, 0, 1, 1], [], []>} : vector<8x32xf32>, vector<32x32xf32>, vector<8x32xf32> -> vector<8x32xf32>
    %419 = vector.broadcast %344 : vector<1x32xf32> to vector<8x32xf32>
    %420 = arith.addf %418, %419 : vector<8x32xf32>
    %421 = arith.addf %302, %420 : vector<8x32xf32>
    %422 = vector.extract_strided_slice %304 {offsets = [1, 0], sizes = [1, 32], strides = [1, 1]} : vector<3x32xf32> to vector<1x32xf32>
    %423 = vector.extract_strided_slice %306 {offsets = [1, 0], sizes = [1, 32], strides = [1, 1]} : vector<3x32xf32> to vector<1x32xf32>
    %cst_171 = arith.constant dense<0.000000e+00> : vector<8xf32>
    %424 = vector.multi_reduction <add>, %421, %cst_171 [1] : vector<8x32xf32> to vector<8xf32>
    %425 = vector.shape_cast %424 : vector<8xf32> to vector<8x1xf32>
    %cst_172 = arith.constant 3.200000e+01 : f32
    %426 = vector.broadcast %cst_172 : f32 to vector<8x1xf32>
    %427 = arith.divf %425, %426 : vector<8x1xf32>
    %428 = vector.broadcast %427 : vector<8x1xf32> to vector<8x32xf32>
    %429 = arith.subf %421, %428 : vector<8x32xf32>
    %430 = arith.mulf %429, %429 : vector<8x32xf32>
    %cst_173 = arith.constant dense<0.000000e+00> : vector<8xf32>
    %431 = vector.multi_reduction <add>, %430, %cst_173 [1] : vector<8x32xf32> to vector<8xf32>
    %432 = vector.shape_cast %431 : vector<8xf32> to vector<8x1xf32>
    %cst_174 = arith.constant 3.100000e+01 : f32
    %433 = vector.broadcast %cst_174 : f32 to vector<8x1xf32>
    %434 = arith.divf %432, %433 : vector<8x1xf32>
    %435 = math.sqrt %434 : vector<8x1xf32>
    %436 = vector.broadcast %427 : vector<8x1xf32> to vector<8x32xf32>
    %437 = arith.subf %421, %436 : vector<8x32xf32>
    %438 = vector.broadcast %422 : vector<1x32xf32> to vector<8x32xf32>
    %439 = arith.mulf %438, %437 : vector<8x32xf32>
    %cst_175 = arith.constant 9.99999997E-7 : f32
    %440 = vector.broadcast %cst_175 : f32 to vector<8x1xf32>
    %441 = arith.addf %435, %440 : vector<8x1xf32>
    %442 = vector.broadcast %441 : vector<8x1xf32> to vector<8x32xf32>
    %443 = arith.divf %439, %442 : vector<8x32xf32>
    %444 = vector.broadcast %423 : vector<1x32xf32> to vector<8x32xf32>
    %445 = arith.addf %443, %444 : vector<8x32xf32>
    %c1_176 = arith.constant 1 : index
    %c0_177 = arith.constant 0 : index
    %c0_178 = arith.constant 0 : index
    %446 = vector.load %arg9[%c1_176, %c0_177, %c0_178] : memref<2x32x32xf32, #tpu.memory_space<vmem>>, vector<1x32x32xf32>
    %447 = vector.shape_cast %446 : vector<1x32x32xf32> to vector<32x32xf32>
    %cst_179 = arith.constant dense<0.000000e+00> : vector<8x32xf32>
    %448 = tpu.matmul %445, %447, %cst_179 {dimension_numbers = #tpu.dot_dimension_numbers<[1], [0], [0], [1], [0, 0, 1, 1], [], []>} : vector<8x32xf32>, vector<32x32xf32>, vector<8x32xf32> -> vector<8x32xf32>
    %c1_180 = arith.constant 1 : index
    %c0_181 = arith.constant 0 : index
    %c0_182 = arith.constant 0 : index
    %449 = vector.load %arg10[%c1_180, %c0_181, %c0_182] : memref<2x1x32xf32, #tpu.memory_space<vmem>>, vector<1x1x32xf32>
    %450 = vector.shape_cast %449 : vector<1x1x32xf32> to vector<1x32xf32>
    %451 = vector.broadcast %450 : vector<1x32xf32> to vector<8x32xf32>
    %452 = arith.addf %448, %451 : vector<8x32xf32>
    %c1_183 = arith.constant 1 : index
    %c0_184 = arith.constant 0 : index
    %c0_185 = arith.constant 0 : index
    %453 = vector.load %arg11[%c1_183, %c0_184, %c0_185] : memref<2x32x64xf32, #tpu.memory_space<vmem>>, vector<1x32x64xf32>
    %454 = vector.shape_cast %453 : vector<1x32x64xf32> to vector<32x64xf32>
    %cst_186 = arith.constant dense<0.000000e+00> : vector<16x64xf32>
    %455 = tpu.matmul %3, %454, %cst_186 {dimension_numbers = #tpu.dot_dimension_numbers<[1], [0], [0], [1], [0, 0, 1, 1], [], []>} : vector<16x32xf32>, vector<32x64xf32>, vector<16x64xf32> -> vector<16x64xf32>
    %c1_187 = arith.constant 1 : index
    %c0_188 = arith.constant 0 : index
    %c0_189 = arith.constant 0 : index
    %456 = vector.load %arg12[%c1_187, %c0_188, %c0_189] : memref<2x1x64xf32, #tpu.memory_space<vmem>>, vector<1x1x64xf32>
    %457 = vector.shape_cast %456 : vector<1x1x64xf32> to vector<1x64xf32>
    %458 = vector.broadcast %457 : vector<1x64xf32> to vector<16x64xf32>
    %459 = arith.addf %455, %458 : vector<16x64xf32>
    %460 = vector.extract_strided_slice %459 {offsets = [0, 0], sizes = [16, 32], strides = [1, 1]} : vector<16x64xf32> to vector<16x32xf32>
    %461 = vector.extract_strided_slice %459 {offsets = [0, 32], sizes = [16, 32], strides = [1, 1]} : vector<16x64xf32> to vector<16x32xf32>
    %c1_190 = arith.constant 1 : index
    %c0_191 = arith.constant 0 : index
    %c0_192 = arith.constant 0 : index
    %462 = vector.load %arg13[%c1_190, %c0_191, %c0_192] : memref<2x32x32xf32, #tpu.memory_space<vmem>>, vector<1x32x32xf32>
    %463 = vector.shape_cast %462 : vector<1x32x32xf32> to vector<32x32xf32>
    %c1_193 = arith.constant 1 : index
    %c0_194 = arith.constant 0 : index
    %c0_195 = arith.constant 0 : index
    %464 = vector.load %arg14[%c1_193, %c0_194, %c0_195] : memref<2x1x32xf32, #tpu.memory_space<vmem>>, vector<1x1x32xf32>
    %465 = vector.shape_cast %464 : vector<1x1x32xf32> to vector<1x32xf32>
    %466 = vector.extract_strided_slice %452 {offsets = [0, 0], sizes = [8, 8], strides = [1, 1]} : vector<8x32xf32> to vector<8x8xf32>
    %467 = vector.extract_strided_slice %460 {offsets = [0, 0], sizes = [16, 8], strides = [1, 1]} : vector<16x32xf32> to vector<16x8xf32>
    %cst_196 = arith.constant dense<0.000000e+00> : vector<8x16xf32>
    %468 = tpu.matmul %466, %467, %cst_196 {dimension_numbers = #tpu.dot_dimension_numbers<[1], [1], [0], [0], [0, 0, 1, 0], [], []>} : vector<8x8xf32>, vector<16x8xf32>, vector<8x16xf32> -> vector<8x16xf32>
    %cst_197 = arith.constant 0.353553385 : f32
    %469 = vector.broadcast %cst_197 : f32 to vector<8x16xf32>
    %470 = arith.mulf %468, %469 : vector<8x16xf32>
    %471 = vector.broadcast %17 : vector<1x16xf32> to vector<8x16xf32>
    %472 = arith.addf %470, %471 : vector<8x16xf32>
    %cst_198 = arith.constant dense<0xFF800000> : vector<8xf32>
    %473 = vector.multi_reduction <maximumf>, %472, %cst_198 [1] : vector<8x16xf32> to vector<8xf32>
    %474 = vector.shape_cast %473 : vector<8xf32> to vector<8x1xf32>
    %475 = vector.broadcast %474 : vector<8x1xf32> to vector<8x16xf32>
    %476 = arith.subf %472, %475 : vector<8x16xf32>
    %477 = math.exp %476 : vector<8x16xf32>
    %cst_199 = arith.constant dense<0.000000e+00> : vector<8xf32>
    %478 = vector.multi_reduction <add>, %477, %cst_199 [1] : vector<8x16xf32> to vector<8xf32>
    %479 = vector.shape_cast %478 : vector<8xf32> to vector<8x1xf32>
    %480 = tpu.reciprocal %479 {approx = true} : vector<8x1xf32> -> vector<8x1xf32>
    %481 = vector.broadcast %480 : vector<8x1xf32> to vector<8x16xf32>
    %482 = arith.mulf %477, %481 : vector<8x16xf32>
    %483 = vector.extract_strided_slice %461 {offsets = [0, 0], sizes = [16, 8], strides = [1, 1]} : vector<16x32xf32> to vector<16x8xf32>
    %cst_200 = arith.constant dense<0.000000e+00> : vector<8x8xf32>
    %484 = tpu.matmul %482, %483, %cst_200 {dimension_numbers = #tpu.dot_dimension_numbers<[1], [0], [0], [1], [0, 0, 1, 1], [], []>} : vector<8x16xf32>, vector<16x8xf32>, vector<8x8xf32> -> vector<8x8xf32>
    %485 = vector.extract_strided_slice %452 {offsets = [0, 8], sizes = [8, 8], strides = [1, 1]} : vector<8x32xf32> to vector<8x8xf32>
    %486 = vector.extract_strided_slice %460 {offsets = [0, 8], sizes = [16, 8], strides = [1, 1]} : vector<16x32xf32> to vector<16x8xf32>
    %cst_201 = arith.constant dense<0.000000e+00> : vector<8x16xf32>
    %487 = tpu.matmul %485, %486, %cst_201 {dimension_numbers = #tpu.dot_dimension_numbers<[1], [1], [0], [0], [0, 0, 1, 0], [], []>} : vector<8x8xf32>, vector<16x8xf32>, vector<8x16xf32> -> vector<8x16xf32>
    %cst_202 = arith.constant 0.353553385 : f32
    %488 = vector.broadcast %cst_202 : f32 to vector<8x16xf32>
    %489 = arith.mulf %487, %488 : vector<8x16xf32>
    %490 = vector.broadcast %17 : vector<1x16xf32> to vector<8x16xf32>
    %491 = arith.addf %489, %490 : vector<8x16xf32>
    %cst_203 = arith.constant dense<0xFF800000> : vector<8xf32>
    %492 = vector.multi_reduction <maximumf>, %491, %cst_203 [1] : vector<8x16xf32> to vector<8xf32>
    %493 = vector.shape_cast %492 : vector<8xf32> to vector<8x1xf32>
    %494 = vector.broadcast %493 : vector<8x1xf32> to vector<8x16xf32>
    %495 = arith.subf %491, %494 : vector<8x16xf32>
    %496 = math.exp %495 : vector<8x16xf32>
    %cst_204 = arith.constant dense<0.000000e+00> : vector<8xf32>
    %497 = vector.multi_reduction <add>, %496, %cst_204 [1] : vector<8x16xf32> to vector<8xf32>
    %498 = vector.shape_cast %497 : vector<8xf32> to vector<8x1xf32>
    %499 = tpu.reciprocal %498 {approx = true} : vector<8x1xf32> -> vector<8x1xf32>
    %500 = vector.broadcast %499 : vector<8x1xf32> to vector<8x16xf32>
    %501 = arith.mulf %496, %500 : vector<8x16xf32>
    %502 = vector.extract_strided_slice %461 {offsets = [0, 8], sizes = [16, 8], strides = [1, 1]} : vector<16x32xf32> to vector<16x8xf32>
    %cst_205 = arith.constant dense<0.000000e+00> : vector<8x8xf32>
    %503 = tpu.matmul %501, %502, %cst_205 {dimension_numbers = #tpu.dot_dimension_numbers<[1], [0], [0], [1], [0, 0, 1, 1], [], []>} : vector<8x16xf32>, vector<16x8xf32>, vector<8x8xf32> -> vector<8x8xf32>
    %504 = vector.extract_strided_slice %452 {offsets = [0, 16], sizes = [8, 8], strides = [1, 1]} : vector<8x32xf32> to vector<8x8xf32>
    %505 = vector.extract_strided_slice %460 {offsets = [0, 16], sizes = [16, 8], strides = [1, 1]} : vector<16x32xf32> to vector<16x8xf32>
    %cst_206 = arith.constant dense<0.000000e+00> : vector<8x16xf32>
    %506 = tpu.matmul %504, %505, %cst_206 {dimension_numbers = #tpu.dot_dimension_numbers<[1], [1], [0], [0], [0, 0, 1, 0], [], []>} : vector<8x8xf32>, vector<16x8xf32>, vector<8x16xf32> -> vector<8x16xf32>
    %cst_207 = arith.constant 0.353553385 : f32
    %507 = vector.broadcast %cst_207 : f32 to vector<8x16xf32>
    %508 = arith.mulf %506, %507 : vector<8x16xf32>
    %509 = vector.broadcast %17 : vector<1x16xf32> to vector<8x16xf32>
    %510 = arith.addf %508, %509 : vector<8x16xf32>
    %cst_208 = arith.constant dense<0xFF800000> : vector<8xf32>
    %511 = vector.multi_reduction <maximumf>, %510, %cst_208 [1] : vector<8x16xf32> to vector<8xf32>
    %512 = vector.shape_cast %511 : vector<8xf32> to vector<8x1xf32>
    %513 = vector.broadcast %512 : vector<8x1xf32> to vector<8x16xf32>
    %514 = arith.subf %510, %513 : vector<8x16xf32>
    %515 = math.exp %514 : vector<8x16xf32>
    %cst_209 = arith.constant dense<0.000000e+00> : vector<8xf32>
    %516 = vector.multi_reduction <add>, %515, %cst_209 [1] : vector<8x16xf32> to vector<8xf32>
    %517 = vector.shape_cast %516 : vector<8xf32> to vector<8x1xf32>
    %518 = tpu.reciprocal %517 {approx = true} : vector<8x1xf32> -> vector<8x1xf32>
    %519 = vector.broadcast %518 : vector<8x1xf32> to vector<8x16xf32>
    %520 = arith.mulf %515, %519 : vector<8x16xf32>
    %521 = vector.extract_strided_slice %461 {offsets = [0, 16], sizes = [16, 8], strides = [1, 1]} : vector<16x32xf32> to vector<16x8xf32>
    %cst_210 = arith.constant dense<0.000000e+00> : vector<8x8xf32>
    %522 = tpu.matmul %520, %521, %cst_210 {dimension_numbers = #tpu.dot_dimension_numbers<[1], [0], [0], [1], [0, 0, 1, 1], [], []>} : vector<8x16xf32>, vector<16x8xf32>, vector<8x8xf32> -> vector<8x8xf32>
    %523 = vector.extract_strided_slice %452 {offsets = [0, 24], sizes = [8, 8], strides = [1, 1]} : vector<8x32xf32> to vector<8x8xf32>
    %524 = vector.extract_strided_slice %460 {offsets = [0, 24], sizes = [16, 8], strides = [1, 1]} : vector<16x32xf32> to vector<16x8xf32>
    %cst_211 = arith.constant dense<0.000000e+00> : vector<8x16xf32>
    %525 = tpu.matmul %523, %524, %cst_211 {dimension_numbers = #tpu.dot_dimension_numbers<[1], [1], [0], [0], [0, 0, 1, 0], [], []>} : vector<8x8xf32>, vector<16x8xf32>, vector<8x16xf32> -> vector<8x16xf32>
    %cst_212 = arith.constant 0.353553385 : f32
    %526 = vector.broadcast %cst_212 : f32 to vector<8x16xf32>
    %527 = arith.mulf %525, %526 : vector<8x16xf32>
    %528 = vector.broadcast %17 : vector<1x16xf32> to vector<8x16xf32>
    %529 = arith.addf %527, %528 : vector<8x16xf32>
    %cst_213 = arith.constant dense<0xFF800000> : vector<8xf32>
    %530 = vector.multi_reduction <maximumf>, %529, %cst_213 [1] : vector<8x16xf32> to vector<8xf32>
    %531 = vector.shape_cast %530 : vector<8xf32> to vector<8x1xf32>
    %532 = vector.broadcast %531 : vector<8x1xf32> to vector<8x16xf32>
    %533 = arith.subf %529, %532 : vector<8x16xf32>
    %534 = math.exp %533 : vector<8x16xf32>
    %cst_214 = arith.constant dense<0.000000e+00> : vector<8xf32>
    %535 = vector.multi_reduction <add>, %534, %cst_214 [1] : vector<8x16xf32> to vector<8xf32>
    %536 = vector.shape_cast %535 : vector<8xf32> to vector<8x1xf32>
    %537 = tpu.reciprocal %536 {approx = true} : vector<8x1xf32> -> vector<8x1xf32>
    %538 = vector.broadcast %537 : vector<8x1xf32> to vector<8x16xf32>
    %539 = arith.mulf %534, %538 : vector<8x16xf32>
    %540 = vector.extract_strided_slice %461 {offsets = [0, 24], sizes = [16, 8], strides = [1, 1]} : vector<16x32xf32> to vector<16x8xf32>
    %cst_215 = arith.constant dense<0.000000e+00> : vector<8x8xf32>
    %541 = tpu.matmul %539, %540, %cst_215 {dimension_numbers = #tpu.dot_dimension_numbers<[1], [0], [0], [1], [0, 0, 1, 1], [], []>} : vector<8x16xf32>, vector<16x8xf32>, vector<8x8xf32> -> vector<8x8xf32>
    %542 = tpu.concatenate %484, %503, %522, %541 in 1 : vector<8x8xf32>, vector<8x8xf32>, vector<8x8xf32>, vector<8x8xf32> -> vector<8x32xf32>
    %cst_216 = arith.constant dense<0.000000e+00> : vector<8x32xf32>
    %543 = tpu.matmul %542, %463, %cst_216 {dimension_numbers = #tpu.dot_dimension_numbers<[1], [0], [0], [1], [0, 0, 1, 1], [], []>} : vector<8x32xf32>, vector<32x32xf32>, vector<8x32xf32> -> vector<8x32xf32>
    %544 = vector.broadcast %465 : vector<1x32xf32> to vector<8x32xf32>
    %545 = arith.addf %543, %544 : vector<8x32xf32>
    %546 = arith.addf %421, %545 : vector<8x32xf32>
    %547 = vector.extract_strided_slice %304 {offsets = [2, 0], sizes = [1, 32], strides = [1, 1]} : vector<3x32xf32> to vector<1x32xf32>
    %548 = vector.extract_strided_slice %306 {offsets = [2, 0], sizes = [1, 32], strides = [1, 1]} : vector<3x32xf32> to vector<1x32xf32>
    %cst_217 = arith.constant dense<0.000000e+00> : vector<8xf32>
    %549 = vector.multi_reduction <add>, %546, %cst_217 [1] : vector<8x32xf32> to vector<8xf32>
    %550 = vector.shape_cast %549 : vector<8xf32> to vector<8x1xf32>
    %cst_218 = arith.constant 3.200000e+01 : f32
    %551 = vector.broadcast %cst_218 : f32 to vector<8x1xf32>
    %552 = arith.divf %550, %551 : vector<8x1xf32>
    %553 = vector.broadcast %552 : vector<8x1xf32> to vector<8x32xf32>
    %554 = arith.subf %546, %553 : vector<8x32xf32>
    %555 = arith.mulf %554, %554 : vector<8x32xf32>
    %cst_219 = arith.constant dense<0.000000e+00> : vector<8xf32>
    %556 = vector.multi_reduction <add>, %555, %cst_219 [1] : vector<8x32xf32> to vector<8xf32>
    %557 = vector.shape_cast %556 : vector<8xf32> to vector<8x1xf32>
    %cst_220 = arith.constant 3.100000e+01 : f32
    %558 = vector.broadcast %cst_220 : f32 to vector<8x1xf32>
    %559 = arith.divf %557, %558 : vector<8x1xf32>
    %560 = math.sqrt %559 : vector<8x1xf32>
    %561 = vector.broadcast %552 : vector<8x1xf32> to vector<8x32xf32>
    %562 = arith.subf %546, %561 : vector<8x32xf32>
    %563 = vector.broadcast %547 : vector<1x32xf32> to vector<8x32xf32>
    %564 = arith.mulf %563, %562 : vector<8x32xf32>
    %cst_221 = arith.constant 9.99999997E-7 : f32
    %565 = vector.broadcast %cst_221 : f32 to vector<8x1xf32>
    %566 = arith.addf %560, %565 : vector<8x1xf32>
    %567 = vector.broadcast %566 : vector<8x1xf32> to vector<8x32xf32>
    %568 = arith.divf %564, %567 : vector<8x32xf32>
    %569 = vector.broadcast %548 : vector<1x32xf32> to vector<8x32xf32>
    %570 = arith.addf %568, %569 : vector<8x32xf32>
    %c1_222 = arith.constant 1 : index
    %c0_223 = arith.constant 0 : index
    %c0_224 = arith.constant 0 : index
    %571 = vector.load %arg17[%c1_222, %c0_223, %c0_224] : memref<2x32x64xf32, #tpu.memory_space<vmem>>, vector<1x32x64xf32>
    %572 = vector.shape_cast %571 : vector<1x32x64xf32> to vector<32x64xf32>
    %cst_225 = arith.constant dense<0.000000e+00> : vector<8x64xf32>
    %573 = tpu.matmul %570, %572, %cst_225 {dimension_numbers = #tpu.dot_dimension_numbers<[1], [0], [0], [1], [0, 0, 1, 1], [], []>} : vector<8x32xf32>, vector<32x64xf32>, vector<8x64xf32> -> vector<8x64xf32>
    %c1_226 = arith.constant 1 : index
    %c0_227 = arith.constant 0 : index
    %c0_228 = arith.constant 0 : index
    %574 = vector.load %arg18[%c1_226, %c0_227, %c0_228] : memref<2x1x64xf32, #tpu.memory_space<vmem>>, vector<1x1x64xf32>
    %575 = vector.shape_cast %574 : vector<1x1x64xf32> to vector<1x64xf32>
    %576 = vector.broadcast %575 : vector<1x64xf32> to vector<8x64xf32>
    %577 = arith.addf %573, %576 : vector<8x64xf32>
    %cst_229 = arith.constant 0.000000e+00 : f32
    %578 = vector.broadcast %cst_229 : f32 to vector<8x64xf32>
    %579 = arith.maximumf %577, %578 : vector<8x64xf32>
    %c1_230 = arith.constant 1 : index
    %c0_231 = arith.constant 0 : index
    %c0_232 = arith.constant 0 : index
    %580 = vector.load %arg19[%c1_230, %c0_231, %c0_232] : memref<2x64x32xf32, #tpu.memory_space<vmem>>, vector<1x64x32xf32>
    %581 = vector.shape_cast %580 : vector<1x64x32xf32> to vector<64x32xf32>
    %cst_233 = arith.constant dense<0.000000e+00> : vector<8x32xf32>
    %582 = tpu.matmul %579, %581, %cst_233 {dimension_numbers = #tpu.dot_dimension_numbers<[1], [0], [0], [1], [0, 0, 1, 1], [], []>} : vector<8x64xf32>, vector<64x32xf32>, vector<8x32xf32> -> vector<8x32xf32>
    %583 = arith.addf %546, %582 : vector<8x32xf32>
    %c1_234 = arith.constant 1 : index
    %c0_235 = arith.constant 0 : index
    %c0_236 = arith.constant 0 : index
    %584 = vector.load %arg20[%c1_234, %c0_235, %c0_236] : memref<2x1x32xf32, #tpu.memory_space<vmem>>, vector<1x1x32xf32>
    %585 = vector.shape_cast %584 : vector<1x1x32xf32> to vector<1x32xf32>
    %586 = vector.broadcast %585 : vector<1x32xf32> to vector<8x32xf32>
    %587 = arith.addf %583, %586 : vector<8x32xf32>
    %c0_237 = arith.constant 0 : index
    %c0_238 = arith.constant 0 : index
    %588 = vector.load %arg21[%c0_237, %c0_238] : memref<1x32xf32, #tpu.memory_space<vmem>>, vector<1x32xf32>
    %c0_239 = arith.constant 0 : index
    %c0_240 = arith.constant 0 : index
    %589 = vector.load %arg22[%c0_239, %c0_240] : memref<1x32xf32, #tpu.memory_space<vmem>>, vector<1x32xf32>
    %cst_241 = arith.constant dense<0.000000e+00> : vector<8xf32>
    %590 = vector.multi_reduction <add>, %587, %cst_241 [1] : vector<8x32xf32> to vector<8xf32>
    %591 = vector.shape_cast %590 : vector<8xf32> to vector<8x1xf32>
    %cst_242 = arith.constant 3.200000e+01 : f32
    %592 = vector.broadcast %cst_242 : f32 to vector<8x1xf32>
    %593 = arith.divf %591, %592 : vector<8x1xf32>
    %594 = vector.broadcast %593 : vector<8x1xf32> to vector<8x32xf32>
    %595 = arith.subf %587, %594 : vector<8x32xf32>
    %596 = arith.mulf %595, %595 : vector<8x32xf32>
    %cst_243 = arith.constant dense<0.000000e+00> : vector<8xf32>
    %597 = vector.multi_reduction <add>, %596, %cst_243 [1] : vector<8x32xf32> to vector<8xf32>
    %598 = vector.shape_cast %597 : vector<8xf32> to vector<8x1xf32>
    %cst_244 = arith.constant 3.100000e+01 : f32
    %599 = vector.broadcast %cst_244 : f32 to vector<8x1xf32>
    %600 = arith.divf %598, %599 : vector<8x1xf32>
    %601 = math.sqrt %600 : vector<8x1xf32>
    %602 = vector.broadcast %593 : vector<8x1xf32> to vector<8x32xf32>
    %603 = arith.subf %587, %602 : vector<8x32xf32>
    %604 = vector.broadcast %588 : vector<1x32xf32> to vector<8x32xf32>
    %605 = arith.mulf %604, %603 : vector<8x32xf32>
    %cst_245 = arith.constant 9.99999997E-7 : f32
    %606 = vector.broadcast %cst_245 : f32 to vector<8x1xf32>
    %607 = arith.addf %601, %606 : vector<8x1xf32>
    %608 = vector.broadcast %607 : vector<8x1xf32> to vector<8x32xf32>
    %609 = arith.divf %605, %608 : vector<8x32xf32>
    %610 = vector.broadcast %589 : vector<1x32xf32> to vector<8x32xf32>
    %611 = arith.addf %609, %610 : vector<8x32xf32>
    %cst_246 = arith.constant 0.000000e+00 : f32
    %612 = vector.broadcast %cst_246 : f32 to vector<8x96xf32>
    %613 = tpu.concatenate %611, %612 in 1 : vector<8x32xf32>, vector<8x96xf32> -> vector<8x128xf32>
    %c0_247 = arith.constant 0 : index
    %c0_248 = arith.constant 0 : index
    %c0_249 = arith.constant 0 : index
    %614 = vector.load %arg23[%c0_247, %c0_248, %c0_249] : memref<1x8x128xf32, #tpu.memory_space<vmem>>, vector<1x8x128xf32>
    %615 = vector.shape_cast %614 : vector<1x8x128xf32> to vector<8x128xf32>
    %616 = vector.shape_cast %613 : vector<8x128xf32> to vector<1x8x128xf32>
    tpu.vector_store %arg23[%c0_247, %c0_248, %c0_249], %616 {strides = array<i32>} : memref<1x8x128xf32, #tpu.memory_space<vmem>>, vector<1x8x128xf32>,
    return
  }
  func.func @transform_0(%arg0: i32) -> (i32, i32, i32) {
    %c0_i32 = arith.constant 0 : i32
    %c0_i32_0 = arith.constant 0 : i32
    %c0_i32_1 = arith.constant 0 : i32
    return %arg0, %c0_i32, %c0_i32_0 : i32, i32, i32
  }
  func.func @transform_1(%arg0: i32) -> (i32, i32, i32) {
    %c0_i32 = arith.constant 0 : i32
    %c0_i32_0 = arith.constant 0 : i32
    %c0_i32_1 = arith.constant 0 : i32
    return %arg0, %c0_i32, %c0_i32_0 : i32, i32, i32
  }
  func.func @transform_2(%arg0: i32) -> (i32, i32, i32) {
    %c0_i32 = arith.constant 0 : i32
    %c0_i32_0 = arith.constant 0 : i32
    %c0_i32_1 = arith.constant 0 : i32
    return %arg0, %c0_i32, %c0_i32_0 : i32, i32, i32
  }
  func.func @transform_3(%arg0: i32) -> (i32, i32, i32) {
    %c0_i32 = arith.constant 0 : i32
    %c0_i32_0 = arith.constant 0 : i32
    %c0_i32_1 = arith.constant 0 : i32
    return %arg0, %c0_i32, %c0_i32_0 : i32, i32, i32
  }
  func.func @transform_4(%arg0: i32) -> (i32, i32, i32) {
    %c0_i32 = arith.constant 0 : i32
    %c0_i32_0 = arith.constant 0 : i32
    %c0_i32_1 = arith.constant 0 : i32
    %c0_i32_2 = arith.constant 0 : i32
    return %c0_i32, %c0_i32_0, %c0_i32_1 : i32, i32, i32
  }
  func.func @transform_5(%arg0: i32) -> (i32, i32, i32) {
    %c0_i32 = arith.constant 0 : i32
    %c0_i32_0 = arith.constant 0 : i32
    %c0_i32_1 = arith.constant 0 : i32
    %c0_i32_2 = arith.constant 0 : i32
    return %c0_i32, %c0_i32_0, %c0_i32_1 : i32, i32, i32
  }
  func.func @transform_6(%arg0: i32) -> (i32, i32, i32) {
    %c0_i32 = arith.constant 0 : i32
    %c0_i32_0 = arith.constant 0 : i32
    %c0_i32_1 = arith.constant 0 : i32
    %c0_i32_2 = arith.constant 0 : i32
    return %c0_i32, %c0_i32_0, %c0_i32_1 : i32, i32, i32
  }
  func.func @transform_7(%arg0: i32) -> (i32, i32, i32) {
    %c0_i32 = arith.constant 0 : i32
    %c0_i32_0 = arith.constant 0 : i32
    %c0_i32_1 = arith.constant 0 : i32
    %c0_i32_2 = arith.constant 0 : i32
    return %c0_i32, %c0_i32_0, %c0_i32_1 : i32, i32, i32
  }
  func.func @transform_8(%arg0: i32) -> (i32, i32, i32) {
    %c0_i32 = arith.constant 0 : i32
    %c0_i32_0 = arith.constant 0 : i32
    %c0_i32_1 = arith.constant 0 : i32
    %c0_i32_2 = arith.constant 0 : i32
    return %c0_i32, %c0_i32_0, %c0_i32_1 : i32, i32, i32
  }
  func.func @transform_9(%arg0: i32) -> (i32, i32, i32) {
    %c0_i32 = arith.constant 0 : i32
    %c0_i32_0 = arith.constant 0 : i32
    %c0_i32_1 = arith.constant 0 : i32
    %c0_i32_2 = arith.constant 0 : i32
    return %c0_i32, %c0_i32_0, %c0_i32_1 : i32, i32, i32
  }
  func.func @transform_10(%arg0: i32) -> (i32, i32, i32) {
    %c0_i32 = arith.constant 0 : i32
    %c0_i32_0 = arith.constant 0 : i32
    %c0_i32_1 = arith.constant 0 : i32
    %c0_i32_2 = arith.constant 0 : i32
    return %c0_i32, %c0_i32_0, %c0_i32_1 : i32, i32, i32
  }
  func.func @transform_11(%arg0: i32) -> (i32, i32, i32) {
    %c0_i32 = arith.constant 0 : i32
    %c0_i32_0 = arith.constant 0 : i32
    %c0_i32_1 = arith.constant 0 : i32
    %c0_i32_2 = arith.constant 0 : i32
    return %c0_i32, %c0_i32_0, %c0_i32_1 : i32, i32, i32
  }
  func.func @transform_12(%arg0: i32) -> (i32, i32, i32) {
    %c0_i32 = arith.constant 0 : i32
    %c0_i32_0 = arith.constant 0 : i32
    %c0_i32_1 = arith.constant 0 : i32
    %c0_i32_2 = arith.constant 0 : i32
    return %c0_i32, %c0_i32_0, %c0_i32_1 : i32, i32, i32
  }
  func.func @transform_13(%arg0: i32) -> (i32, i32, i32) {
    %c0_i32 = arith.constant 0 : i32
    %c0_i32_0 = arith.constant 0 : i32
    %c0_i32_1 = arith.constant 0 : i32
    %c0_i32_2 = arith.constant 0 : i32
    return %c0_i32, %c0_i32_0, %c0_i32_1 : i32, i32, i32
  }
  func.func @transform_14(%arg0: i32) -> (i32, i32, i32) {
    %c0_i32 = arith.constant 0 : i32
    %c0_i32_0 = arith.constant 0 : i32
    %c0_i32_1 = arith.constant 0 : i32
    %c0_i32_2 = arith.constant 0 : i32
    return %c0_i32, %c0_i32_0, %c0_i32_1 : i32, i32, i32
  }
  func.func @transform_15(%arg0: i32) -> (i32, i32, i32) {
    %c0_i32 = arith.constant 0 : i32
    %c0_i32_0 = arith.constant 0 : i32
    %c0_i32_1 = arith.constant 0 : i32
    %c0_i32_2 = arith.constant 0 : i32
    return %c0_i32, %c0_i32_0, %c0_i32_1 : i32, i32, i32
  }
  func.func @transform_16(%arg0: i32) -> (i32, i32, i32) {
    %c0_i32 = arith.constant 0 : i32
    %c0_i32_0 = arith.constant 0 : i32
    %c0_i32_1 = arith.constant 0 : i32
    %c0_i32_2 = arith.constant 0 : i32
    return %c0_i32, %c0_i32_0, %c0_i32_1 : i32, i32, i32
  }
  func.func @transform_17(%arg0: i32) -> (i32, i32, i32) {
    %c0_i32 = arith.constant 0 : i32
    %c0_i32_0 = arith.constant 0 : i32
    %c0_i32_1 = arith.constant 0 : i32
    %c0_i32_2 = arith.constant 0 : i32
    return %c0_i32, %c0_i32_0, %c0_i32_1 : i32, i32, i32
  }
  func.func @transform_18(%arg0: i32) -> (i32, i32, i32) {
    %c0_i32 = arith.constant 0 : i32
    %c0_i32_0 = arith.constant 0 : i32
    %c0_i32_1 = arith.constant 0 : i32
    %c0_i32_2 = arith.constant 0 : i32
    return %c0_i32, %c0_i32_0, %c0_i32_1 : i32, i32, i32
  }
  func.func @transform_19(%arg0: i32) -> (i32, i32, i32) {
    %c0_i32 = arith.constant 0 : i32
    %c0_i32_0 = arith.constant 0 : i32
    %c0_i32_1 = arith.constant 0 : i32
    %c0_i32_2 = arith.constant 0 : i32
    return %c0_i32, %c0_i32_0, %c0_i32_1 : i32, i32, i32
  }
  func.func @transform_20(%arg0: i32) -> (i32, i32) {
    %c0_i32 = arith.constant 0 : i32
    %c0_i32_0 = arith.constant 0 : i32
    %c0_i32_1 = arith.constant 0 : i32
    return %c0_i32, %c0_i32_0 : i32, i32
  }
  func.func @transform_21(%arg0: i32) -> (i32, i32) {
    %c0_i32 = arith.constant 0 : i32
    %c0_i32_0 = arith.constant 0 : i32
    %c0_i32_1 = arith.constant 0 : i32
    return %c0_i32, %c0_i32_0 : i32, i32
  }
  func.func @transform_22(%arg0: i32) -> (i32, i32, i32) {
    %c0_i32 = arith.constant 0 : i32
    %c0_i32_0 = arith.constant 0 : i32
    %c0_i32_1 = arith.constant 0 : i32
    return %arg0, %c0_i32, %c0_i32_0 : i32, i32, i32
  }
}

</mosaic_0001>

<bundles_post_ra>
// kernel: tpu_custom_call.1
= control target key start
LH: loop header
LB: loop body
LE: loop exit
PB: predicated region body
PF: predicated region fallthrough
CT: control target
= control target key end

     0   :  { %s7446_s0 = inlined_call_operand.vmem [shape: f32[2,8,32], index: 0, kind: input, shape index: {}]   ;;  %s7447_s1 = inlined_call_operand.hbm [shape: f32[2,16,32], index: 1, kind: input, shape index: {}]   ;;  %s7448_s2 = inlined_call_operand.vmem [shape: f32[2,1,16], index: 2, kind: input, shape index: {}]   ;;  %s7449_s3 = inlined_call_operand.hbm [shape: f32[2,8,8], index: 3, kind: input, shape index: {}]   ;;  %s7450_s4 = inlined_call_operand.vmem [shape: f32[2,32,96], index: 4, kind: input, shape index: {}]   ;;  %s7451_s5 = inlined_call_operand.vmem [shape: f32[2,1,96], index: 5, kind: input, shape index: {}]   ;;  %s7452_s6 = inlined_call_operand.vmem [shape: f32[2,32,32], index: 6, kind: input, shape index: {}]   ;;  %s7453_s7 = inlined_call_operand.vmem [shape: f32[2,1,32], index: 7, kind: input, shape index: {}]   ;;  %s7454_s8 = inlined_call_operand.vmem [shape: f32[2,32,32], index: 8, kind: input, shape index: {}]   ;;  %s7455_s9 = inlined_call_operand.vmem [shape: f32[2,1,32], index: 9, kind: input, shape index: {}]   ;;  %s7456_s10 = inlined_call_operand.hbm [shape: f32[2,32,64], index: 10, kind: input, shape index: {}]   ;;  %s7457_s11 = inlined_call_operand.vmem [shape: f32[2,1,64], index: 11, kind: input, shape index: {}]   ;;  %s7458_s12 = inlined_call_operand.hbm [shape: f32[2,32,32], index: 12, kind: input, shape index: {}]   ;;  %s7459_s13 = inlined_call_operand.vmem [shape: f32[2,1,32], index: 13, kind: input, shape index: {}]   ;;  %s7460_s14 = inlined_call_operand.vmem [shape: f32[2,3,32], index: 14, kind: input, shape index: {}]   ;;  %s7461_s15 = inlined_call_operand.vmem [shape: f32[2,3,32], index: 15, kind: input, shape index: {}]   ;;  %s7462_s16 = inlined_call_operand.hbm [shape: f32[2,32,64], index: 16, kind: input, shape index: {}]   ;;  %s7463_s17 = inlined_call_operand.vmem [shape: f32[2,1,64], index: 17, kind: input, shape index: {}]   ;;  %s7464_s18 = inlined_call_operand.vmem [shape: f32[2,64,32], index: 18, kind: input, shape index: {}]   ;;  %s7465_s19 = inlined_call_operand.vmem [shape: f32[2,1,32], index: 19, kind: input, shape index: {}]   ;;  %s7466_s20 = inlined_call_operand.vmem [shape: f32[1,32], index: 20, kind: input, shape index: {}]   ;;  %s7467_s21 = inlined_call_operand.vmem [shape: f32[1,32], index: 21, kind: input, shape index: {}]   ;;  %s7468_s22 = inlined_call_operand.hbm [shape: f32[2,8,128], index: 22, kind: output, shape index: {}]  }
   0x1   :  { %7518 = sst [smem:[#allocation23_spill]] %s7446_s0 }
   0x2   :  { %7519 = sst [smem:[#allocation24_spill]] %s7447_s1 }
   0x3   :  { %7520 = sst [smem:[#allocation25_spill]] %s7448_s2 }
   0x4   :  { %7521 = sst [smem:[#allocation26_spill]] %s7449_s3 }
   0x5   :  { %7522 = sst [smem:[#allocation27_spill]] %s7450_s4 }
   0x6   :  { %7523 = sst [smem:[#allocation28_spill]] %s7451_s5 }
   0x7   :  { %7524 = sst [smem:[#allocation29_spill]] %s7452_s6 }
   0x8   :  { %7525 = sst [smem:[#allocation30_spill]] %s7456_s10 }
   0x9   :  { %7526 = sst [smem:[#allocation31_spill]] %s7458_s12 }
   0xa   :  { %7527 = sst [smem:[#allocation32_spill]] %s7460_s14 }
   0xb   :  { %7528 = sst [smem:[#allocation33_spill]] %s7462_s16 }
   0xc   :  { %7529 = sst [smem:[#allocation34_spill]] %s7463_s17 }
   0xd   :  { %7530 = sst [smem:[#allocation35_spill]] %s7465_s19 }
   0xe   :  { %7531 = sst [smem:[#allocation36_spill]] %s7466_s20 }
   0xf   :  { %7532 = sst [smem:[#allocation37_spill]] %s7467_s21 }
  0x10   :  { %7533 = sst [smem:[#allocation38_spill]] %s7468_s22 }
  0x11   :  { %27 = vsyncpa [#allocation3], 0 }
  0x12   :  { %29 = vsyncpa [#allocation3 + $0x1], 0 }
  0x13   :  { %30 = vsyncpa [#allocation6], 0 }
  0x14   :  { %32 = vsyncpa [#allocation6 + $0x1], 0 }
  0x15   :  { %33 = vsyncpa [#allocation9], 0 }
  0x16   :  { %34 = vsyncpa [#allocation4], 0 }
  0x17   :  { %36 = vsyncpa [#allocation4 + $0x1], 0  ;;  %s6421_s3 = smov 0   ;;  %s6423_s28 = smov 0  }
  0x18   :  { %s6425_s29 = smov 0   ;;  %s6427_s30 = smov 0  }
  0x19 LB: > { %7534 = sst [smem:[#allocation17_spill]] %s6268_s3  ;;  %s6442_s4 = sadd.s32 4294967295, %s6280_s30   ;;  %s6280_s30 = sphi %s6427_s30, %s7593_s30   ;;  %s6276_s29 = sphi %s6425_s29, %s7595_s29   ;;  %s6272_s28 = sphi %s6423_s28, %s7597_s28   ;;  %s6268_s3 = sphi %s6421_s3, %s7596_s3  }
  0x1a   : > { %7535 = sst [smem:[#allocation18_spill]] %s6276_s29  ;;  %s5213_s0 = sadd.s32 4294967294, %s6280_s30  }
  0x1b   : > { %p88_p0 = scmp.ne.s32.totalorder %s6272_s28, %s6268_s3  ;;  %p7477_p1 = scmp.eq.s32.totalorder %s6442_s4, 0 }
  0x1c   : > { %p542_p2 = scmp.eq.s32.totalorder %s6442_s4, 1  ;;  %p548_p3 = scmp.eq.s32.totalorder %s5213_s0, 1 }
  0x1d   : > { %p6451_p4 = por %p7477_p1, %p88_p0  ;;  %p5214_p5 = scmp.ge.s32.totalorder %s6280_s30, 1 }
  0x1e   : > { %p6456_p6 = por %p548_p3, %p88_p0  ;;  %p555_p7 = scmp.lt.s32.totalorder %s6280_s30, 3 }
  0x1f   : > { %s7536_s23 = scalar_select %p6451_p4, 1, 0 }
  0x20   : > { %s7537_s1 = scalar_select %p6456_p6, 1, 0 }
  0x21   : > { %p6461_p8 = pnand %p5214_p5, %p555_p7  ;;  %s6282_s24 = smov [#allocation7]  }
  0x22   : > { %7538 = sst [smem:[#allocation19_spill]] %s7537_s1  ;;  %s585_s6 = sshll.u32 %s6282_s24, 4  ;;  %s586_s6 = int_to_ptr.vmem [resolvable:$true] %s585_s6 }
  0x23   : > { %s7539_s5 = scalar_select %p6461_p8, 1, 0 }
  0x24   : > { %p5894_p9 = pneg %p6461_p8  ;;  %s6283_s26 = smov [#allocation8]  }
  0x25   : > { %s601_s2 = sshll.u32 %s6283_s26, 4  ;;  %s6284_s27 = smov [#allocation10]   ;;  %s602_s2 = int_to_ptr.vmem [resolvable:$true] %s601_s2 }
  0x26   : > { %p6470_p11 = pnand %p5894_p9, %p7477_p1  ;;  %s623_s0 = sshll.u32 %s6284_s27, 4  ;;  %s624_s0 = int_to_ptr.vmem [resolvable:$true] %s623_s0 }
  0x27   : > { %s6081_s1 = scalar_lea.vmem %s586_s6, 1024  ;;  %p6089_p5 = scmp.lt.s32.totalorder %s586_s6, %s586_s6 }
  0x28   : > { %p6072_p12 = pneg %p6470_p11  ;;  %p6082_p13 = scmp.ne.s32.totalorder %s586_s6, %s6081_s1 }
  0x29   : > { %p6090_p7 = scmp.lt.s32.totalorder %s6081_s1, %s6081_s1 }
  0x2a   : > { %p6084_p0 = pnand %p6082_p13, %p6072_p12 }
  0x2b   : > { %p6091_p9 = por %p6090_p7, %p6089_p5 }
  0x2c   : > { %p6085_p3 = pneg %p6084_p0 }
  0x2e   : > { %p6092_p10 = pnand %p6091_p9, %p6085_p3 }
  0x30   : > { %6095 = shalt.err (!%p6092_p10)
}
  0x31   : > { %s7478_s24 = smov 128   ;;  %s7479_s26 = smov 8  }
  0x32   : > { %s7541_s10 = sld [smem:[#allocation30_spill]]  ;;  %s6107_s22 = scalar_lea.vmem %s602_s2, 1024 }
  0x33   : > { %p6108_p13 = scmp.ne.s32.totalorder %s602_s2, %s6107_s22  ;;  %p6115_p3 = scmp.lt.s32.totalorder %s602_s2, %s602_s2 }
  0x34   : > { %p6116_p10 = scmp.lt.s32.totalorder %s6107_s22, %s6107_s22 }
  0x35   : > { %p6110_p0 = pnand %p6108_p13, %p6072_p12 }
  0x36   : > { %p6117_p7 = por %p6116_p10, %p6115_p3 }
  0x37   : > { %p6111_p5 = pneg %p6110_p0 }
  0x38   : > { %5897 = dma.hbm_to_vmem [thread:$0]  (!%p6470_p11), %s7541_s10, 1024, %s586_s6, [#allocation6], %s7478_s24, %s7478_s24, %s7479_s26  }
  0x39   : > { %p6118_p9 = pnand %p6117_p7, %p6111_p5 }
  0x3b   : > { %6121 = shalt.err (!%p6118_p9)
}
  0x3c   : > { %s7542_s12 = sld [smem:[#allocation31_spill]]  ;;  %s6133_s3 = scalar_lea.vmem %s624_s0, 1024 }
  0x3d   : > { %p6134_p1 = scmp.ne.s32.totalorder %s624_s0, %s6133_s3  ;;  %p6141_p3 = scmp.lt.s32.totalorder %s624_s0, %s624_s0 }
  0x3e   : > { %p6142_p5 = scmp.lt.s32.totalorder %s6133_s3, %s6133_s3 }
  0x3f   : > { %p6136_p13 = pnand %p6134_p1, %p6072_p12 }
  0x40   : > { %p6143_p10 = por %p6142_p5, %p6141_p3 }
  0x41   : > { %p6137_p0 = pneg %p6136_p13 }
  0x42   : > { %5900 = dma.hbm_to_vmem [thread:$0]  (!%p6470_p11), %s7542_s12, 1024, %s602_s2, [#allocation9], %s7478_s24, %s7478_s24, %s7479_s26  }
  0x43   : > { %p6144_p7 = pnand %p6143_p10, %p6137_p0 }
  0x45   : > { %6147 = shalt.err (!%p6144_p7)
}
  0x46   : > { %s7543_s16 = sld [smem:[#allocation33_spill]]  ;;  %s6510_s6 = sadd.s32 1, %s6280_s30  }
  0x47   : > { %7544 = sst [smem:[#allocation20_spill]] %s6510_s6  ;;  %s72_s25 = ssub.s32 %s6280_s30, %s6510_s6 }
  0x48   : > { %s75_s2 = sadd.s32 1, %s6276_s29  ;;  %p73_p1 = scmp.eq.s32.totalorder %s72_s25, 0 }
  0x49   : > { %p82_p12 = scmp.ne.s32.totalorder %s6276_s29, %s6272_s28  ;;  %p83_p9 = scmp.eq.s32.totalorder %s6280_s30, 0 }
  0x4a   : > { %p5918_p13 = scmp.lt.s32.totalorder %s6280_s30, 2  ;;  %s6529_s3 = sand.u32 1, %s6276_s29  }
  0x4b   : > { %s6520_s27 = scalar_select %p73_p1, %s6276_s29, %s75_s2  }
  0x4c   : > { %5903 = dma.hbm_to_vmem [thread:$0]  (!%p6470_p11), %s7543_s16, 1024, %s624_s0, [#allocation9], %s7478_s24, %s7478_s24, %s7479_s26  }
  0x4d   : > { %7545 = sst [smem:[#allocation21_spill]] %s6520_s27  ;;  %p84_p0 = por %p83_p9, %p82_p12 }
  0x4e   : > { %p6524_p3 = por %p542_p2, %p82_p12  ;;  %s5353_s0 = sshll.u32 %s6280_s30, 8 }
  0x4f   : > { %s5219_s21 = sshll.u32 %s6529_s3, 4  ;;  %s7548_s25 = sld [smem:[#allocation24_spill]] }
  0x50   : > { %s7546_s1 = scalar_select %p6524_p3, 1, 0 }
  0x51   : > { %s663_s2 = scalar_lea.vmem [#allocation2], %s5219_s21  ;;  %p6538_p2 = pnand %p5918_p13, %p84_p0 }
  0x52   : > { %7547 = sst [smem:[#allocation22_spill]] %s7546_s1  ;;  %s670_s10 = sshll.u32 %s663_s2, 4  ;;  %s6542_s10 = int_to_ptr.vmem [resolvable:$true] %s670_s10 }
  0x53   : > { %p6150_p5 = pneg %p6538_p2 }
  0x55   : > { %s6536_s26 = scalar_lea.hbm %s7548_s25, %s5353_s0  ;;  %s6153_s21 = scalar_lea.hbm %s7548_s25, 512 }
  0x56   : > { %s6148_s29 = scalar_lea.hbm %s6536_s26, 256  ;;  %p6154_p1 = scmp.lt.s32.totalorder %s6536_s26, %s7548_s25 }
  0x57   : > { %p6149_p11 = scmp.ne.s32.totalorder %s6536_s26, %s6148_s29  ;;  %p6155_p12 = scmp.lt.s32.totalorder %s6153_s21, %s6148_s29 }
  0x59   : > { %p6151_p10 = pnand %p6150_p5, %p6149_p11  ;;  %p6156_p9 = por %p6155_p12, %p6154_p1 }
  0x5b   : > { %p6152_p7 = pneg %p6151_p10 }
  0x5d   : > { %p6157_p13 = pnand %p6156_p9, %p6152_p7 }
  0x5f   : > { %6160 = shalt.err (!%p6157_p13)
}
  0x60   : > { %s6161_s16 = scalar_lea.vmem %s6542_s10, 256  ;;  %s6287_s24 = smov [#allocation2]  }
  0x61   : > { %p6162_p0 = scmp.ne.s32.totalorder %s6542_s10, %s6161_s16  ;;  %s6166_s0 = sshll.u32 %s6287_s24, 4  ;;  %s6167_s0 = int_to_ptr.vmem [resolvable:$false] %s6166_s0 }
  0x62   : > { %s6168_s27 = scalar_lea.vmem %s6167_s0, 512  ;;  %p6169_p6 = scmp.lt.s32.totalorder %s6542_s10, %s6167_s0 }
  0x63   : > { %p6164_p11 = pnand %p6162_p0, %p6150_p5  ;;  %p6170_p3 = scmp.lt.s32.totalorder %s6168_s27, %s6161_s16 }
  0x65   : > { %p6165_p10 = pneg %p6164_p11  ;;  %p6171_p4 = por %p6170_p3, %p6169_p6 }
  0x67   : > { %p6172_p1 = pnand %p6171_p4, %p6165_p10 }
  0x69   : > { %6175 = shalt.err (!%p6172_p1)
}
  0x6a   : > { %s7550_s29 = smov 8   ;;  %s7551_s21 = smov 128  }
  0x6b   : > { %s7552_s22 = scalar_lea.sflag [#allocation3], %s6529_s3  ;;  %s5222_s2 = sshll.u32 %s6529_s3, 3 }
  0x6c   : > { %5907 = dma.hbm_to_vmem [thread:$0]  (!%p6538_p2), %s6536_s26, 256, %s6542_s10, %s7552_s22, %s7551_s21, %s7551_s21, %s7550_s29  }
  0x6d   : > { %s5223_s24 = sshll.u32 %s6280_s30, 7  ;;  %s7553_s0 = sld [smem:[#allocation26_spill]] }
  0x6e   : > { %s690_s6 = scalar_lea.vmem [#allocation5], %s5222_s2  ;;  %s7554_s20 = sand.u32 1, %s6280_s30  }
  0x6f   : > { %s697_s1 = sshll.u32 %s690_s6, 4  ;;  %s687_s19 = scalar_lea.sflag [#allocation6], %s7554_s20  ;;  %s698_s1 = int_to_ptr.vmem [resolvable:$true] %s697_s1 }
  0x73   : > { %s6580_s25 = scalar_lea.hbm %s7553_s0, %s5223_s24  ;;  %s6181_s3 = scalar_lea.hbm %s7553_s0, 256 }
  0x74   : > { %s6176_s17 = scalar_lea.hbm %s6580_s25, 128  ;;  %p6182_p7 = scmp.lt.s32.totalorder %s6580_s25, %s7553_s0 }
  0x75   : > { %p6177_p4 = scmp.ne.s32.totalorder %s6580_s25, %s6176_s17  ;;  %p6183_p12 = scmp.lt.s32.totalorder %s6181_s3, %s6176_s17 }
  0x77   : > { %p6179_p6 = pnand %p6177_p4, %p6150_p5  ;;  %p6184_p9 = por %p6183_p12, %p6182_p7 }
  0x79   : > { %p6180_p3 = pneg %p6179_p6 }
  0x7b   : > { %p6185_p13 = pnand %p6184_p9, %p6180_p3 }
  0x7d   : > { %6188 = shalt.err (!%p6185_p13)
}
  0x7e   : > { %s6189_s6 = scalar_lea.vmem %s698_s1, 128  ;;  %s6288_s20 = smov [#allocation5]  }
  0x7f   : > { %p6190_p0 = scmp.ne.s32.totalorder %s698_s1, %s6189_s6  ;;  %s6194_s22 = sshll.u32 %s6288_s20, 4  ;;  %s6195_s22 = int_to_ptr.vmem [resolvable:$false] %s6194_s22 }
  0x80   : > { %s6196_s2 = scalar_lea.vmem %s6195_s22, 256  ;;  %p6197_p1 = scmp.lt.s32.totalorder %s698_s1, %s6195_s22 }
  0x81   : > { %p6192_p11 = pnand %p6190_p0, %p6150_p5  ;;  %p6198_p4 = scmp.lt.s32.totalorder %s6196_s2, %s6189_s6 }
  0x83   : > { %p6193_p10 = pneg %p6192_p11  ;;  %p6199_p6 = por %p6198_p4, %p6197_p1 }
  0x85   : > { %p6200_p8 = pnand %p6199_p6, %p6193_p10 }
  0x87   : > { %6203 = shalt.err (!%p6200_p8)
}
  0x88   : > { %5910 = dma.hbm_to_vmem [thread:$0]  (!%p6538_p2), %s6580_s25, 128, %s698_s1, %s687_s19  }
  0x89   : > { %p7555_p3 = scmp.ne.s32.totalorder %s7539_s5, 0 }
  0x8a   : > { %s6605_s17 = sand.u32 (!%p7555_p3), 1, %s6272_s28   ;;  %p7556_p5 = scmp.ne.s32.totalorder (!%p7555_p3), %s7536_s23, 0 }
  0x8b   : > { %706 = sbr.rel (%p7555_p3) target bundleno = 10636 (0x298c), region = 108  ;;  %s5225_s24 = sshll.u32 (!%p7555_p3), %s6605_s17, 4 }
  0x8c   : > { %s709_s16 = scalar_lea.sflag (!%p7555_p3), [#allocation3], %s6605_s17  ;;  %s6609_s27 = scalar_lea.vmem (!%p7555_p3), [#allocation2], %s5225_s24 }
  0x90   : > { %6247 = dma.done.wait (%p7556_p5), %s709_s16, 256  }
  0x91   : > { %6249 = vsyncadd (%p7556_p5), %s709_s16, 4294967040  ;;  %s717_s12 = sand.u32 1, %s6442_s4   ;;  %s7491_s19 = sshll.u32 %s6605_s17, 3 }
  0x92   : > { %s718_s5 = scalar_lea.sflag [#allocation6], %s717_s12  ;;  %s6619_s1 = scalar_lea.vmem [#allocation5], %s7491_s19 }
  0x93   : > { %6251 = dma.done.wait (%p7556_p5), %s718_s5, 128  }
  0x94   : > { %6253 = vsyncadd (%p7556_p5), %s718_s5, 4294967168  ;;  %p7557_p8 = scmp.eq.s32.totalorder %s6442_s4, 0 }
  0x96   : > { %6255 = dma.done.wait (%p7557_p8), [#allocation6], 1024   ;;  %p7558_p2 = pmov %p7557_p8 }
  0x98   : > { %6257 = vsyncadd (%p7558_p2), [#allocation6], 4294966272  ;;  %p7559_p7 = pmov %p7558_p2 }
  0x99   : > { %p7560_p12 = pmov %p7558_p2 }
  0x9a   : > { %6259 = dma.done.wait (%p7559_p7), [#allocation9], 2048  }
  0x9b   : > { %6261 = vsyncadd (%p7560_p12), [#allocation9], 4294965248  ;;  %p806_p9 = scmp.lt.s32.totalorder %s6442_s4, 1  ;;  %v6289_v0 = vmov 0.0   ;;  %s7561_s3 = sld [smem:[#allocation23_spill]]  ;;  %vm824_vm0 = vcmask 261120   ;;  %v844_v17 = vlaneseq }
  0x9c   : > { %5514 = vmatprep.subr.mxu1 %v6289_v0  ;;  %5535 = vmatprep.subr.mxu0 %v6289_v0  ;;  %s7562_s20 = sld [smem:[#allocation27_spill]]  ;;  %vm6290_vm1 = vmmov 0   ;;  %v6684_v25 = vld [vmem:[%s7461_s15] sm:$0x7]  ;;  %s7510_s22 = smov 120   ;;  %vm949_vm4 = vcmask 64512  }
  0x9d   : > { %s6637_s23 = scalar_select %p806_p9, %s6442_s4, 1  ;;  %5522 = vmatprep.mubr.msk.f32.mxu1 %vm6290_vm1, %v6289_v0  ;;  %5537 = vmatprep.mubr.msk.f32.mxu0 %vm6290_vm1, %v6289_v0  ;;  %v6669_v21 = vshrl.u32 %v844_v17, 7  ;;  %v816_v42 = vld [vmem:[%s6619_s1] sm:$0xff]  ;;  %vm1627_vm6 = vcmask 130048   ;;  %vm1629_vm7 = vcmask 195584   ;;  %vm2839_vm13 = vcmask 523264  }
  0x9e   : > { %s7563_s14 = sld [smem:[#allocation32_spill]]  ;;  %s7512_s2 = smov 96   ;;  %vm817_vm5 = vcmp.eq.f32.partialorder %v816_v42, 0.0 }
  0x9f   : > { %s5231_s25 = sshll.u32 %s6637_s23, 3  ;;  %v6672_v22 = vsub.s32 0, %v6669_v21  ;;  %s7564_s6 = sld [smem:[#allocation28_spill]]  ;;  %v6733_v44 = vsel %vm817_vm5, -1e+09, %v6289_v0 }
  0xa0   : > { %s7514_s24 = smov 88   ;;  %s7508_s16 = smov 80  }
  0xa1   : > { %s809_s29 = scalar_lea.vmem %s7561_s3, %s5231_s25  ;;  %v855_v27 = vrot.slane %v6684_v25, %v6672_v22  ;;  %s7506_s12 = smov 112  }
  0xa2   : > { %v6643_v1 = vld [vmem:[%s809_s29] sm:$0xff]  ;;  %v860_v8 = vld [vmem:[%s7562_s20 + $0x18] sm:$0xff]  ;;  %v859_v9 = vld [vmem:[%s7562_s20 + $0x10] sm:$0xff]  ;;  %s7504_s5 = smov 72   ;;  %s7502_s25 = smov 104  }
  0xa3   : > { %v825_v2 = vsel %vm824_vm0, %v6643_v1, 0.0  ;;  %5515 = vmatpush3.msra.mxu1 %v860_v8  ;;  %v858_v10 = vld [vmem:[%s7562_s20 + $0x8] sm:$0xff]  ;;  %v857_v11 = vld [vmem:[%s7562_s20] sm:$0xff]  ;;  %s7495_s1 = smov 64   ;;  %s7494_s10 = smov 48  }
  0xa4   : > { %826 = vadd.xlane.f32.xlu0 %v825_v2  ;;  %5516 = vmatprep.subr.mxu1 %v6289_v0  ;;  %v6677_v23 = vld [vmem:[%s7563_s14] sm:$0x7]  ;;  %s7493_s26 = smov 40   ;;  %s7492_s3 = smov 56  }
  0xa5   : > { %5517 = vmatpush3.msra.mxu1 %v859_v9  ;;  %v847_v24 = vrot.slane %v6677_v23, %v6672_v22  ;;  %v5232_v31 = vld [vmem:[%s7564_s6] ss:$0 sm:$0xff]  ;;  %s7565_s19 = sld [smem:[#allocation29_spill]]  ;;  %s7569_s29 = smov 24  }
  0xa6   : > { %5518 = vmatprep.subr.mxu1 %v6289_v0  ;;  %s7576_s21 = smov 72   ;;  %s7583_s0 = sld [smem:[#allocation36_spill]] }
  0xa7   : > { %5519 = vmatpush3.msra.mxu1 %v858_v10 }
  0xa8   : > { %5520 = vmatprep.subr.mxu1 %v6289_v0 }
  0xa9   : > { %5521 = vmatpush3.msra.mxu1 %v857_v11 }
  0xaa   : > { %5525 = vmatprep.subr.mxu1 %v6289_v0 }
  0xab   : > { %v944_v42 = vld [vmem:[%s7565_s19 + $0x18] sm:$0xff] }
 0x12d   : > { %v827_v3 = vpop.xlane.xlu0 %826 }
 0x12e   : > { %v829_v4 = vmul.f32 0.03125, %v827_v3 }
 0x130   : > { %v830_v5 = vsub.f32 %v6643_v1, %v829_v4 }
 0x132   : > { %v831_v6 = vmul.f32 %v830_v5, %v830_v5  ;;  %v848_v26 = vmul.f32 %v847_v24, %v830_v5 }
 0x134   : > { %v832_v7 = vsel %vm824_vm0, %v831_v6, 0.0 }
 0x135   : > { %833 = vadd.xlane.f32.xlu0 %v832_v7 }
 0x1be   : > { %v834_v12 = vpop.xlane.xlu0 %833 }
 0x1bf   : > { %v836_v13 = vmul.f32 0.032258064, %v834_v12 }
 0x1c1   : > { %5976 = vrsqrt.f32 %v836_v13  ;;  %vm839_vm2 = vcmp.eq.f32.partialorder %v836_v13, inf  ;;  %v842_v16 = vand.u32 2147483648, %v836_v13  ;;  %vm841_vm3 = vcmp.eq.f32.partialorder %v836_v13, 0.0 }
 0x1ce   : > { %v5977_v14 = vpop.eup %5976 }
 0x1cf   : > { %v838_v15 = vmul.f32 %v5977_v14, %v836_v13 }
 0x1d1   : > { %v840_v18 = vsel %vm839_vm2, %v836_v13, %v838_v15 }
 0x1d2   : > { %v843_v19 = vsel %vm841_vm3, %v842_v16, %v840_v18 }
 0x1d3   : > { %v849_v20 = vadd.f32 1e-06, %v843_v19 }
 0x1d5   : > { %5978 = vrcp.f32 %v849_v20 }
 0x1e2   : > { %v5979_v28 = vpop.eup %5978 }
 0x1e3   : > { %v851_v29 = vmul.f32 %v5979_v28, %v848_v26 }
 0x1e5   : > { %v856_v30 = vadd.f32 %v855_v27, %v851_v29 }
 0x1e7   : > { %5523 = vmatmul.mubr.msk.f32.vlgmr.msra.gmra.mxu1 %vm824_vm0, %v856_v30 }
 0x1e8   : > { %5527 = vmatprep.mubr.msk.f32.mxu1 %vm6290_vm1, %v6289_v0 }
 0x2a7   : > { %v937_v32 = vpop.f32.mrf.mxu1 }
 0x2a8   : > { %v6694_v33 = vadd.f32 %v5232_v31, %v937_v32 }
 0x2a9   : > { %v5524_v34 = vpop.f32.mrf.mxu1 }
 0x2aa   : > { %1113 = vrot.lane.b32.xlu0 %v6694_v33, %s7510_s22  ;;  %947 = vrot.lane.b32.xlu1 %v6694_v33, %s7512_s2 }
 0x2ae   : > { %1115 = vrot.lane.b32.xlu1 %v6694_v33, %s7514_s24 }
 0x2b2   : > { %1282 = vrot.lane.b32.xlu1 %v6694_v33, %s7508_s16 }
 0x2b6   : > { %1280 = vrot.lane.b32.xlu1 %v6694_v33, %s7506_s12 }
 0x2ba   : > { %1449 = vrot.lane.b32.xlu1 %v6694_v33, %s7504_s5 }
 0x2be   : > { %1447 = vrot.lane.b32.xlu1 %v6694_v33, %s7502_s25 }
 0x31c   : > { %v948_v35 = vpop.permute.xlu1 %947  ;;  %v1114_v37 = vpop.permute.xlu0 %1113 }
 0x31d   : > { %5526 = vmatpush3.xpose.msk.msra.mxu1 %vm949_vm4, %v948_v35 }
 0x31e   : > { %5530 = vmatprep.subr.mxu1 %v6289_v0 }
 0x320   : > { %5528 = vmatmul.mubr.msk.f32.vlgmr.msra.gmra.mxu1 %vm949_vm4, %v6694_v33  ;;  %v1116_v36 = vpop.permute.xlu1 %1115 }
 0x321   : > { %5536 = vmatpush3.xpose.msk.msra.mxu0 %vm949_vm4, %v1116_v36  ;;  %5532 = vmatprep.mubr.msk.f32.mxu1 %vm6290_vm1, %v6289_v0 }
 0x322   : > { %5545 = vmatprep.subr.mxu0 %v6289_v0 }
 0x324   : > { %5538 = vmatmul.mubr.msk.f32.vlgmr.msra.gmra.mxu0 %vm949_vm4, %v1114_v37  ;;  %v1283_v38 = vpop.permute.xlu1 %1282 }
 0x325   : > { %5546 = vmatpush3.xpose.msk.msra.mxu0 %vm949_vm4, %v1283_v38  ;;  %5547 = vmatprep.mubr.msk.f32.mxu0 %vm6290_vm1, %v6289_v0 }
 0x326   : > { %5555 = vmatprep.subr.mxu0 %v6289_v0 }
 0x328   : > { %v1281_v39 = vpop.permute.xlu1 %1280 }
 0x329   : > { %5548 = vmatmul.mubr.msk.f32.vlgmr.msra.gmra.mxu0 %vm949_vm4, %v1281_v39 }
 0x32a   : > { %5557 = vmatprep.mubr.msk.f32.mxu0 %vm6290_vm1, %v6289_v0 }
 0x32c   : > { %v1450_v40 = vpop.permute.xlu1 %1449 }
 0x32d   : > { %5556 = vmatpush3.xpose.msk.msra.mxu0 %vm949_vm4, %v1450_v40 }
 0x32e   : > { %5565 = vmatprep.subr.mxu0 %v6289_v0 }
 0x330   : > { %v1448_v41 = vpop.permute.xlu1 %1447 }
 0x331   : > { %5558 = vmatmul.mubr.msk.f32.vlgmr.msra.gmra.mxu0 %vm949_vm4, %v1448_v41 }
 0x332   : > { %5573 = vmatprep.mubr.msk.f32.mxu0 %vm6290_vm1, %v6289_v0  ;;  %5566 = vmatpush3.msra.mxu0 %v944_v42 }
 0x333   : > { %5567 = vmatprep.subr.mxu0 %v6289_v0 }
 0x3e0   : > { %v1020_v43 = vpop.f32.mrf.mxu1 }
 0x3e1   : > { %v1024_v45 = vmul.f32 0.35355338, %v1020_v43  ;;  %v943_v43 = vld [vmem:[%s7565_s19 + $0x10] sm:$0xff] }
 0x3e2   : > { %v5529_v46 = vpop.f32.mrf.mxu1  ;;  %5568 = vmatpush3.msra.mxu0 %v943_v43  ;;  %v5248_v43 = vld [vmem:[%s7455_s9] ss:$0 sm:$0xff] }
 0x3e3   : > { %v1025_v47 = vadd.f32 %v1024_v45, %v6733_v44  ;;  %v942_v46 = vld [vmem:[%s7565_s19 + $0x8] sm:$0xff]  ;;  %5569 = vmatprep.subr.mxu0 %v6289_v0 }
 0x3e4   : > { %v1187_v48 = vpop.f32.mrf.mxu0  ;;  %5570 = vmatpush3.msra.mxu0 %v942_v46 }
 0x3e5   : > { %v1191_v49 = vmul.f32 0.35355338, %v1187_v48  ;;  %v1026_v50 = vsel %vm949_vm4, %v1025_v47, -inf  ;;  %5571 = vmatprep.subr.mxu0 %v6289_v0  ;;  %v941_v48 = vld [vmem:[%s7565_s19] sm:$0xff] }
 0x3e6   : > { %v5539_v51 = vpop.f32.mrf.mxu0  ;;  %1027 = vmax.xlane.f32.xlu1 %v1026_v50  ;;  %5572 = vmatpush3.msra.mxu0 %v941_v48 }
 0x3e7   : > { %v1192_v52 = vadd.f32 %v1191_v49, %v6733_v44 }
 0x3e9   : > { %v1354_v53 = vpop.f32.mrf.mxu0  ;;  %v1193_v54 = vsel %vm949_vm4, %v1192_v52, -inf }
 0x3ea   : > { %v1358_v55 = vmul.f32 0.35355338, %v1354_v53  ;;  %1194 = vmax.xlane.f32.xlu0 %v1193_v54 }
 0x3eb   : > { %v5549_v56 = vpop.f32.mrf.mxu0 }
 0x3ec   : > { %v1359_v57 = vadd.f32 %v1358_v55, %v6733_v44 }
 0x3ee   : > { %v1360_v58 = vsel %vm949_vm4, %v1359_v57, -inf }
 0x3ef   : > { %1361 = vmax.xlane.f32.xlu1 %v1360_v58 }
 0x3f1   : > { %v1521_v59 = vpop.f32.mrf.mxu0 }
 0x3f2   : > { %v1525_v60 = vmul.f32 0.35355338, %v1521_v59 }
 0x3f3   : > { %v5559_v61 = vpop.f32.mrf.mxu0 }
 0x3f4   : > { %v1526_v62 = vadd.f32 %v1525_v60, %v6733_v44  ;;  %v5246_v61 = vld [vmem:[%s7453_s7] ss:$0 sm:$0xff] }
 0x3f6   : > { %v1527_v63 = vsel %vm949_vm4, %v1526_v62, -inf }
 0x3f7   : > { %1528 = vmax.xlane.f32.xlu0 %v1527_v63 }
 0x400   : > { %1037 = vrot.lane.b32.xlu1 %v6694_v33, %s7495_s1  ;;  %s7498_s1 = smov 16  }
 0x46f   : > { %v1028_v2 = vpop.xlane.xlu1 %1027 }
 0x470   : > { %v1029_v3 = vsub.f32 %v1025_v47, %v1028_v2 }
 0x472   : > { %v1030_v4 = vmul.f32 1.442695, %v1029_v3 }
 0x473   : > { %v1195_v5 = vpop.xlane.xlu0 %1194 }
 0x474   : > { %5980 = vpow2.f32 %v1030_v4  ;;  %v1196_v6 = vsub.f32 %v1192_v52, %v1195_v5 }
 0x476   : > { %v1197_v7 = vmul.f32 1.442695, %v1196_v6 }
 0x478   : > { %5982 = vpow2.f32 %v1197_v7  ;;  %v1362_v8 = vpop.xlane.xlu1 %1361 }
 0x479   : > { %v1363_v9 = vsub.f32 %v1359_v57, %v1362_v8 }
 0x47b   : > { %v1364_v10 = vmul.f32 1.442695, %v1363_v9 }
 0x47c   : > { %v1038_v11 = vpop.permute.xlu1 %1037 }
 0x47d   : > { %5984 = vpow2.f32 %v1364_v10  ;;  %5531 = vmatpush3.msra.mxu1 %v1038_v11  ;;  %v1828_v10 = vld [vmem:[#allocation7 + $0x18] sm:$0xff]  ;;  %v1827_v11 = vld [vmem:[#allocation7 + $0x10] sm:$0xff] }
 0x47e   : > { %5540 = vmatprep.subr.mxu1 %v6289_v0  ;;  %5587 = vmatprep.subr.mxu0 %v1828_v10 }
 0x480   : > { %v1529_v12 = vpop.xlane.xlu0 %1528 }
 0x481   : > { %v5981_v13 = vpop.eup %5980  ;;  %v1530_v14 = vsub.f32 %v1526_v62, %v1529_v12  ;;  %v1826_v12 = vld [vmem:[#allocation7 + $0x8] sm:$0xff] }
 0x482   : > { %v1032_v15 = vsel %vm949_vm4, %v5981_v13, 0.0 }
 0x483   : > { %v1531_v16 = vmul.f32 1.442695, %v1530_v14  ;;  %1033 = vadd.xlane.f32.xlu1 %v1032_v15  ;;  %v1743_v14 = vld [vmem:[%s7454_s8 + $0x10] sm:$0xff] }
 0x484   : > { %v1825_v15 = vld [vmem:[#allocation7] sm:$0xff] }
 0x485   : > { %v5983_v17 = vpop.eup %5982  ;;  %5986 = vpow2.f32 %v1531_v16  ;;  %v1742_v16 = vld [vmem:[%s7454_s8 + $0x8] sm:$0xff] }
 0x486   : > { %v1199_v18 = vsel %vm949_vm4, %v5983_v17, 0.0 }
 0x487   : > { %1200 = vadd.xlane.f32.xlu0 %v1199_v18  ;;  %v1741_v18 = vld [vmem:[%s7454_s8] sm:$0xff] }
 0x48a   : > { %v5985_v19 = vpop.eup %5984 }
 0x48b   : > { %v1366_v20 = vsel %vm949_vm4, %v5985_v19, 0.0 }
 0x48c   : > { %1367 = vadd.xlane.f32.xlu1 %v1366_v20 }
 0x492   : > { %v5987_v24 = vpop.eup %5986 }
 0x493   : > { %v1533_v26 = vsel %vm949_vm4, %v5987_v24, 0.0 }
 0x494   : > { %1534 = vadd.xlane.f32.xlu0 %v1533_v26 }
 0x49d   : > { %1371 = vrot.lane.b32.xlu1 %v6694_v33, %s7494_s10  ;;  %s7496_s10 = smov 24  }
 0x4a1   : > { %1538 = vrot.lane.b32.xlu1 %v6694_v33, %s7493_s26  ;;  %s7500_s26 = smov 8  }
 0x4aa   : > { %1204 = vrot.lane.b32.xlu0 %v6694_v33, %s7492_s3  ;;  %s7577_s3 = smov 104  }
 0x50c   : > { %v1034_v27 = vpop.xlane.xlu1 %1033 }
 0x50d   : > { %5988 = vrcp.f32 %v1034_v27 }
 0x510   : > { %v1201_v28 = vpop.xlane.xlu0 %1200 }
 0x511   : > { %5990 = vrcp.f32 %v1201_v28 }
 0x515   : > { %v1368_v29 = vpop.xlane.xlu1 %1367 }
 0x516   : > { %5992 = vrcp.f32 %v1368_v29 }
 0x519   : > { %v1372_v35 = vpop.permute.xlu1 %1371 }
 0x51a   : > { %v5989_v30 = vpop.eup %5988 }
 0x51b   : > { %v1036_v31 = vmul.f32 %v5989_v30, %v5981_v13  ;;  %v1744_v13 = vld [vmem:[%s7454_s8 + $0x18] sm:$0xff] }
 0x51d   : > { %v1535_v32 = vpop.xlane.xlu0 %1534  ;;  %5533 = vmatmul.mubr.msk.f32.vlgmr.msra.gmra.mxu1 %vm949_vm4, %v1036_v31  ;;  %v1539_v39 = vpop.permute.xlu1 %1538  ;;  %v6827_v31 = vsub.s32 1, %v6669_v21 }
 0x51e   : > { %v5991_v34 = vpop.eup %5990  ;;  %5994 = vrcp.f32 %v1535_v32  ;;  %5542 = vmatprep.mubr.msk.f32.mxu1 %vm6290_vm1, %v6289_v0 }
 0x51f   : > { %v1203_v37 = vmul.f32 %v5991_v34, %v5983_v17  ;;  %v815_v17 = vld [vmem:[%s6609_s27 + $0x8] sm:$0xff]  ;;  %v1731_v32 = vrot.slane %v6677_v23, %v6827_v31 }
 0x521   : > { %v1205_v36 = vpop.permute.xlu0 %1204 }
 0x522   : > { %5541 = vmatpush3.msra.mxu1 %v1205_v36 }
 0x523   : > { %v5993_v33 = vpop.eup %5992  ;;  %5543 = vmatmul.mubr.msk.f32.vlgmr.msra.gmra.mxu1 %vm949_vm4, %v1203_v37  ;;  %5550 = vmatprep.subr.mxu1 %v6289_v0 }
 0x524   : > { %5551 = vmatpush3.msra.mxu1 %v1372_v35  ;;  %5552 = vmatprep.mubr.msk.f32.mxu1 %vm6290_vm1, %v6289_v0  ;;  %v1370_v38 = vmul.f32 %v5993_v33, %v5985_v19  ;;  %v1739_v35 = vrot.slane %v6684_v25, %v6827_v31 }
 0x525   : > { %5560 = vmatprep.subr.mxu1 %v6289_v0 }
 0x527   : > { %5553 = vmatmul.mubr.msk.f32.vlgmr.msra.gmra.mxu1 %vm949_vm4, %v1370_v38  ;;  %v5250_v38 = vld [vmem:[%s7457_s11] ss:$0 sm:$0xff] }
 0x528   : > { %5561 = vmatpush3.msra.mxu1 %v1539_v39  ;;  %5562 = vmatprep.mubr.msk.f32.mxu1 %vm6290_vm1, %v6289_v0 }
 0x529   : > { %5576 = vmatprep.subr.mxu1 %v6289_v0 }
 0x52b   : > { %v5995_v40 = vpop.eup %5994 }
 0x52c   : > { %v1537_v41 = vmul.f32 %v5995_v40, %v5987_v24 }
 0x52e   : > { %5563 = vmatmul.mubr.msk.f32.vlgmr.msra.gmra.mxu1 %vm949_vm4, %v1537_v41 }
 0x52f   : > { %5584 = vmatprep.mubr.msk.f32.mxu1 %vm6290_vm1, %v6289_v0  ;;  %5577 = vmatpush3.msra.mxu1 %v1744_v13 }
 0x530   : > { %5578 = vmatprep.subr.mxu1 %v6289_v0 }
 0x531   : > { %5579 = vmatpush3.msra.mxu1 %v1743_v14 }
 0x532   : > { %5580 = vmatprep.subr.mxu1 %v6289_v0 }
 0x533   : > { %5581 = vmatpush3.msra.mxu1 %v1742_v16 }
 0x534   : > { %5582 = vmatprep.subr.mxu1 %v6289_v0 }
 0x535   : > { %5583 = vmatpush3.msra.mxu1 %v1741_v18 }
 0x536   : > { %5598 = vmatprep.subr.mxu1 %v6289_v0 }
 0x5dd   : > { %v1109_v45 = vpop.f32.mrf.mxu1 }
 0x5df   : > { %v5534_v47 = vpop.f32.mrf.mxu1 }
 0x5e3   : > { %v1276_v49 = vpop.f32.mrf.mxu1 }
 0x5e4   : > { %1615 = vrot.lane.b32.xlu0 %v1276_v49, %s7500_s26  ;;  %s7566_s26 = sld [smem:[#allocation25_spill]] }
 0x5e5   : > { %v5544_v50 = vpop.f32.mrf.mxu1 }
 0x5e7   : > { %v1443_v51 = vpop.f32.mrf.mxu1 }
 0x5e8   : > { %1619 = vrot.lane.b32.xlu1 %v1443_v51, %s7498_s1 }
 0x5e9   : > { %v5554_v52 = vpop.f32.mrf.mxu1 }
 0x5ea   : > { %s812_s1 = scalar_lea.vmem %s7566_s26, %s6637_s23  ;;  %s7567_s23 = smov 8  }
 0x5eb   : > { %v819_v51 = vld [vmem:[%s812_s1] sm:$0x1]  ;;  %s7578_s26 = smov 64   ;;  %s7579_s1 = smov 48  }
 0x5ec   : > { %vm820_vm10 = vcmp.eq.f32.partialorder %v819_v51, 0.0 }
 0x5ed   : > { %v821_v52 = vsel %vm820_vm10, -1e+09, %v6289_v0 }
 0x5ee   : > { %v1610_v53 = vpop.f32.mrf.mxu1 }
 0x5ef   : > { %1623 = vrot.lane.b32.xlu0 %v1610_v53, %s7496_s10  ;;  %v6877_v53 = vrot.slane %v821_v52, %v6672_v22  ;;  %s7568_s10 = smov 16  }
 0x5f0   : > { %v5564_v54 = vpop.f32.mrf.mxu1 }
 0x656   : > { %v1616_v55 = vpop.permute.xlu0 %1615 }
 0x657   : > { %v1626_v57 = vsel %vm949_vm4, %v1109_v45, %v1616_v55 }
 0x65a   : > { %v1620_v56 = vpop.permute.xlu1 %1619 }
 0x65b   : > { %v1628_v58 = vsel %vm1627_vm6, %v1626_v57, %v1620_v56 }
 0x661   : > { %v1624_v59 = vpop.permute.xlu0 %1623 }
 0x662   : > { %v1630_v60 = vsel %vm1629_vm7, %v1628_v58, %v1624_v59 }
 0x663   : > { %5574 = vmatmul.mubr.msk.f32.vlgmr.msra.gmra.mxu0 %vm824_vm0, %v1630_v60 }
 0x664   : > { %5588 = vmatpush3.msra.mxu0 %v1828_v10 }
 0x665   : > { %5589 = vmatprep.subr.mxu0 %v1827_v11 }
 0x666   : > { %5590 = vmatpush3.msra.mxu0 %v1827_v11 }
 0x667   : > { %5591 = vmatprep.subr.mxu0 %v1826_v12 }
 0x668   : > { %5592 = vmatpush3.msra.mxu0 %v1826_v12 }
 0x669   : > { %5593 = vmatprep.subr.mxu0 %v1825_v15 }
 0x66a   : > { %5594 = vmatpush3.msra.mxu0 %v1825_v15 }
 0x66b   : > { %5605 = vmatprep.subr.mxu0 %v6289_v0 }
 0x723   : > { %v1706_v62 = vpop.f32.mrf.mxu0 }
 0x724   : > { %v1707_v63 = vadd.f32 %v5246_v61, %v1706_v62 }
 0x725   : > { %v5575_v2 = vpop.f32.mrf.mxu0 }
 0x726   : > { %v6797_v3 = vadd.f32 %v1707_v63, %v6643_v1  ;;  %v814_v1 = vld [vmem:[%s6609_s27] sm:$0xff] }
 0x727   : > { %5595 = vmatprep.mubr.msk.f32.mxu0 %vm824_vm0, %v814_v1 }
 0x728   : > { %v1711_v4 = vsel %vm824_vm0, %v6797_v3, 0.0  ;;  %5596 = vmatmul.mubr.msk.f32.vlgmr.msra.gmra.mxu0 %vm824_vm0, %v815_v17 }
 0x729   : > { %1712 = vadd.xlane.f32.xlu1 %v1711_v4  ;;  %5609 = vmatprep.mubr.msk.f32.mxu0 %vm6290_vm1, %v6289_v0 }
 0x7b2   : > { %v1713_v5 = vpop.xlane.xlu1 %1712 }
 0x7b3   : > { %v1714_v6 = vmul.f32 0.03125, %v1713_v5 }
 0x7b5   : > { %v1715_v7 = vsub.f32 %v6797_v3, %v1714_v6 }
 0x7b7   : > { %v1716_v8 = vmul.f32 %v1715_v7, %v1715_v7  ;;  %v1732_v34 = vmul.f32 %v1731_v32, %v1715_v7 }
 0x7b9   : > { %v1717_v9 = vsel %vm824_vm0, %v1716_v8, 0.0 }
 0x7ba   : > { %1718 = vadd.xlane.f32.xlu0 %v1717_v9 }
 0x7e8   : > { %v5597_v39 = vpop.f32.mrf.mxu0 }
 0x7e9   : > { %v6839_v40 = vadd.f32 %v5597_v39, %v5250_v38 }
 0x7ea   : > { %v1908_v41 = vpop.f32.mrf.mxu0 }
 0x7eb   : > { %2103 = vrot.lane.b32.xlu0 %v6839_v40, %s7510_s22  ;;  %v6845_v42 = vadd.f32 %v5250_v38, %v1908_v41 }
 0x7ed   : > { %2101 = vrot.lane.b32.xlu1 %v6845_v42, %s7510_s22 }
 0x843   : > { %v1719_v19 = vpop.xlane.xlu0 %1718 }
 0x844   : > { %v1720_v20 = vmul.f32 0.032258064, %v1719_v19 }
 0x846   : > { %5996 = vrsqrt.f32 %v1720_v20  ;;  %vm1723_vm8 = vcmp.eq.f32.partialorder %v1720_v20, inf  ;;  %v1726_v27 = vand.u32 2147483648, %v1720_v20  ;;  %vm1725_vm9 = vcmp.eq.f32.partialorder %v1720_v20, 0.0 }
 0x853   : > { %v5997_v24 = vpop.eup %5996 }
 0x854   : > { %v1722_v26 = vmul.f32 %v5997_v24, %v1720_v20 }
 0x856   : > { %v1724_v28 = vsel %vm1723_vm8, %v1720_v20, %v1722_v26 }
 0x857   : > { %v1727_v29 = vsel %vm1725_vm9, %v1726_v27, %v1724_v28 }
 0x858   : > { %v1733_v30 = vadd.f32 1e-06, %v1727_v29 }
 0x85a   : > { %5998 = vrcp.f32 %v1733_v30 }
 0x85d   : > { %v2104_v47 = vpop.permute.xlu0 %2103 }
 0x85f   : > { %v2102_v49 = vpop.permute.xlu1 %2101 }
 0x867   : > { %v5999_v36 = vpop.eup %5998 }
 0x868   : > { %v1735_v37 = vmul.f32 %v5999_v36, %v1732_v34 }
 0x86a   : > { %v1740_v33 = vadd.f32 %v1739_v35, %v1735_v37 }
 0x86c   : > { %5585 = vmatmul.mubr.msk.f32.vlgmr.msra.gmra.mxu1 %vm824_vm0, %v1740_v33 }
 0x86d   : > { %5602 = vmatprep.mubr.msk.f32.mxu1 %vm6290_vm1, %v6289_v0  ;;  %5599 = vmatpush3.xpose.msk.msra.mxu1 %vm949_vm4, %v6839_v40 }
 0x86e   : > { %5600 = vmatprep.subr.mxu1 %v6289_v0 }
 0x871   : > { %5601 = vmatpush3.xpose.msk.msra.mxu1 %vm949_vm4, %v6845_v42 }
 0x872   : > { %5612 = vmatprep.subr.mxu1 %v6289_v0 }
 0x92c   : > { %v1821_v45 = vpop.f32.mrf.mxu1 }
 0x92d   : > { %v6856_v46 = vadd.f32 %v5248_v43, %v1821_v45 }
 0x92e   : > { %v5586_v48 = vpop.f32.mrf.mxu1 }
 0x92f   : > { %2099 = vrot.lane.b32.xlu1 %v6856_v46, %s7510_s22  ;;  %5603 = vmatmul.mubr.msk.f32.vlgmr.msra.gmra.mxu1 %vm949_vm4, %v6856_v46  ;;  %s7574_s22 = smov 80  }
 0x930   : > { %5613 = vmatpush3.xpose.msk.msra.mxu1 %vm949_vm4, %v2104_v47  ;;  %5616 = vmatprep.mubr.msk.f32.mxu1 %vm6290_vm1, %v6289_v0 }
 0x931   : > { %5614 = vmatprep.subr.mxu1 %v6289_v0 }
 0x934   : > { %5615 = vmatpush3.xpose.msk.msra.mxu1 %vm949_vm4, %v2102_v49 }
 0x935   : > { %5633 = vmatprep.subr.mxu1 %v6289_v0 }
 0x9a1   : > { %v2100_v50 = vpop.permute.xlu1 %2099 }
 0x9a2   : > { %5617 = vmatmul.mubr.msk.f32.vlgmr.msra.gmra.mxu1 %vm949_vm4, %v2100_v50 }
 0x9a3   : > { %5637 = vmatprep.mubr.msk.f32.mxu1 %vm6290_vm1, %v6289_v0 }
 0x9ef   : > { %v1997_v54 = vpop.f32.mrf.mxu1 }
 0x9f0   : > { %v2001_v55 = vmul.f32 0.35355338, %v1997_v54 }
 0x9f1   : > { %v5604_v56 = vpop.f32.mrf.mxu1 }
 0x9f2   : > { %v2008_v57 = vadd.f32 %v6877_v53, %v2001_v55 }
 0x9f4   : > { %v2009_v58 = vsel %vm1627_vm6, %v2008_v57, -inf }
 0x9f5   : > { %2010 = vmax.xlane.f32.xlu0 %v2009_v58 }
 0xa0b   : > { %2020 = vrot.lane.b32.xlu0 %v6845_v42, %s7512_s2 }
 0xa62   : > { %v2177_v59 = vpop.f32.mrf.mxu1 }
 0xa63   : > { %v2181_v60 = vmul.f32 0.35355338, %v2177_v59 }
 0xa64   : > { %v5618_v61 = vpop.f32.mrf.mxu1 }
 0xa65   : > { %v2182_v62 = vadd.f32 %v2181_v60, %v6877_v53 }
 0xa67   : > { %v2183_v63 = vsel %vm1627_vm6, %v2182_v62, -inf }
 0xa68   : > { %2184 = vmax.xlane.f32.xlu1 %v2183_v63 }
 0xa79   : > { %2022 = vrot.lane.b32.xlu1 %v6839_v40, %s7512_s2  ;;  %s7575_s2 = smov 112  }
 0xa7d   : > { %2196 = vrot.lane.b32.xlu1 %v6839_v40, %s7514_s24 }
 0xa7e   : > { %v2011_v2 = vpop.xlane.xlu0 %2010 }
 0xa7f   : > { %v2012_v4 = vsub.f32 %v2008_v57, %v2011_v2 }
 0xa81   : > { %v2013_v5 = vmul.f32 1.442695, %v2012_v4  ;;  %2194 = vrot.lane.b32.xlu1 %v6845_v42, %s7514_s24 }
 0xa82   : > { %v2021_v12 = vpop.permute.xlu0 %2020 }
 0xa83   : > { %6000 = vpow2.f32 %v2013_v5 }
 0xa85   : > { %2275 = vrot.lane.b32.xlu1 %v6845_v42, %s7506_s12 }
 0xa90   : > { %v6001_v6 = vpop.eup %6000 }
 0xa91   : > { %v2015_v7 = vsel %vm1627_vm6, %v6001_v6, 0.0 }
 0xa92   : > { %2016 = vadd.xlane.f32.xlu0 %v2015_v7 }
 0xaf1   : > { %v2185_v8 = vpop.xlane.xlu1 %2184 }
 0xaf2   : > { %v2186_v9 = vsub.f32 %v2182_v62, %v2185_v8 }
 0xaf4   : > { %v2187_v10 = vmul.f32 1.442695, %v2186_v9 }
 0xaf5   : > { %v2023_v11 = vpop.permute.xlu1 %2022 }
 0xaf6   : > { %6002 = vpow2.f32 %v2187_v10  ;;  %5606 = vmatpush3.msra.mxu0 %v2023_v11  ;;  %v1920_v11 = vld [vmem:[#allocation8 + $0x18] sm:$0xff] }
 0xaf7   : > { %5607 = vmatprep.subr.mxu0 %v6289_v0 }
 0xaf8   : > { %5608 = vmatpush3.msra.mxu0 %v2021_v12  ;;  %v1919_v12 = vld [vmem:[#allocation8 + $0x10] sm:$0xff] }
 0xaf9   : > { %5619 = vmatprep.subr.mxu0 %v6289_v0  ;;  %v2197_v15 = vpop.permute.xlu1 %2196 }
 0xafd   : > { %v2195_v18 = vpop.permute.xlu1 %2194 }
 0xb01   : > { %v2276_v27 = vpop.permute.xlu1 %2275 }
 0xb03   : > { %v6003_v1 = vpop.eup %6002 }
 0xb04   : > { %v2189_v13 = vsel %vm1627_vm6, %v6003_v1, 0.0 }
 0xb05   : > { %2190 = vadd.xlane.f32.xlu0 %v2189_v13 }
 0xb1b   : > { %v2017_v14 = vpop.xlane.xlu0 %2016  ;;  %2277 = vrot.lane.b32.xlu0 %v6839_v40, %s7506_s12 }
 0xb1c   : > { %6004 = vrcp.f32 %v2017_v14 }
 0xb1f   : > { %2273 = vrot.lane.b32.xlu0 %v6856_v46, %s7506_s12  ;;  %s7572_s12 = smov 96  }
 0xb29   : > { %v6005_v16 = vpop.eup %6004 }
 0xb2a   : > { %v2019_v17 = vmul.f32 %v6005_v16, %v6001_v6 }
 0xb2c   : > { %5610 = vmatmul.mubr.msk.f32.vlgmr.msra.gmra.mxu0 %vm1627_vm6, %v2019_v17 }
 0xb2d   : > { %5620 = vmatpush3.msra.mxu0 %v2197_v15  ;;  %5623 = vmatprep.mubr.msk.f32.mxu0 %vm6290_vm1, %v6289_v0 }
 0xb2e   : > { %5621 = vmatprep.subr.mxu0 %v6289_v0 }
 0xb2f   : > { %5622 = vmatpush3.msra.mxu0 %v2195_v18 }
 0xb30   : > { %5626 = vmatprep.subr.mxu0 %v6289_v0 }
 0xb8e   : > { %v2191_v19 = vpop.xlane.xlu0 %2190 }
 0xb8f   : > { %6006 = vrcp.f32 %v2191_v19 }
 0xb92   : > { %v2278_v26 = vpop.permute.xlu0 %2277 }
 0xb96   : > { %v2274_v28 = vpop.permute.xlu0 %2273 }
 0xb9c   : > { %v6007_v20 = vpop.eup %6006 }
 0xb9d   : > { %v2193_v24 = vmul.f32 %v6007_v20, %v6003_v1  ;;  %v1917_v1 = vld [vmem:[#allocation8] sm:$0xff] }
 0xb9f   : > { %5624 = vmatmul.mubr.msk.f32.vlgmr.msra.gmra.mxu0 %vm1627_vm6, %v2193_v24  ;;  %v5269_v24 = vld [vmem:[%s7459_s13] ss:$0 sm:$0xff] }
 0xba0   : > { %5627 = vmatpush3.xpose.msk.msra.mxu0 %vm949_vm4, %v2278_v26  ;;  %5630 = vmatprep.mubr.msk.f32.mxu0 %vm6290_vm1, %v6289_v0 }
 0xba1   : > { %5628 = vmatprep.subr.mxu0 %v6289_v0 }
 0xba4   : > { %5629 = vmatpush3.xpose.msk.msra.mxu0 %vm949_vm4, %v2276_v27 }
 0xba5   : > { %5647 = vmatprep.subr.mxu0 %v6289_v0 }
 0xba7   : > { %5631 = vmatmul.mubr.msk.f32.vlgmr.msra.gmra.mxu0 %vm949_vm4, %v2274_v28 }
 0xba8   : > { %5651 = vmatprep.mubr.msk.f32.mxu0 %vm6290_vm1, %v6289_v0 }
 0xbec   : > { %v6916_v29 = vpop.f32.mrf.mxu0 }
 0xbee   : > { %v5611_v30 = vpop.f32.mrf.mxu0 }
 0xc5f   : > { %v2269_v32 = vpop.f32.mrf.mxu0 }
 0xc61   : > { %v5625_v34 = vpop.f32.mrf.mxu0 }
 0xc67   : > { %v2351_v35 = vpop.f32.mrf.mxu0 }
 0xc68   : > { %v2355_v36 = vmul.f32 0.35355338, %v2351_v35 }
 0xc69   : > { %v5632_v37 = vpop.f32.mrf.mxu0 }
 0xc6a   : > { %v2356_v33 = vadd.f32 %v2355_v36, %v6877_v53 }
 0xc6c   : > { %v2357_v38 = vsel %vm1627_vm6, %v2356_v33, -inf }
 0xc6d   : > { %2358 = vmax.xlane.f32.xlu1 %v2357_v38  ;;  %v2748_v38 = vld [vmem:[#allocation10 + $0x10] sm:$0xff] }
 0xc7e   : > { %2368 = vrot.lane.b32.xlu1 %v6845_v42, %s7508_s16 }
 0xc82   : > { %2451 = vrot.lane.b32.xlu1 %v6839_v40, %s7502_s25 }
 0xc86   : > { %2447 = vrot.lane.b32.xlu1 %v6856_v46, %s7502_s25 }
 0xcf6   : > { %v2359_v39 = vpop.xlane.xlu1 %2358 }
 0xcf7   : > { %v2360_v41 = vsub.f32 %v2356_v33, %v2359_v39  ;;  %v2749_v33 = vld [vmem:[#allocation10 + $0x18] sm:$0xff]  ;;  %v2747_v39 = vld [vmem:[#allocation10 + $0x8] sm:$0xff] }
 0xcf9   : > { %v2361_v43 = vmul.f32 1.442695, %v2360_v41  ;;  %v2838_v41 = vld [vmem:[%s7464_s18 + $0x38] sm:$0xff] }
 0xcfa   : > { %v2369_v50 = vpop.permute.xlu1 %2368 }
 0xcfb   : > { %6008 = vpow2.f32 %v2361_v43  ;;  %v2837_v43 = vld [vmem:[%s7464_s18 + $0x30] sm:$0xff] }
 0xcfe   : > { %v2452_v52 = vpop.permute.xlu1 %2451 }
 0xd02   : > { %v2448_v55 = vpop.permute.xlu1 %2447 }
 0xd08   : > { %v6009_v45 = vpop.eup %6008 }
 0xd09   : > { %v2363_v47 = vsel %vm1627_vm6, %v6009_v45, 0.0 }
 0xd0a   : > { %2364 = vadd.xlane.f32.xlu0 %v2363_v47  ;;  %v2835_v47 = vld [vmem:[%s7464_s18 + $0x20] sm:$0xff] }
 0xd20   : > { %2370 = vrot.lane.b32.xlu0 %v6839_v40, %s7508_s16  ;;  %s7570_s16 = sld [smem:[#allocation34_spill]] }
 0xd24   : > { %2449 = vrot.lane.b32.xlu0 %v6845_v42, %s7502_s25  ;;  %s7571_s25 = sld [smem:[#allocation35_spill]] }
 0xd93   : > { %v2365_v48 = vpop.xlane.xlu0 %2364 }
 0xd94   : > { %6010 = vrcp.f32 %v2365_v48  ;;  %v2834_v48 = vld [vmem:[%s7464_s18 + $0x18] sm:$0xff] }
 0xd97   : > { %v2371_v49 = vpop.permute.xlu0 %2370 }
 0xd98   : > { %5634 = vmatpush3.msra.mxu1 %v2371_v49 }
 0xd99   : > { %5635 = vmatprep.subr.mxu1 %v6289_v0 }
 0xd9a   : > { %5636 = vmatpush3.msra.mxu1 %v2369_v50 }
 0xd9b   : > { %5640 = vmatprep.subr.mxu1 %v6289_v0  ;;  %v2450_v54 = vpop.permute.xlu0 %2449 }
 0xda1   : > { %v6011_v46 = vpop.eup %6010 }
 0xda2   : > { %v2367_v51 = vmul.f32 %v6011_v46, %v6009_v45  ;;  %v2836_v45 = vld [vmem:[%s7464_s18 + $0x28] sm:$0xff] }
 0xda4   : > { %5638 = vmatmul.mubr.msk.f32.vlgmr.msra.gmra.mxu1 %vm1627_vm6, %v2367_v51 }
 0xda5   : > { %5641 = vmatpush3.xpose.msk.msra.mxu1 %vm949_vm4, %v2452_v52  ;;  %5644 = vmatprep.mubr.msk.f32.mxu1 %vm6290_vm1, %v6289_v0 }
 0xda6   : > { %5642 = vmatprep.subr.mxu1 %v6289_v0 }
 0xda9   : > { %5643 = vmatpush3.xpose.msk.msra.mxu1 %vm949_vm4, %v2450_v54 }
 0xdaa   : > { %5665 = vmatprep.subr.mxu1 %v6289_v0 }
 0xdac   : > { %5645 = vmatmul.mubr.msk.f32.vlgmr.msra.gmra.mxu1 %vm949_vm4, %v2448_v55 }
 0xdad   : > { %5673 = vmatprep.mubr.msk.f32.mxu1 %vm6290_vm1, %v6289_v0  ;;  %5666 = vmatpush3.msra.mxu1 %v2749_v33 }
 0xdae   : > { %5667 = vmatprep.subr.mxu1 %v6289_v0 }
 0xdaf   : > { %5668 = vmatpush3.msra.mxu1 %v2748_v38 }
 0xdb0   : > { %5669 = vmatprep.subr.mxu1 %v6289_v0 }
 0xdb1   : > { %5670 = vmatpush3.msra.mxu1 %v2747_v39 }
 0xdb2   : > { %5671 = vmatprep.subr.mxu1 %v6289_v0 }
 0xe64   : > { %v2443_v56 = vpop.f32.mrf.mxu1 }
 0xe66   : > { %v5639_v57 = vpop.f32.mrf.mxu1 }
 0xe67   : > { %v7004_v57 = vsub.s32 2, %v6669_v21  ;;  %v2833_v21 = vld [vmem:[%s7464_s18 + $0x10] sm:$0xff] }
 0xe6c   : > { %v2525_v58 = vpop.f32.mrf.mxu1 }
 0xe6d   : > { %v2529_v59 = vmul.f32 0.35355338, %v2525_v58  ;;  %v2736_v58 = vrot.slane %v6677_v23, %v7004_v57  ;;  %v2832_v23 = vld [vmem:[%s7464_s18 + $0x8] sm:$0xff] }
 0xe6e   : > { %v5646_v60 = vpop.f32.mrf.mxu1 }
 0xe6f   : > { %v2530_v61 = vadd.f32 %v2529_v59, %v6877_v53  ;;  %v2744_v60 = vrot.slane %v6684_v25, %v7004_v57  ;;  %v2831_v25 = vld [vmem:[%s7464_s18] sm:$0xff] }
 0xe71   : > { %v2531_v62 = vsel %vm1627_vm6, %v2530_v61, -inf }
 0xe72   : > { %2532 = vmax.xlane.f32.xlu0 %v2531_v62 }
 0xe88   : > { %2544 = vrot.lane.b32.xlu0 %v6839_v40, %s7504_s5 }
 0xe8c   : > { %2622 = vrot.lane.b32.xlu0 %v2269_v32, %s7567_s23 }
 0xefb   : > { %v2533_v63 = vpop.xlane.xlu0 %2532 }
 0xefc   : > { %v2534_v2 = vsub.f32 %v2530_v61, %v2533_v63 }
 0xefe   : > { %v2535_v4 = vmul.f32 1.442695, %v2534_v2  ;;  %v5271_v2 = vld [vmem:[%s7570_s16] ss:$0 sm:$0xff] }
 0xeff   : > { %v2545_v5 = vpop.permute.xlu0 %2544 }
 0xf00   : > { %6012 = vpow2.f32 %v2535_v4  ;;  %5648 = vmatpush3.msra.mxu0 %v2545_v5 }
 0xf01   : > { %5649 = vmatprep.subr.mxu0 %v6289_v0 }
 0xf03   : > { %v2623_v15 = vpop.permute.xlu0 %2622 }
 0xf04   : > { %v2633_v17 = vsel %vm949_vm4, %v6916_v29, %v2623_v15 }
 0xf0d   : > { %v6013_v6 = vpop.eup %6012 }
 0xf0e   : > { %v2537_v7 = vsel %vm1627_vm6, %v6013_v6, 0.0 }
 0xf0f   : > { %2538 = vadd.xlane.f32.xlu1 %v2537_v7 }
 0xf20   : > { %2542 = vrot.lane.b32.xlu1 %v6845_v42, %s7504_s5  ;;  %v1918_v42 = vld [vmem:[#allocation8 + $0x8] sm:$0xff]  ;;  %s7573_s5 = smov 120  }
 0xf24   : > { %2626 = vrot.lane.b32.xlu1 %v2443_v56, %s7568_s10 }
 0xf98   : > { %v2539_v40 = vpop.xlane.xlu1 %2538 }
 0xf99   : > { %6014 = vrcp.f32 %v2539_v40 }
 0xf9c   : > { %v2543_v8 = vpop.permute.xlu1 %2542 }
 0xf9d   : > { %5650 = vmatpush3.msra.mxu0 %v2543_v8  ;;  %v5274_v8 = vld [vmem:[%s7571_s25] ss:$0 sm:$0xff] }
 0xf9e   : > { %5654 = vmatprep.subr.mxu0 %v6289_v0 }
 0xfa0   : > { %v2627_v16 = vpop.permute.xlu1 %2626 }
 0xfa1   : > { %v2634_v18 = vsel %vm1627_vm6, %v2633_v17, %v2627_v16  ;;  %v5280_v16 = vld [vmem:[%s7562_s20 + $0x38] sm:$0xff]  ;;  %v5279_v17 = vld [vmem:[%s7562_s20 + $0x30] sm:$0xff] }
 0xfa6   : > { %v6015_v9 = vpop.eup %6014 }
 0xfa7   : > { %v2541_v10 = vmul.f32 %v6015_v9, %v6013_v6 }
 0xfa9   : > { %5652 = vmatmul.mubr.msk.f32.vlgmr.msra.gmra.mxu0 %vm1627_vm6, %v2541_v10 }
 0xfaa   : > { %5662 = vmatprep.mubr.msk.f32.mxu0 %vm6290_vm1, %v6289_v0  ;;  %5655 = vmatpush3.msra.mxu0 %v1920_v11 }
 0xfab   : > { %5656 = vmatprep.subr.mxu0 %v6289_v0 }
 0xfac   : > { %5657 = vmatpush3.msra.mxu0 %v1919_v12 }
 0xfad   : > { %5658 = vmatprep.subr.mxu0 %v6289_v0 }
 0xfae   : > { %5659 = vmatpush3.msra.mxu0 %v1918_v42 }
 0xfaf   : > { %5660 = vmatprep.subr.mxu0 %v6289_v0 }
 0xfb0   : > { %5661 = vmatpush3.msra.mxu0 %v1917_v1 }
 0xfb1   : > { %5676 = vmatprep.subr.mxu0 %v6289_v0 }
0x1069   : > { %v2617_v13 = vpop.f32.mrf.mxu0 }
0x106a   : > { %2630 = vrot.lane.b32.xlu0 %v2617_v13, %s7569_s29 }
0x106b   : > { %v5653_v14 = vpop.f32.mrf.mxu0 }
0x10dc   : > { %v2631_v19 = vpop.permute.xlu0 %2630 }
0x10dd   : > { %v2635_v20 = vsel %vm1629_vm7, %v2634_v18, %v2631_v19  ;;  %v5278_v18 = vld [vmem:[%s7562_s20 + $0x28] sm:$0xff]  ;;  %v5277_v19 = vld [vmem:[%s7562_s20 + $0x20] sm:$0xff] }
0x10de   : > { %5663 = vmatmul.mubr.msk.f32.vlgmr.msra.gmra.mxu0 %vm824_vm0, %v2635_v20 }
0x10df   : > { %5692 = vmatprep.mubr.msk.f32.mxu0 %vm6290_vm1, %v6289_v0  ;;  %5677 = vmatpush3.msra.mxu0 %v2838_v41  ;;  %v5282_v41 = vld [vmem:[%s7564_s6 + $0x1] ss:$0 sm:$0xff]  ;;  %s7584_s6 = sld [smem:[#allocation22_spill]] }
0x10e0   : > { %5678 = vmatprep.subr.mxu0 %v6289_v0 }
0x10e1   : > { %5679 = vmatpush3.msra.mxu0 %v2837_v43 }
0x10e2   : > { %5680 = vmatprep.subr.mxu0 %v6289_v0 }
0x10e3   : > { %5681 = vmatpush3.msra.mxu0 %v2836_v45 }
0x10e4   : > { %5682 = vmatprep.subr.mxu0 %v6289_v0 }
0x10e5   : > { %5683 = vmatpush3.msra.mxu0 %v2835_v47  ;;  %p7588_p0 = scmp.ne.s32.totalorder %s7584_s6, 0 }
0x10e6   : > { %5684 = vmatprep.subr.mxu0 %v6289_v0 }
0x10e7   : > { %5685 = vmatpush3.msra.mxu0 %v2834_v48 }
0x10e8   : > { %5686 = vmatprep.subr.mxu0 %v6289_v0 }
0x10e9   : > { %5687 = vmatpush3.msra.mxu0 %v2833_v21 }
0x10ea   : > { %5688 = vmatprep.subr.mxu0 %v6289_v0 }
0x10eb   : > { %5689 = vmatpush3.msra.mxu0 %v2832_v23 }
0x10ec   : > { %5690 = vmatprep.subr.mxu0 %v6289_v0 }
0x10ed   : > { %5691 = vmatpush3.msra.mxu0 %v2831_v25 }
0x10ee   : > { %5716 = vmatprep.subr.mxu0 %v6289_v0 }
0x119e   : > { %v2711_v26 = vpop.f32.mrf.mxu0 }
0x119f   : > { %v2712_v27 = vadd.f32 %v5269_v24, %v2711_v26 }
0x11a0   : > { %v5664_v28 = vpop.f32.mrf.mxu0 }
0x11a1   : > { %v6973_v30 = vadd.f32 %v2712_v27, %v6797_v3  ;;  %v2746_v3 = vld [vmem:[#allocation10] sm:$0xff] }
0x11a2   : > { %5672 = vmatpush3.msra.mxu1 %v2746_v3 }
0x11a3   : > { %v2716_v29 = vsel %vm824_vm0, %v6973_v30, 0.0  ;;  %5695 = vmatprep.subr.mxu1 %v6289_v0 }
0x11a4   : > { %2717 = vadd.xlane.f32.xlu1 %v2716_v29 }
0x122d   : > { %v2718_v32 = vpop.xlane.xlu1 %2717 }
0x122e   : > { %v2719_v34 = vmul.f32 0.03125, %v2718_v32 }
0x1230   : > { %v2720_v35 = vsub.f32 %v6973_v30, %v2719_v34  ;;  %v7060_v34 = vld [vmem:[%s7563_s14 + $0x4] sm:$0x7]  ;;  %s7586_s14 = sshll.u32 %s6605_s17, 3 }
0x1232   : > { %v2721_v36 = vmul.f32 %v2720_v35, %v2720_v35  ;;  %v2737_v59 = vmul.f32 %v2736_v58, %v2720_v35  ;;  %v2946_v35 = vrot.slane %v7060_v34, %v6672_v22 }
0x1234   : > { %v2722_v37 = vsel %vm824_vm0, %v2721_v36, 0.0  ;;  %v7067_v36 = vld [vmem:[%s7461_s15 + $0x4] sm:$0x7] }
0x1235   : > { %2723 = vadd.xlane.f32.xlu0 %v2722_v37  ;;  %v2954_v33 = vrot.slane %v7067_v36, %v6672_v22 }
0x12be   : > { %v2724_v49 = vpop.xlane.xlu0 %2723 }
0x12bf   : > { %v2725_v50 = vmul.f32 0.032258064, %v2724_v49 }
0x12c1   : > { %6016 = vrsqrt.f32 %v2725_v50  ;;  %vm2728_vm11 = vcmp.eq.f32.partialorder %v2725_v50, inf  ;;  %v2731_v52 = vand.u32 2147483648, %v2725_v50  ;;  %vm2730_vm12 = vcmp.eq.f32.partialorder %v2725_v50, 0.0 }
0x12ce   : > { %v6017_v46 = vpop.eup %6016 }
0x12cf   : > { %v2727_v51 = vmul.f32 %v6017_v46, %v2725_v50 }
0x12d1   : > { %v2729_v54 = vsel %vm2728_vm11, %v2725_v50, %v2727_v51 }
0x12d2   : > { %v2732_v55 = vsel %vm2730_vm12, %v2731_v52, %v2729_v54 }
0x12d3   : > { %v2738_v56 = vadd.f32 1e-06, %v2732_v55 }
0x12d5   : > { %6018 = vrcp.f32 %v2738_v56 }
0x12e2   : > { %v6019_v61 = vpop.eup %6018 }
0x12e3   : > { %v2740_v62 = vmul.f32 %v6019_v61, %v2737_v59 }
0x12e5   : > { %v2745_v63 = vadd.f32 %v2744_v60, %v2740_v62 }
0x12e7   : > { %5674 = vmatmul.mubr.msk.f32.vlgmr.msra.gmra.mxu1 %vm824_vm0, %v2745_v63 }
0x12e8   : > { %5703 = vmatprep.mubr.msk.f32.mxu1 %vm6290_vm1, %v6289_v0  ;;  %5696 = vmatpush3.msra.mxu1 %v5280_v16 }
0x12e9   : > { %5697 = vmatprep.subr.mxu1 %v6289_v0 }
0x12ea   : > { %5698 = vmatpush3.msra.mxu1 %v5279_v17 }
0x12eb   : > { %5699 = vmatprep.subr.mxu1 %v6289_v0 }
0x12ec   : > { %5700 = vmatpush3.msra.mxu1 %v5278_v18 }
0x12ed   : > { %5701 = vmatprep.subr.mxu1 %v6289_v0 }
0x12ee   : > { %5702 = vmatpush3.msra.mxu1 %v5277_v19 }
0x12ef   : > { %5706 = vmatprep.subr.mxu1 %v6289_v0 }
0x13a7   : > { %v2826_v4 = vpop.f32.mrf.mxu1 }
0x13a8   : > { %v2827_v5 = vadd.f32 %v5271_v2, %v2826_v4 }
0x13a9   : > { %v5675_v6 = vpop.f32.mrf.mxu1 }
0x13aa   : > { %v2830_v7 = vmax.f32 %v2827_v5, 0.0 }
0x13ac   : > { %5693 = vmatmul.mubr.msk.f32.vlgmr.msra.gmra.mxu0 %vm2839_vm13, %v2830_v7 }
0x13ad   : > { %5718 = vmatprep.mubr.msk.f32.mxu0 %vm6290_vm1, %v6289_v0 }
0x146c   : > { %v2909_v40 = vpop.f32.mrf.mxu0 }
0x146d   : > { %v2913_v9 = vadd.f32 %v2909_v40, %v6973_v30 }
0x146e   : > { %v5694_v10 = vpop.f32.mrf.mxu0 }
0x146f   : > { %v7035_v11 = vadd.f32 %v5274_v8, %v2913_v9 }
0x1471   : > { %v2926_v12 = vsel %vm824_vm0, %v7035_v11, 0.0 }
0x1472   : > { %2927 = vadd.xlane.f32.xlu0 %v2926_v12 }
0x14fb   : > { %v2928_v42 = vpop.xlane.xlu0 %2927 }
0x14fc   : > { %v2929_v1 = vmul.f32 0.03125, %v2928_v42 }
0x14fe   : > { %v2930_v13 = vsub.f32 %v7035_v11, %v2929_v1 }
0x1500   : > { %v2931_v14 = vmul.f32 %v2930_v13, %v2930_v13  ;;  %v2947_v37 = vmul.f32 %v2946_v35, %v2930_v13 }
0x1502   : > { %v2932_v15 = vsel %vm824_vm0, %v2931_v14, 0.0 }
0x1503   : > { %2933 = vadd.xlane.f32.xlu1 %v2932_v15 }
0x158c   : > { %v2934_v20 = vpop.xlane.xlu1 %2933 }
0x158d   : > { %v2935_v24 = vmul.f32 0.032258064, %v2934_v20 }
0x158f   : > { %6020 = vrsqrt.f32 %v2935_v24  ;;  %vm2938_vm14 = vcmp.eq.f32.partialorder %v2935_v24, inf  ;;  %v2941_v28 = vand.u32 2147483648, %v2935_v24  ;;  %vm2940_vm15 = vcmp.eq.f32.partialorder %v2935_v24, 0.0 }
0x159c   : > { %v6021_v26 = vpop.eup %6020 }
0x159d   : > { %v2937_v27 = vmul.f32 %v6021_v26, %v2935_v24 }
0x159f   : > { %v2939_v30 = vsel %vm2938_vm14, %v2935_v24, %v2937_v27 }
0x15a0   : > { %v2942_v29 = vsel %vm2940_vm15, %v2941_v28, %v2939_v30 }
0x15a1   : > { %v2948_v32 = vadd.f32 1e-06, %v2942_v29 }
0x15a3   : > { %6022 = vrcp.f32 %v2948_v32 }
0x15b0   : > { %v6023_v38 = vpop.eup %6022 }
0x15b1   : > { %v2950_v39 = vmul.f32 %v6023_v38, %v2947_v37 }
0x15b3   : > { %v2955_v3 = vadd.f32 %v2954_v33, %v2950_v39 }
0x15b5   : > { %5704 = vmatmul.mubr.msk.f32.vlgmr.msra.gmra.mxu1 %vm824_vm0, %v2955_v3 }
0x15b6   : > { %5708 = vmatprep.mubr.msk.f32.mxu1 %vm6290_vm1, %v6289_v0 }
0x1675   : > { %v3038_v43 = vpop.f32.mrf.mxu1 }
0x1676   : > { %v7077_v45 = vadd.f32 %v5282_v41, %v3038_v43 }
0x1677   : > { %v5705_v47 = vpop.f32.mrf.mxu1 }
0x1678   : > { %3217 = vrot.lane.b32.xlu1 %v7077_v45, %s7514_s24  ;;  %3050 = vrot.lane.b32.xlu0 %v7077_v45, %s7572_s12  ;;  %s7581_s24 = smov 56  }
0x167c   : > { %3215 = vrot.lane.b32.xlu1 %v7077_v45, %s7573_s5  ;;  %3384 = vrot.lane.b32.xlu0 %v7077_v45, %s7574_s22 }
0x1680   : > { %3382 = vrot.lane.b32.xlu1 %v7077_v45, %s7575_s2  ;;  %3551 = vrot.lane.b32.xlu0 %v7077_v45, %s7576_s21 }
0x1684   : > { %3549 = vrot.lane.b32.xlu1 %v7077_v45, %s7577_s3 }
0x16ea   : > { %v3218_v22 = vpop.permute.xlu1 %3217  ;;  %v3051_v48 = vpop.permute.xlu0 %3050 }
0x16eb   : > { %5707 = vmatpush3.xpose.msk.msra.mxu1 %vm949_vm4, %v3051_v48  ;;  %5717 = vmatpush3.xpose.msk.msra.mxu0 %vm949_vm4, %v3218_v22 }
0x16ec   : > { %5726 = vmatprep.subr.mxu0 %v6289_v0  ;;  %5711 = vmatprep.subr.mxu1 %v6289_v0 }
0x16ee   : > { %v3216_v49 = vpop.permute.xlu1 %3215  ;;  %5709 = vmatmul.mubr.msk.f32.vlgmr.msra.gmra.mxu1 %vm949_vm4, %v7077_v45  ;;  %v3385_v50 = vpop.permute.xlu0 %3384 }
0x16ef   : > { %5719 = vmatmul.mubr.msk.f32.vlgmr.msra.gmra.mxu0 %vm949_vm4, %v3216_v49  ;;  %5713 = vmatprep.mubr.msk.f32.mxu1 %vm6290_vm1, %v6289_v0 }
0x16f0   : > { %5727 = vmatpush3.xpose.msk.msra.mxu0 %vm949_vm4, %v3385_v50  ;;  %5728 = vmatprep.mubr.msk.f32.mxu0 %vm6290_vm1, %v6289_v0 }
0x16f1   : > { %5736 = vmatprep.subr.mxu0 %v6289_v0 }
0x16f2   : > { %v3383_v46 = vpop.permute.xlu1 %3382  ;;  %v3552_v51 = vpop.permute.xlu0 %3551 }
0x16f3   : > { %5729 = vmatmul.mubr.msk.f32.vlgmr.msra.gmra.mxu0 %vm949_vm4, %v3383_v46 }
0x16f4   : > { %5737 = vmatpush3.xpose.msk.msra.mxu0 %vm949_vm4, %v3552_v51  ;;  %5738 = vmatprep.mubr.msk.f32.mxu0 %vm6290_vm1, %v6289_v0 }
0x16f5   : > { %5746 = vmatprep.subr.mxu0 %v6289_v0 }
0x16f6   : > { %v3550_v52 = vpop.permute.xlu1 %3549 }
0x16f7   : > { %5739 = vmatmul.mubr.msk.f32.vlgmr.msra.gmra.mxu0 %vm949_vm4, %v3550_v52  ;;  %v5287_v52 = vld [vmem:[%s7565_s19 + $0x38] sm:$0xff] }
0x16f8   : > { %5754 = vmatprep.mubr.msk.f32.mxu0 %vm6290_vm1, %v6289_v0  ;;  %5747 = vmatpush3.msra.mxu0 %v5287_v52 }
0x16f9   : > { %5748 = vmatprep.subr.mxu0 %v6289_v0 }
0x17ae   : > { %v3122_v54 = vpop.f32.mrf.mxu1 }
0x17af   : > { %v3126_v55 = vmul.f32 0.35355338, %v3122_v54  ;;  %v3289_v56 = vpop.f32.mrf.mxu0  ;;  %v5286_v54 = vld [vmem:[%s7565_s19 + $0x30] sm:$0xff] }
0x17b0   : > { %v3293_v58 = vmul.f32 0.35355338, %v3289_v56  ;;  %v5710_v59 = vpop.f32.mrf.mxu1  ;;  %5749 = vmatpush3.msra.mxu0 %v5286_v54 }
0x17b1   : > { %v5720_v60 = vpop.f32.mrf.mxu0  ;;  %v3127_v61 = vadd.f32 %v3126_v55, %v6733_v44  ;;  %v5285_v55 = vld [vmem:[%s7565_s19 + $0x28] sm:$0xff]  ;;  %5750 = vmatprep.subr.mxu0 %v6289_v0 }
0x17b2   : > { %v3294_v62 = vadd.f32 %v3293_v58, %v6733_v44  ;;  %5751 = vmatpush3.msra.mxu0 %v5285_v55  ;;  %v5284_v58 = vld [vmem:[%s7565_s19 + $0x20] sm:$0xff] }
0x17b3   : > { %v3456_v63 = vpop.f32.mrf.mxu0  ;;  %v3128_v21 = vsel %vm949_vm4, %v3127_v61, -inf  ;;  %5752 = vmatprep.subr.mxu0 %v6289_v0 }
0x17b4   : > { %v3460_v23 = vmul.f32 0.35355338, %v3456_v63  ;;  %3129 = vmax.xlane.f32.xlu0 %v3128_v21  ;;  %v3295_v25 = vsel %vm949_vm4, %v3294_v62, -inf  ;;  %5753 = vmatpush3.msra.mxu0 %v5284_v58 }
0x17b5   : > { %3296 = vmax.xlane.f32.xlu1 %v3295_v25  ;;  %v5730_v2 = vpop.f32.mrf.mxu0 }
0x17b6   : > { %v3461_v4 = vadd.f32 %v3460_v23, %v6733_v44 }
0x17b7   : > { %v3623_v5 = vpop.f32.mrf.mxu0 }
0x17b8   : > { %v3627_v6 = vmul.f32 0.35355338, %v3623_v5  ;;  %v3462_v7 = vsel %vm949_vm4, %v3461_v4, -inf }
0x17b9   : > { %v5740_v40 = vpop.f32.mrf.mxu0  ;;  %3463 = vmax.xlane.f32.xlu0 %v3462_v7 }
0x17ba   : > { %v3628_v8 = vadd.f32 %v3627_v6, %v6733_v44  ;;  %v6068_v40 = vld [vmem:[%s6609_s27] sm:$0xff] }
0x17bc   : > { %v3629_v9 = vsel %vm949_vm4, %v3628_v8, -inf }
0x17bd   : > { %3630 = vmax.xlane.f32.xlu0 %v3629_v9 }
0x17c6   : > { %3139 = vrot.lane.b32.xlu1 %v7077_v45, %s7578_s26  ;;  %s7580_s26 = smov 40  }
0x183d   : > { %v3130_v10 = vpop.xlane.xlu0 %3129 }
0x183e   : > { %v3131_v12 = vsub.f32 %v3127_v61, %v3130_v10  ;;  %v3297_v42 = vpop.xlane.xlu1 %3296 }
0x183f   : > { %v3298_v1 = vsub.f32 %v3294_v62, %v3297_v42 }
0x1840   : > { %v3132_v13 = vmul.f32 1.442695, %v3131_v12 }
0x1841   : > { %v3299_v14 = vmul.f32 1.442695, %v3298_v1 }
0x1842   : > { %6024 = vpow2.f32 %v3132_v13  ;;  %v3140_v15 = vpop.permute.xlu1 %3139  ;;  %v3464_v16 = vpop.xlane.xlu0 %3463 }
0x1843   : > { %6026 = vpow2.f32 %v3299_v14  ;;  %v3465_v17 = vsub.f32 %v3461_v4, %v3464_v16  ;;  %5712 = vmatpush3.msra.mxu1 %v3140_v15 }
0x1844   : > { %5721 = vmatprep.subr.mxu1 %v6289_v0 }
0x1845   : > { %v3466_v44 = vmul.f32 1.442695, %v3465_v17 }
0x1846   : > { %v3631_v18 = vpop.xlane.xlu0 %3630 }
0x1847   : > { %6028 = vpow2.f32 %v3466_v44  ;;  %v3632_v19 = vsub.f32 %v3628_v8, %v3631_v18  ;;  %v5301_v8 = vld [vmem:[%s7453_s7 + $0x1] ss:$0 sm:$0xff]  ;;  %v3931_v44 = vld [vmem:[#allocation7 + $0x38] sm:$0xff] }
0x1848   : > { %5768 = vmatprep.subr.mxu0 %v3931_v44  ;;  %v3930_v18 = vld [vmem:[#allocation7 + $0x30] sm:$0xff] }
0x1849   : > { %v3633_v20 = vmul.f32 1.442695, %v3632_v19  ;;  %v3929_v19 = vld [vmem:[#allocation7 + $0x28] sm:$0xff] }
0x184b   : > { %6030 = vpow2.f32 %v3633_v20  ;;  %v5305_v20 = vld [vmem:[%s7454_s8 + $0x30] sm:$0xff] }
0x184f   : > { %v6025_v24 = vpop.eup %6024 }
0x1850   : > { %v6027_v26 = vpop.eup %6026  ;;  %v3134_v27 = vsel %vm949_vm4, %v6025_v24, 0.0 }
0x1851   : > { %3135 = vadd.xlane.f32.xlu1 %v3134_v27  ;;  %v3301_v28 = vsel %vm949_vm4, %v6027_v26, 0.0  ;;  %v5303_v27 = vld [vmem:[%s7454_s8 + $0x20] sm:$0xff] }
0x1852   : > { %3302 = vadd.xlane.f32.xlu0 %v3301_v28  ;;  %v6069_v28 = vld [vmem:[%s6609_s27 + $0x8] sm:$0xff] }
0x1854   : > { %v6029_v30 = vpop.eup %6028 }
0x1855   : > { %v3468_v29 = vsel %vm949_vm4, %v6029_v30, 0.0 }
0x1856   : > { %3469 = vadd.xlane.f32.xlu1 %v3468_v29 }
0x1858   : > { %v6031_v32 = vpop.eup %6030 }
0x1859   : > { %v3635_v35 = vsel %vm949_vm4, %v6031_v32, 0.0 }
0x185a   : > { %3636 = vadd.xlane.f32.xlu0 %v3635_v35 }
0x1867   : > { %3473 = vrot.lane.b32.xlu1 %v7077_v45, %s7579_s1  ;;  %s5350_s1 = sshll.u32 %s6442_s4, 7  ;;  %s6305_s4 = smov [#allocation11]  }
0x186b   : > { %3640 = vrot.lane.b32.xlu1 %v7077_v45, %s7580_s26 }
0x1870   : > { %3306 = vrot.lane.b32.xlu0 %v7077_v45, %s7581_s24  ;;  %s7585_s24 = sld [smem:[#allocation37_spill]] }
0x18da   : > { %v3136_v37 = vpop.xlane.xlu1 %3135 }
0x18db   : > { %6032 = vrcp.f32 %v3136_v37  ;;  %v3303_v33 = vpop.xlane.xlu0 %3302 }
0x18dc   : > { %6034 = vrcp.f32 %v3303_v33 }
0x18df   : > { %v3470_v38 = vpop.xlane.xlu1 %3469 }
0x18e0   : > { %6036 = vrcp.f32 %v3470_v38 }
0x18e3   : > { %v3637_v39 = vpop.xlane.xlu0 %3636  ;;  %v3474_v22 = vpop.permute.xlu1 %3473 }
0x18e4   : > { %6038 = vrcp.f32 %v3637_v39 }
0x18e7   : > { %v3307_v47 = vpop.permute.xlu0 %3306  ;;  %v3641_v46 = vpop.permute.xlu1 %3640 }
0x18e8   : > { %v6033_v3 = vpop.eup %6032 }
0x18e9   : > { %v3138_v41 = vmul.f32 %v6033_v3, %v6025_v24  ;;  %v6035_v43 = vpop.eup %6034  ;;  %v3928_v24 = vld [vmem:[#allocation7 + $0x20] sm:$0xff]  ;;  %v3831_v3 = vrot.slane %v7060_v34, %v6827_v31 }
0x18ea   : > { %v3305_v45 = vmul.f32 %v6035_v43, %v6027_v26  ;;  %v5304_v26 = vld [vmem:[%s7454_s8 + $0x28] sm:$0xff]  ;;  %v3839_v43 = vrot.slane %v7067_v36, %v6827_v31 }
0x18eb   : > { %5714 = vmatmul.mubr.msk.f32.vlgmr.msra.gmra.mxu1 %vm949_vm4, %v3138_v41 }
0x18ec   : > { %5722 = vmatpush3.msra.mxu1 %v3307_v47  ;;  %5723 = vmatprep.mubr.msk.f32.mxu1 %vm6290_vm1, %v6289_v0 }
0x18ed   : > { %5731 = vmatprep.subr.mxu1 %v6289_v0  ;;  %v6037_v48 = vpop.eup %6036 }
0x18ee   : > { %v3472_v49 = vmul.f32 %v6037_v48, %v6029_v30  ;;  %v5311_v48 = vld [vmem:[%s7457_s11 + $0x1] ss:$0 sm:$0xff] }
0x18ef   : > { %5724 = vmatmul.mubr.msk.f32.vlgmr.msra.gmra.mxu1 %vm949_vm4, %v3305_v45 }
0x18f0   : > { %5732 = vmatpush3.msra.mxu1 %v3474_v22  ;;  %5733 = vmatprep.mubr.msk.f32.mxu1 %vm6290_vm1, %v6289_v0 }
0x18f1   : > { %5741 = vmatprep.subr.mxu1 %v6289_v0  ;;  %v6039_v50 = vpop.eup %6038 }
0x18f2   : > { %v3639_v51 = vmul.f32 %v6039_v50, %v6031_v32 }
0x18f3   : > { %5734 = vmatmul.mubr.msk.f32.vlgmr.msra.gmra.mxu1 %vm949_vm4, %v3472_v49 }
0x18f4   : > { %5742 = vmatpush3.msra.mxu1 %v3641_v46  ;;  %5743 = vmatprep.mubr.msk.f32.mxu1 %vm6290_vm1, %v6289_v0 }
0x18f5   : > { %5757 = vmatprep.subr.mxu1 %v6289_v0 }
0x18f7   : > { %5744 = vmatmul.mubr.msk.f32.vlgmr.msra.gmra.mxu1 %vm949_vm4, %v3639_v51  ;;  %v5308_v51 = vld [vmem:[%s7455_s9 + $0x1] ss:$0 sm:$0xff] }
0x18f8   : > { %5765 = vmatprep.mubr.msk.f32.mxu1 %vm6290_vm1, %v6289_v0 }
0x19ab   : > { %v3211_v56 = vpop.f32.mrf.mxu1 }
0x19ad   : > { %v5715_v59 = vpop.f32.mrf.mxu1 }
0x19af   : > { %v3378_v60 = vpop.f32.mrf.mxu1 }
0x19b0   : > { %3717 = vrot.lane.b32.xlu0 %v3378_v60, %s7567_s23 }
0x19b1   : > { %v5725_v61 = vpop.f32.mrf.mxu1 }
0x19b3   : > { %v3545_v62 = vpop.f32.mrf.mxu1 }
0x19b4   : > { %3721 = vrot.lane.b32.xlu1 %v3545_v62, %s7568_s10 }
0x19b5   : > { %v5735_v63 = vpop.f32.mrf.mxu1 }
0x19b7   : > { %v3712_v21 = vpop.f32.mrf.mxu1 }
0x19b8   : > { %3725 = vrot.lane.b32.xlu0 %v3712_v21, %s7569_s29 }
0x19b9   : > { %v5745_v23 = vpop.f32.mrf.mxu1 }
0x1a22   : > { %v3718_v25 = vpop.permute.xlu0 %3717 }
0x1a23   : > { %v3728_v4 = vsel %vm949_vm4, %v3211_v56, %v3718_v25 }
0x1a26   : > { %v3722_v2 = vpop.permute.xlu1 %3721 }
0x1a27   : > { %v3729_v5 = vsel %vm1627_vm6, %v3728_v4, %v3722_v2 }
0x1a2a   : > { %v3726_v6 = vpop.permute.xlu0 %3725 }
0x1a2b   : > { %v3730_v7 = vsel %vm1629_vm7, %v3729_v5, %v3726_v6 }
0x1a2c   : > { %5755 = vmatmul.mubr.msk.f32.vlgmr.msra.gmra.mxu0 %vm824_vm0, %v3730_v7 }
0x1a2d   : > { %5776 = vmatprep.mubr.msk.f32.mxu0 %vm824_vm0, %v6068_v40  ;;  %5769 = vmatpush3.msra.mxu0 %v3931_v44 }
0x1a2e   : > { %5770 = vmatprep.subr.mxu0 %v3930_v18 }
0x1a2f   : > { %5771 = vmatpush3.msra.mxu0 %v3930_v18 }
0x1a30   : > { %5772 = vmatprep.subr.mxu0 %v3929_v19 }
0x1a31   : > { %5773 = vmatpush3.msra.mxu0 %v3929_v19 }
0x1a32   : > { %5774 = vmatprep.subr.mxu0 %v3928_v24 }
0x1a33   : > { %5775 = vmatpush3.msra.mxu0 %v3928_v24 }
0x1a34   : > { %5777 = vmatmul.mubr.msk.f32.vlgmr.msra.gmra.mxu0 %vm824_vm0, %v6069_v28  ;;  %5786 = vmatprep.subr.mxu0 %v6289_v0 }
0x1a35   : > { %5790 = vmatprep.mubr.msk.f32.mxu0 %vm6290_vm1, %v6289_v0 }
0x1aec   : > { %v3806_v9 = vpop.f32.mrf.mxu0 }
0x1aed   : > { %v3807_v10 = vadd.f32 %v5301_v8, %v3806_v9 }
0x1aee   : > { %v5756_v12 = vpop.f32.mrf.mxu0 }
0x1aef   : > { %v7178_v42 = vadd.f32 %v3807_v10, %v7035_v11  ;;  %v5306_v11 = vld [vmem:[%s7454_s8 + $0x38] sm:$0xff] }
0x1af0   : > { %5758 = vmatpush3.msra.mxu1 %v5306_v11 }
0x1af1   : > { %v3811_v1 = vsel %vm824_vm0, %v7178_v42, 0.0  ;;  %5759 = vmatprep.subr.mxu1 %v6289_v0 }
0x1af2   : > { %3812 = vadd.xlane.f32.xlu1 %v3811_v1  ;;  %5760 = vmatpush3.msra.mxu1 %v5305_v20 }
0x1af3   : > { %5761 = vmatprep.subr.mxu1 %v6289_v0 }
0x1af4   : > { %5762 = vmatpush3.msra.mxu1 %v5304_v26  ;;  %v5778_v49 = vpop.f32.mrf.mxu0 }
0x1af5   : > { %5763 = vmatprep.subr.mxu1 %v6289_v0  ;;  %v7215_v50 = vadd.f32 %v5778_v49, %v5311_v48 }
0x1af6   : > { %5764 = vmatpush3.msra.mxu1 %v5303_v27  ;;  %v4006_v46 = vpop.f32.mrf.mxu0 }
0x1af7   : > { %5779 = vmatprep.subr.mxu1 %v6289_v0  ;;  %v7221_v31 = vadd.f32 %v5311_v48, %v4006_v46 }
0x1b03   : > { %4195 = vrot.lane.b32.xlu1 %v7221_v31, %s7573_s5 }
0x1b7b   : > { %v3813_v13 = vpop.xlane.xlu1 %3812 }
0x1b7c   : > { %v3814_v14 = vmul.f32 0.03125, %v3813_v13 }
0x1b7e   : > { %v3815_v15 = vsub.f32 %v7178_v42, %v3814_v14 }
0x1b7f   : > { %v4196_v58 = vpop.permute.xlu1 %4195 }
0x1b80   : > { %v3816_v16 = vmul.f32 %v3815_v15, %v3815_v15  ;;  %v3832_v41 = vmul.f32 %v3831_v3, %v3815_v15 }
0x1b82   : > { %v3817_v17 = vsel %vm824_vm0, %v3816_v16, 0.0 }
0x1b83   : > { %3818 = vadd.xlane.f32.xlu0 %v3817_v17 }
0x1b99   : > { %4197 = vrot.lane.b32.xlu0 %v7215_v50, %s7573_s5 }
0x1c0c   : > { %v3819_v30 = vpop.xlane.xlu0 %3818 }
0x1c0d   : > { %v3820_v29 = vmul.f32 0.032258064, %v3819_v30 }
0x1c0f   : > { %6040 = vrsqrt.f32 %v3820_v29  ;;  %vm3823_vm2 = vcmp.eq.f32.partialorder %v3820_v29, inf  ;;  %v3826_v37 = vand.u32 2147483648, %v3820_v29  ;;  %vm3825_vm3 = vcmp.eq.f32.partialorder %v3820_v29, 0.0 }
0x1c10   : > { %v4198_v55 = vpop.permute.xlu0 %4197 }
0x1c1c   : > { %v6041_v32 = vpop.eup %6040 }
0x1c1d   : > { %v3822_v35 = vmul.f32 %v6041_v32, %v3820_v29 }
0x1c1f   : > { %v3824_v33 = vsel %vm3823_vm2, %v3820_v29, %v3822_v35 }
0x1c20   : > { %v3827_v38 = vsel %vm3825_vm3, %v3826_v37, %v3824_v33 }
0x1c21   : > { %v3833_v39 = vadd.f32 1e-06, %v3827_v38 }
0x1c23   : > { %6042 = vrcp.f32 %v3833_v39 }
0x1c30   : > { %v6043_v47 = vpop.eup %6042 }
0x1c31   : > { %v3835_v22 = vmul.f32 %v6043_v47, %v3832_v41 }
0x1c33   : > { %v3840_v45 = vadd.f32 %v3839_v43, %v3835_v22 }
0x1c35   : > { %5766 = vmatmul.mubr.msk.f32.vlgmr.msra.gmra.mxu1 %vm824_vm0, %v3840_v45 }
0x1c36   : > { %5783 = vmatprep.mubr.msk.f32.mxu1 %vm6290_vm1, %v6289_v0  ;;  %5780 = vmatpush3.xpose.msk.msra.mxu1 %vm949_vm4, %v7215_v50 }
0x1c37   : > { %5781 = vmatprep.subr.mxu1 %v6289_v0 }
0x1c3a   : > { %5782 = vmatpush3.xpose.msk.msra.mxu1 %vm949_vm4, %v7221_v31 }
0x1c3b   : > { %5793 = vmatprep.subr.mxu1 %v6289_v0 }
0x1cf5   : > { %v3923_v52 = vpop.f32.mrf.mxu1 }
0x1cf6   : > { %v7232_v54 = vadd.f32 %v5308_v51, %v3923_v52 }
0x1cf7   : > { %v5767_v56 = vpop.f32.mrf.mxu1 }
0x1cf8   : > { %4193 = vrot.lane.b32.xlu1 %v7232_v54, %s7573_s5  ;;  %5784 = vmatmul.mubr.msk.f32.vlgmr.msra.gmra.mxu1 %vm949_vm4, %v7232_v54  ;;  %s7582_s5 = smov 88  }
0x1cf9   : > { %5794 = vmatpush3.xpose.msk.msra.mxu1 %vm949_vm4, %v4198_v55  ;;  %5797 = vmatprep.mubr.msk.f32.mxu1 %vm6290_vm1, %v6289_v0 }
0x1cfa   : > { %5795 = vmatprep.subr.mxu1 %v6289_v0 }
0x1cfd   : > { %5796 = vmatpush3.xpose.msk.msra.mxu1 %vm949_vm4, %v4196_v58 }
0x1cfe   : > { %5814 = vmatprep.subr.mxu1 %v6289_v0 }
0x1d6a   : > { %v4194_v59 = vpop.permute.xlu1 %4193 }
0x1d6b   : > { %5798 = vmatmul.mubr.msk.f32.vlgmr.msra.gmra.mxu1 %vm949_vm4, %v4194_v59 }
0x1d6c   : > { %5818 = vmatprep.mubr.msk.f32.mxu1 %vm6290_vm1, %v6289_v0 }
0x1db8   : > { %v4097_v60 = vpop.f32.mrf.mxu1 }
0x1db9   : > { %v4101_v61 = vmul.f32 0.35355338, %v4097_v60 }
0x1dba   : > { %v5785_v62 = vpop.f32.mrf.mxu1 }
0x1dbb   : > { %v4102_v63 = vadd.f32 %v4101_v61, %v6877_v53 }
0x1dbd   : > { %v4103_v21 = vsel %vm1627_vm6, %v4102_v63, -inf }
0x1dbe   : > { %4104 = vmax.xlane.f32.xlu0 %v4103_v21 }
0x1dd4   : > { %4114 = vrot.lane.b32.xlu0 %v7221_v31, %s7572_s12 }
0x1e2b   : > { %v4271_v23 = vpop.f32.mrf.mxu1 }
0x1e2c   : > { %v4275_v25 = vmul.f32 0.35355338, %v4271_v23 }
0x1e2d   : > { %v5799_v2 = vpop.f32.mrf.mxu1 }
0x1e2e   : > { %v4276_v4 = vadd.f32 %v4275_v25, %v6877_v53 }
0x1e30   : > { %v4277_v5 = vsel %vm1627_vm6, %v4276_v4, -inf }
0x1e31   : > { %4278 = vmax.xlane.f32.xlu1 %v4277_v5 }
0x1e42   : > { %4116 = vrot.lane.b32.xlu1 %v7215_v50, %s7572_s12  ;;  %s7587_s12 = sld [smem:[#allocation38_spill]] }
0x1e46   : > { %4290 = vrot.lane.b32.xlu1 %v7215_v50, %s7582_s5 }
0x1e47   : > { %v4105_v6 = vpop.xlane.xlu0 %4104 }
0x1e48   : > { %v4106_v7 = vsub.f32 %v4102_v63, %v4105_v6 }
0x1e4a   : > { %v4107_v40 = vmul.f32 1.442695, %v4106_v7  ;;  %4288 = vrot.lane.b32.xlu1 %v7221_v31, %s7582_s5  ;;  %s805_s5 = scalar_lea.vmem [#allocation11], %s7586_s14 }
0x1e4b   : > { %v4115_v14 = vpop.permute.xlu0 %4114 }
0x1e4c   : > { %6044 = vpow2.f32 %v4107_v40 }
0x1e4e   : > { %4369 = vrot.lane.b32.xlu1 %v7221_v31, %s7575_s2 }
0x1e59   : > { %v6045_v8 = vpop.eup %6044 }
0x1e5a   : > { %v4109_v9 = vsel %vm1627_vm6, %v6045_v8, 0.0 }
0x1e5b   : > { %4110 = vadd.xlane.f32.xlu0 %v4109_v9  ;;  %v4019_v9 = vld [vmem:[#allocation8 + $0x38] sm:$0xff] }
0x1eba   : > { %v4279_v10 = vpop.xlane.xlu1 %4278 }
0x1ebb   : > { %v4280_v12 = vsub.f32 %v4276_v4, %v4279_v10  ;;  %v4018_v10 = vld [vmem:[#allocation8 + $0x30] sm:$0xff] }
0x1ebd   : > { %v4281_v1 = vmul.f32 1.442695, %v4280_v12  ;;  %v4016_v12 = vld [vmem:[#allocation8 + $0x20] sm:$0xff] }
0x1ebe   : > { %v4117_v13 = vpop.permute.xlu1 %4116 }
0x1ebf   : > { %6046 = vpow2.f32 %v4281_v1  ;;  %5787 = vmatpush3.msra.mxu0 %v4117_v13 }
0x1ec0   : > { %5788 = vmatprep.subr.mxu0 %v6289_v0 }
0x1ec1   : > { %5789 = vmatpush3.msra.mxu0 %v4115_v14 }
0x1ec2   : > { %5800 = vmatprep.subr.mxu0 %v6289_v0  ;;  %v4291_v44 = vpop.permute.xlu1 %4290 }
0x1ec6   : > { %v4289_v11 = vpop.permute.xlu1 %4288 }
0x1eca   : > { %v4370_v28 = vpop.permute.xlu1 %4369 }
0x1ecc   : > { %v6047_v15 = vpop.eup %6046 }
0x1ecd   : > { %v4283_v16 = vsel %vm1627_vm6, %v6047_v15, 0.0 }
0x1ece   : > { %4284 = vadd.xlane.f32.xlu0 %v4283_v16 }
0x1ee4   : > { %v4111_v17 = vpop.xlane.xlu0 %4110  ;;  %4371 = vrot.lane.b32.xlu0 %v7215_v50, %s7575_s2 }
0x1ee5   : > { %6048 = vrcp.f32 %v4111_v17 }
0x1ee8   : > { %4367 = vrot.lane.b32.xlu0 %v7232_v54, %s7575_s2  ;;  %s5058_s2 = scalar_lea.sflag [#allocation4], %s6605_s17 }
0x1ef2   : > { %v6049_v18 = vpop.eup %6048 }
0x1ef3   : > { %v4113_v19 = vmul.f32 %v6049_v18, %v6045_v8 }
0x1ef5   : > { %5791 = vmatmul.mubr.msk.f32.vlgmr.msra.gmra.mxu0 %vm1627_vm6, %v4113_v19  ;;  %v5331_v19 = vld [vmem:[%s7459_s13 + $0x1] ss:$0 sm:$0xff] }
0x1ef6   : > { %5801 = vmatpush3.msra.mxu0 %v4291_v44  ;;  %5804 = vmatprep.mubr.msk.f32.mxu0 %vm6290_vm1, %v6289_v0 }
0x1ef7   : > { %5802 = vmatprep.subr.mxu0 %v6289_v0 }
0x1ef8   : > { %5803 = vmatpush3.msra.mxu0 %v4289_v11 }
0x1ef9   : > { %5807 = vmatprep.subr.mxu0 %v6289_v0 }
0x1f57   : > { %v4285_v20 = vpop.xlane.xlu0 %4284 }
0x1f58   : > { %6050 = vrcp.f32 %v4285_v20 }
0x1f5b   : > { %v4372_v27 = vpop.permute.xlu0 %4371 }
0x1f5f   : > { %v4368_v30 = vpop.permute.xlu0 %4367 }
0x1f65   : > { %v6051_v24 = vpop.eup %6050 }
0x1f66   : > { %v4287_v26 = vmul.f32 %v6051_v24, %v6047_v15 }
0x1f68   : > { %5805 = vmatmul.mubr.msk.f32.vlgmr.msra.gmra.mxu0 %vm1627_vm6, %v4287_v26 }
0x1f69   : > { %5808 = vmatpush3.xpose.msk.msra.mxu0 %vm949_vm4, %v4372_v27  ;;  %5811 = vmatprep.mubr.msk.f32.mxu0 %vm6290_vm1, %v6289_v0 }
0x1f6a   : > { %5809 = vmatprep.subr.mxu0 %v6289_v0 }
0x1f6d   : > { %5810 = vmatpush3.xpose.msk.msra.mxu0 %vm949_vm4, %v4370_v28 }
0x1f6e   : > { %5828 = vmatprep.subr.mxu0 %v6289_v0 }
0x1f70   : > { %5812 = vmatmul.mubr.msk.f32.vlgmr.msra.gmra.mxu0 %vm949_vm4, %v4368_v30 }
0x1f71   : > { %5832 = vmatprep.mubr.msk.f32.mxu0 %vm6290_vm1, %v6289_v0 }
0x1fb5   : > { %v7284_v29 = vpop.f32.mrf.mxu0 }
0x1fb7   : > { %v5792_v32 = vpop.f32.mrf.mxu0 }
0x2028   : > { %v4363_v35 = vpop.f32.mrf.mxu0 }
0x202a   : > { %v5806_v37 = vpop.f32.mrf.mxu0 }
0x202b   : > { %v4844_v37 = vld [vmem:[#allocation10 + $0x38] sm:$0xff] }
0x2030   : > { %v4445_v33 = vpop.f32.mrf.mxu0 }
0x2031   : > { %v4449_v38 = vmul.f32 0.35355338, %v4445_v33  ;;  %v4843_v33 = vld [vmem:[#allocation10 + $0x30] sm:$0xff] }
0x2032   : > { %v5813_v39 = vpop.f32.mrf.mxu0 }
0x2033   : > { %v4450_v3 = vadd.f32 %v4449_v38, %v6877_v53  ;;  %v4842_v38 = vld [vmem:[#allocation10 + $0x28] sm:$0xff] }
0x2034   : > { %v5343_v39 = vld [vmem:[%s7464_s18 + $0x78] sm:$0xff] }
0x2035   : > { %v4451_v41 = vsel %vm1627_vm6, %v4450_v3, -inf }
0x2036   : > { %4452 = vmax.xlane.f32.xlu1 %v4451_v41  ;;  %v5341_v41 = vld [vmem:[%s7464_s18 + $0x68] sm:$0xff] }
0x2047   : > { %4462 = vrot.lane.b32.xlu1 %v7221_v31, %s7574_s22 }
0x204b   : > { %4545 = vrot.lane.b32.xlu1 %v7215_v50, %s7577_s3 }
0x204f   : > { %4541 = vrot.lane.b32.xlu1 %v7232_v54, %s7577_s3 }
0x20bf   : > { %v4453_v43 = vpop.xlane.xlu1 %4452 }
0x20c0   : > { %v4454_v47 = vsub.f32 %v4450_v3, %v4453_v43  ;;  %v5342_v3 = vld [vmem:[%s7464_s18 + $0x70] sm:$0xff]  ;;  %v5340_v43 = vld [vmem:[%s7464_s18 + $0x60] sm:$0xff] }
0x20c2   : > { %v4455_v22 = vmul.f32 1.442695, %v4454_v47  ;;  %v5339_v47 = vld [vmem:[%s7464_s18 + $0x58] sm:$0xff] }
0x20c3   : > { %v4463_v51 = vpop.permute.xlu1 %4462 }
0x20c4   : > { %6052 = vpow2.f32 %v4455_v22 }
0x20c7   : > { %v4546_v55 = vpop.permute.xlu1 %4545 }
0x20cb   : > { %v4542_v58 = vpop.permute.xlu1 %4541 }
0x20d1   : > { %v6053_v45 = vpop.eup %6052 }
0x20d2   : > { %v4457_v48 = vsel %vm1627_vm6, %v6053_v45, 0.0 }
0x20d3   : > { %4458 = vadd.xlane.f32.xlu0 %v4457_v48 }
0x20e9   : > { %4464 = vrot.lane.b32.xlu0 %v7215_v50, %s7574_s22  ;;  %s7408_s22 = scalar_lea.hbm %s7587_s12, %s5350_s1 }
0x20ed   : > { %4543 = vrot.lane.b32.xlu0 %v7221_v31, %s7577_s3  ;;  %s6208_s3 = sshll.u32 %s6305_s4, 4  ;;  %s6209_s3 = int_to_ptr.vmem [resolvable:$false] %s6208_s3 }
0x215c   : > { %v4459_v49 = vpop.xlane.xlu0 %4458 }
0x215d   : > { %6054 = vrcp.f32 %v4459_v49 }
0x2160   : > { %v4465_v46 = vpop.permute.xlu0 %4464 }
0x2161   : > { %5815 = vmatpush3.msra.mxu1 %v4465_v46 }
0x2162   : > { %5816 = vmatprep.subr.mxu1 %v6289_v0 }
0x2163   : > { %5817 = vmatpush3.msra.mxu1 %v4463_v51 }
0x2164   : > { %5821 = vmatprep.subr.mxu1 %v6289_v0  ;;  %v4544_v56 = vpop.permute.xlu0 %4543 }
0x216a   : > { %v6055_v52 = vpop.eup %6054 }
0x216b   : > { %v4461_v54 = vmul.f32 %v6055_v52, %v6053_v45 }
0x216d   : > { %5819 = vmatmul.mubr.msk.f32.vlgmr.msra.gmra.mxu1 %vm1627_vm6, %v4461_v54 }
0x216e   : > { %5822 = vmatpush3.xpose.msk.msra.mxu1 %vm949_vm4, %v4546_v55  ;;  %5825 = vmatprep.mubr.msk.f32.mxu1 %vm6290_vm1, %v6289_v0  ;;  %v4830_v55 = vrot.slane %v7060_v34, %v7004_v57  ;;  %v5337_v34 = vld [vmem:[%s7464_s18 + $0x48] sm:$0xff] }
0x216f   : > { %5823 = vmatprep.subr.mxu1 %v6289_v0 }
0x2172   : > { %5824 = vmatpush3.xpose.msk.msra.mxu1 %vm949_vm4, %v4544_v56 }
0x2173   : > { %5846 = vmatprep.subr.mxu1 %v6289_v0 }
0x2175   : > { %5826 = vmatmul.mubr.msk.f32.vlgmr.msra.gmra.mxu1 %vm949_vm4, %v4542_v58  ;;  %v4838_v58 = vrot.slane %v7067_v36, %v7004_v57  ;;  %v5336_v57 = vld [vmem:[%s7464_s18 + $0x40] sm:$0xff] }
0x2176   : > { %5854 = vmatprep.mubr.msk.f32.mxu1 %vm6290_vm1, %v6289_v0  ;;  %5847 = vmatpush3.msra.mxu1 %v4844_v37  ;;  %v5334_v36 = vld [vmem:[%s7570_s16 + $0x1] ss:$0 sm:$0xff] }
0x2177   : > { %5848 = vmatprep.subr.mxu1 %v6289_v0 }
0x2178   : > { %5849 = vmatpush3.msra.mxu1 %v4843_v33 }
0x2179   : > { %5850 = vmatprep.subr.mxu1 %v6289_v0 }
0x217a   : > { %5851 = vmatpush3.msra.mxu1 %v4842_v38 }
0x217b   : > { %5852 = vmatprep.subr.mxu1 %v6289_v0 }
0x222d   : > { %v4537_v59 = vpop.f32.mrf.mxu1 }
0x222f   : > { %v5820_v60 = vpop.f32.mrf.mxu1 }
0x2235   : > { %v4619_v61 = vpop.f32.mrf.mxu1 }
0x2236   : > { %v4623_v62 = vmul.f32 0.35355338, %v4619_v61 }
0x2237   : > { %v5827_v63 = vpop.f32.mrf.mxu1 }
0x2238   : > { %v4624_v21 = vadd.f32 %v4623_v62, %v6877_v53  ;;  %v5338_v62 = vld [vmem:[%s7464_s18 + $0x50] sm:$0xff] }
0x223a   : > { %v4625_v23 = vsel %vm1627_vm6, %v4624_v21, -inf }
0x223b   : > { %4626 = vmax.xlane.f32.xlu0 %v4625_v23 }
0x2251   : > { %4638 = vrot.lane.b32.xlu0 %v7215_v50, %s7576_s21 }
0x2255   : > { %4716 = vrot.lane.b32.xlu0 %v4363_v35, %s7567_s23  ;;  %s5071_s23 = sshll.u32 %s805_s5, 4  ;;  %s5072_s23 = int_to_ptr.vmem [resolvable:$true] %s5071_s23 }
0x2256   : > { %p6211_p1 = scmp.lt.s32.totalorder %s5072_s23, %s6209_s3 }
0x22c4   : > { %v4627_v25 = vpop.xlane.xlu0 %4626 }
0x22c5   : > { %v4628_v2 = vsub.f32 %v4624_v21, %v4627_v25 }
0x22c7   : > { %v4629_v4 = vmul.f32 1.442695, %v4628_v2 }
0x22c8   : > { %v4639_v5 = vpop.permute.xlu0 %4638 }
0x22c9   : > { %6056 = vpow2.f32 %v4629_v4  ;;  %5829 = vmatpush3.msra.mxu0 %v4639_v5 }
0x22ca   : > { %5830 = vmatprep.subr.mxu0 %v6289_v0 }
0x22cc   : > { %v4717_v14 = vpop.permute.xlu0 %4716 }
0x22cd   : > { %v4727_v16 = vsel %vm949_vm4, %v7284_v29, %v4717_v14 }
0x22d6   : > { %v6057_v6 = vpop.eup %6056 }
0x22d7   : > { %v4631_v7 = vsel %vm1627_vm6, %v6057_v6, 0.0 }
0x22d8   : > { %4632 = vadd.xlane.f32.xlu1 %v4631_v7 }
0x22e9   : > { %4636 = vrot.lane.b32.xlu1 %v7221_v31, %s7576_s21  ;;  %v4017_v31 = vld [vmem:[#allocation8 + $0x28] sm:$0xff]  ;;  %s6204_s21 = scalar_lea.vmem %s5072_s23, 128 }
0x22ea   : > { %p6205_p13 = scmp.ne.s32.totalorder %s5072_s23, %s6204_s21 }
0x22ec   : > { %p6206_p11 = pnand %p6205_p13, %p7588_p0 }
0x22ed   : > { %4720 = vrot.lane.b32.xlu1 %v4537_v59, %s7568_s10 }
0x22ee   : > { %p6207_p10 = pneg %p6206_p11 }
0x2361   : > { %v4633_v53 = vpop.xlane.xlu1 %4632 }
0x2362   : > { %6058 = vrcp.f32 %v4633_v53 }
0x2365   : > { %v4637_v50 = vpop.permute.xlu1 %4636 }
0x2366   : > { %5831 = vmatpush3.msra.mxu0 %v4637_v50 }
0x2367   : > { %5835 = vmatprep.subr.mxu0 %v6289_v0 }
0x2369   : > { %v4721_v15 = vpop.permute.xlu1 %4720 }
0x236a   : > { %v4728_v17 = vsel %vm1627_vm6, %v4727_v16, %v4721_v15 }
0x236f   : > { %v6059_v40 = vpop.eup %6058 }
0x2370   : > { %v4635_v8 = vmul.f32 %v6059_v40, %v6057_v6 }
0x2372   : > { %5833 = vmatmul.mubr.msk.f32.vlgmr.msra.gmra.mxu0 %vm1627_vm6, %v4635_v8 }
0x2373   : > { %5843 = vmatprep.mubr.msk.f32.mxu0 %vm6290_vm1, %v6289_v0  ;;  %5836 = vmatpush3.msra.mxu0 %v4019_v9 }
0x2374   : > { %5837 = vmatprep.subr.mxu0 %v6289_v0 }
0x2375   : > { %5838 = vmatpush3.msra.mxu0 %v4018_v10 }
0x2376   : > { %5839 = vmatprep.subr.mxu0 %v6289_v0 }
0x2377   : > { %5840 = vmatpush3.msra.mxu0 %v4017_v31 }
0x2378   : > { %5841 = vmatprep.subr.mxu0 %v6289_v0 }
0x2379   : > { %5842 = vmatpush3.msra.mxu0 %v4016_v12 }
0x237a   : > { %5857 = vmatprep.subr.mxu0 %v6289_v0 }
0x2432   : > { %v4711_v1 = vpop.f32.mrf.mxu0 }
0x2433   : > { %4724 = vrot.lane.b32.xlu0 %v4711_v1, %s7569_s29 }
0x2434   : > { %v5834_v13 = vpop.f32.mrf.mxu0 }
0x24a5   : > { %v4725_v44 = vpop.permute.xlu0 %4724 }
0x24a6   : > { %v4729_v18 = vsel %vm1629_vm7, %v4728_v17, %v4725_v44  ;;  %v5347_v17 = vld [vmem:[%s7583_s0] ss:$0 sm:$0xff]  ;;  %s6210_s0 = scalar_lea.vmem %s6209_s3, 256 }
0x24a7   : > { %5844 = vmatmul.mubr.msk.f32.vlgmr.msra.gmra.mxu0 %vm824_vm0, %v4729_v18  ;;  %p6212_p4 = scmp.lt.s32.totalorder %s6210_s0, %s6204_s21 }
0x24a8   : > { %5873 = vmatprep.mubr.msk.f32.mxu0 %vm6290_vm1, %v6289_v0  ;;  %5858 = vmatpush3.msra.mxu0 %v5343_v39 }
0x24a9   : > { %5859 = vmatprep.subr.mxu0 %v6289_v0  ;;  %p6213_p6 = por %p6212_p4, %p6211_p1 }
0x24aa   : > { %5860 = vmatpush3.msra.mxu0 %v5342_v3 }
0x24ab   : > { %5861 = vmatprep.subr.mxu0 %v6289_v0  ;;  %p6214_p3 = pnand %p6213_p6, %p6207_p10 }
0x24ac   : > { %5862 = vmatpush3.msra.mxu0 %v5341_v41 }
0x24ad   : > { %5863 = vmatprep.subr.mxu0 %v6289_v0 }
0x24ae   : > { %5864 = vmatpush3.msra.mxu0 %v5340_v43 }
0x24af   : > { %5865 = vmatprep.subr.mxu0 %v6289_v0 }
0x24b0   : > { %5866 = vmatpush3.msra.mxu0 %v5339_v47 }
0x24b1   : > { %5867 = vmatprep.subr.mxu0 %v6289_v0 }
0x24b2   : > { %5868 = vmatpush3.msra.mxu0 %v5338_v62 }
0x24b3   : > { %5869 = vmatprep.subr.mxu0 %v6289_v0 }
0x24b4   : > { %5870 = vmatpush3.msra.mxu0 %v5337_v34 }
0x24b5   : > { %5871 = vmatprep.subr.mxu0 %v6289_v0  ;;  %v5346_v0 = vld [vmem:[%s7571_s25 + $0x1] ss:$0 sm:$0xff] }
0x24b6   : > { %5872 = vmatpush3.msra.mxu0 %v5336_v57 }
0x2567   : > { %v4805_v11 = vpop.f32.mrf.mxu0 }
0x2568   : > { %v4806_v20 = vadd.f32 %v5331_v19, %v4805_v11  ;;  %v5348_v19 = vld [vmem:[%s7585_s24] ss:$0 sm:$0xff] }
0x2569   : > { %v5845_v24 = vpop.f32.mrf.mxu0 }
0x256a   : > { %v7341_v26 = vadd.f32 %v4806_v20, %v7178_v42  ;;  %v4841_v42 = vld [vmem:[#allocation10 + $0x20] sm:$0xff] }
0x256b   : > { %5853 = vmatpush3.msra.mxu1 %v4841_v42 }
0x256c   : > { %v4810_v27 = vsel %vm824_vm0, %v7341_v26, 0.0 }
0x256d   : > { %4811 = vadd.xlane.f32.xlu1 %v4810_v27 }
0x25f6   : > { %v4812_v28 = vpop.xlane.xlu1 %4811 }
0x25f7   : > { %v4813_v30 = vmul.f32 0.03125, %v4812_v28 }
0x25f9   : > { %v4814_v29 = vsub.f32 %v7341_v26, %v4813_v30 }
0x25fb   : > { %v4815_v32 = vmul.f32 %v4814_v29, %v4814_v29  ;;  %v4831_v56 = vmul.f32 %v4830_v55, %v4814_v29 }
0x25fd   : > { %v4816_v35 = vsel %vm824_vm0, %v4815_v32, 0.0 }
0x25fe   : > { %4817 = vadd.xlane.f32.xlu0 %v4816_v35 }
0x2687   : > { %v4818_v22 = vpop.xlane.xlu0 %4817 }
0x2688   : > { %v4819_v45 = vmul.f32 0.032258064, %v4818_v22 }
0x268a   : > { %6060 = vrsqrt.f32 %v4819_v45  ;;  %vm4822_vm1 = vcmp.eq.f32.partialorder %v4819_v45, inf  ;;  %v4825_v46 = vand.u32 2147483648, %v4819_v45  ;;  %vm4824_vm4 = vcmp.eq.f32.partialorder %v4819_v45, 0.0 }
0x2697   : > { %v6061_v48 = vpop.eup %6060 }
0x2698   : > { %v4821_v49 = vmul.f32 %v6061_v48, %v4819_v45 }
0x269a   : > { %v4823_v51 = vsel %vm4822_vm1, %v4819_v45, %v4821_v49 }
0x269b   : > { %v4826_v52 = vsel %vm4824_vm4, %v4825_v46, %v4823_v51 }
0x269c   : > { %v4832_v54 = vadd.f32 1e-06, %v4826_v52 }
0x269e   : > { %6062 = vrcp.f32 %v4832_v54 }
0x26ab   : > { %v6063_v59 = vpop.eup %6062 }
0x26ac   : > { %v4834_v60 = vmul.f32 %v6063_v59, %v4831_v56 }
0x26ae   : > { %v4839_v61 = vadd.f32 %v4838_v58, %v4834_v60 }
0x26b0   : > { %5855 = vmatmul.mubr.msk.f32.vlgmr.msra.gmra.mxu1 %vm824_vm0, %v4839_v61 }
0x2770   : > { %v4922_v63 = vpop.f32.mrf.mxu1 }
0x2771   : > { %v4923_v21 = vadd.f32 %v5334_v36, %v4922_v63 }
0x2772   : > { %v5856_v23 = vpop.f32.mrf.mxu1 }
0x2773   : > { %v4926_v25 = vmax.f32 %v4923_v21, 0.0 }
0x2775   : > { %5874 = vmatmul.mubr.msk.f32.vlgmr.msra.gmra.mxu0 %vm2839_vm13, %v4926_v25 }
0x2835   : > { %v5005_v2 = vpop.f32.mrf.mxu0 }
0x2836   : > { %v5009_v4 = vadd.f32 %v5005_v2, %v7341_v26 }
0x2837   : > { %v5875_v5 = vpop.f32.mrf.mxu0 }
0x2838   : > { %v5018_v6 = vadd.f32 %v5346_v0, %v5009_v4 }
0x283a   : > { %v5021_v7 = vsel %vm824_vm0, %v5018_v6, 0.0 }
0x283b   : > { %5022 = vadd.xlane.f32.xlu0 %v5021_v7 }
0x28c4   : > { %v5023_v53 = vpop.xlane.xlu0 %5022 }
0x28c5   : > { %v5024_v50 = vmul.f32 0.03125, %v5023_v53 }
0x28c7   : > { %v5025_v40 = vsub.f32 %v5018_v6, %v5024_v50 }
0x28c9   : > { %v5026_v8 = vmul.f32 %v5025_v40, %v5025_v40  ;;  %v5044_v44 = vmul.f32 %v5347_v17, %v5025_v40 }
0x28cb   : > { %v5027_v9 = vsel %vm824_vm0, %v5026_v8, 0.0 }
0x28cc   : > { %5028 = vadd.xlane.f32.xlu1 %v5027_v9 }
0x2955   : > { %v5029_v10 = vpop.xlane.xlu1 %5028 }
0x2956   : > { %v5030_v31 = vmul.f32 0.032258064, %v5029_v10 }
0x2958   : > { %6064 = vrsqrt.f32 %v5030_v31  ;;  %vm5033_vm5 = vcmp.eq.f32.partialorder %v5030_v31, inf  ;;  %v5036_v13 = vand.u32 2147483648, %v5030_v31  ;;  %vm5035_vm6 = vcmp.eq.f32.partialorder %v5030_v31, 0.0 }
0x2965   : > { %v6065_v12 = vpop.eup %6064 }
0x2966   : > { %v5032_v1 = vmul.f32 %v6065_v12, %v5030_v31 }
0x2968   : > { %v5034_v14 = vsel %vm5033_vm5, %v5030_v31, %v5032_v1 }
0x2969   : > { %v5037_v15 = vsel %vm5035_vm6, %v5036_v13, %v5034_v14 }
0x296a   : > { %v5045_v16 = vadd.f32 1e-06, %v5037_v15 }
0x296c   : > { %6066 = vrcp.f32 %v5045_v16 }
0x2979   : > { %v6067_v18 = vpop.eup %6066 }
0x297a   : > { %v5047_v11 = vmul.f32 %v6067_v18, %v5044_v44 }
0x297c   : > { %v5054_v20 = vadd.f32 %v5348_v19, %v5047_v11 }
0x297e   : > { %v5055_v24 = vsel %vm824_vm0, %v5054_v20, 0.0 }
0x297f   : > { %5056 = vst [vmem:[%s805_s5] sm:$0xff] %v5055_v24 }
0x2980   : > { %6217 = shalt.err (!%p6214_p3)
}
0x2981   : > { %s6218_s26 = scalar_lea.hbm %s7408_s22, 128  ;;  %s6222_s24 = scalar_lea.hbm %s7587_s12, 256 }
0x2982   : > { %p6219_p5 = scmp.ne.s32.totalorder %s7408_s22, %s6218_s26  ;;  %p6223_p7 = scmp.lt.s32.totalorder %s7408_s22, %s7587_s12 }
0x2983   : > { %p6224_p12 = scmp.lt.s32.totalorder %s6222_s24, %s6218_s26 }
0x2984   : > { %p6220_p8 = pnand %p6219_p5, %p7588_p0 }
0x2985   : > { %p6225_p9 = por %p6224_p12, %p6223_p7 }
0x2986   : > { %p6221_p2 = pneg %p6220_p8 }
0x2988   : > { %p6226_p13 = pnand %p6225_p9, %p6221_p2 }
0x298a   : > { %6229 = shalt.err (!%p6226_p13)
}
0x298b   : > { %5892 = dma.vmem_to_hbm [thread:$0]  (%p7588_p0), %s5072_s23, 128, %s7408_s22, %s5058_s2  }
0x298c PF: > { %s7589_s5 = sld [smem:[#allocation17_spill]]  ;;  %p7592_p10 = scmp.ge.s32.totalorder %s6280_s30, 2 }
0x298d   : > { %s7590_s10 = sld [smem:[#allocation19_spill]] }
0x2992   : > { %s5083_s29 = sand.u32 1, %s7589_s5  }
0x2993   : > { %p7591_p11 = scmp.ne.s32.totalorder %s7590_s10, 0  ;;  %s5084_s21 = scalar_lea.sflag [#allocation4], %s5083_s29 }
0x2995   : > { %p5912_p1 = pnand %p7592_p10, %p7591_p11 }
0x2997   : > { %p5913_p4 = pneg %p5912_p1 }
0x2999   : > { %6263 = dma.done.wait (%p5913_p4), %s5084_s21, 128  }
0x299a   : > { %6265 = vsyncadd (%p5913_p4), %s5084_s21, 4294967168  ;;  %s7593_s30 = sld [smem:[#allocation20_spill]]  ;;  %s7596_s3 = smov %s6272_s28 }
0x299b   : > { %s7594_s4 = sld [smem:[#allocation18_spill]] }
0x299c   : > { %s7595_s29 = sld [smem:[#allocation21_spill]] }
0x29a0   : > { %p39_p6 = scmp.ge.s32.totalorder %s7593_s30, 4  }
0x29a1   : > { %s7597_s28 = smov %s7594_s4 }
0x29a2   :  { %41 = sbr.rel (!%p39_p6) target bundleno = 25 (0x19), region = 200 }
0x29a7   :  { %5089 = vsyncpa [#allocation3], 1 }
0x29a8   :  { %5091 = vsyncpa [#allocation3 + $0x1], 1 }
0x29a9   :  { %5092 = vsyncpa [#allocation6], 1 }
0x29aa   :  { %5094 = vsyncpa [#allocation6 + $0x1], 1 }
0x29ab   :  { %5095 = vsyncpa [#allocation9], 1 }
0x29ac   :  { %5096 = vsyncpa [#allocation4], 1 }
0x29ad   :  { %5098 = vsyncpa [#allocation4 + $0x1], 1 }

</bundles_post_ra>
